<compile_context>
chip_gen: v7x
topology: tpu7x:2x2x1
jax: 0.10.0
libtpu: 0.0.40
codegen_flags: <defaults>
</compile_context>

<pallas_src>
import math
import jax
import jax.numpy as jnp
from jax import lax
from jax.experimental import pallas as pl
from jax.experimental.pallas import tpu as pltpu

# ----------------------------- tiny BERT config ------------------------------
B = 2            # batch
S = 8            # sequence length
H = 128          # hidden size
NH = 2           # attention heads
HD = H // NH     # head dim
I = 256          # intermediate (FFN) size
NLAYERS = 2
VOCAB = 100
TYPE_VOCAB = 2
MAX_POS = 32
LN_EPS = 1e-12


# ------------------------------ kernel helpers --------------------------------
def _ln(x, gamma, beta):
    # x: [M, H] fp32, gamma/beta: [1, H] fp32
    mu = jnp.mean(x, axis=-1, keepdims=True)
    xc = x - mu
    var = jnp.mean(xc * xc, axis=-1, keepdims=True)
    inv = lax.rsqrt(var + LN_EPS)
    return xc * inv * gamma + beta


def _gelu(x):
    # TODO(synk): HF BERT default is exact erf-GELU; using tanh approximation
    # (Pallas-safe transcendentals) here.
    c = math.sqrt(2.0 / math.pi)
    return 0.5 * x * (1.0 + jnp.tanh(c * (x + 0.044715 * x * x * x)))


# --------------------------- fused forward kernel ------------------------------
def fused_bert_kernel(emb_ref, bias_ref, eg_ref, eb_ref,
                      wqkv_ref, bqkv_ref, wo_ref, bo_ref,
                      g1_ref, be1_ref, w1_ref, b1_ref,
                      w2_ref, b2_ref, g2_ref, be2_ref,
                      wp_ref, bp_ref, wh_ref, bh_ref,
                      o_ref):
    scale = 1.0 / math.sqrt(HD)

    # Embedding LayerNorm on the whole [B*S, H] slab.
    x = emb_ref[...].astype(jnp.float32).reshape(B * S, H)
    x = _ln(x, eg_ref[...], eb_ref[...])

    for l in range(NLAYERS):                      # static unroll over layers
        # Fused Q/K/V projection on the full slab (bf16 weights, fp32 accum).
        qkv = jnp.dot(x.astype(jnp.bfloat16), wqkv_ref[l],
                      preferred_element_type=jnp.float32) + bqkv_ref[l]
        q = qkv[:, 0:H]
        k = qkv[:, H:2 * H]
        v = qkv[:, 2 * H:3 * H]

        wo = wo_ref[l]                            # [H, H] bf16
        attn_rows = []
        for b in range(B):                        # static unroll over batch
            bias_b = bias_ref[b]                  # [1, S] additive mask
            attn_b = jnp.zeros((S, H), jnp.float32)
            for h in range(NH):                   # static unroll over heads
                lo = h * HD
                qh = q[b * S:(b + 1) * S, lo:lo + HD]
                kh = k[b * S:(b + 1) * S, lo:lo + HD]
                vh = v[b * S:(b + 1) * S, lo:lo + HD]
                # Q . K^T via dot_general (contract last dims; no explicit
                # transpose through the XLU).
                s = lax.dot_general(qh, kh, (((1,), (1,)), ((), ())),
                                    preferred_element_type=jnp.float32)
                s = s * scale + bias_b
                s = s - jnp.max(s, axis=-1, keepdims=True)
                p = jnp.exp(s)
                p = p * pl.reciprocal(jnp.sum(p, axis=-1, keepdims=True),
                                      approx=True)
                ctx_h = jnp.dot(p, vh, preferred_element_type=jnp.float32)
                # Fold the head-concat into the Wo projection (sum over heads).
                attn_b = attn_b + jnp.dot(ctx_h.astype(jnp.bfloat16),
                                          wo[lo:lo + HD, :],
                                          preferred_element_type=jnp.float32)
            attn_rows.append(attn_b)
        attn = jnp.concatenate(attn_rows, axis=0) + bo_ref[l]   # [B*S, H]

        h1 = _ln(attn + x, g1_ref[l], be1_ref[l])
        ffn = jnp.dot(h1.astype(jnp.bfloat16), w1_ref[l],
                      preferred_element_type=jnp.float32) + b1_ref[l]
        ffn = _gelu(ffn)
        ffn = jnp.dot(ffn.astype(jnp.bfloat16), w2_ref[l],
                      preferred_element_type=jnp.float32) + b2_ref[l]
        x = _ln(ffn + h1, g2_ref[l], be2_ref[l])

    # Pooler: tanh(dense(CLS)).  CLS token for batch b is row b*S of the slab.
    cls = jnp.concatenate([x[b * S:b * S + 1, :] for b in range(B)], axis=0)
    pooled = jnp.tanh(jnp.dot(cls.astype(jnp.bfloat16), wp_ref[...],
                              preferred_element_type=jnp.float32) + bp_ref[...])
    # Regression head (H -> 1) as a VPU reduction, not an N=1 MXU matmul.
    score = jnp.sum(pooled * wh_ref[...], axis=-1, keepdims=True) + bh_ref[...]
    o_ref[...] = score.astype(o_ref.dtype)


# ------------------------------ Pallas wrapper --------------------------------
def pallas_bert_forward(emb, attn_bias, p, head_w_row, head_b):
    def full(shape):
        return pl.BlockSpec(shape, lambda i, _s=shape: (0,) * len(_s))

    in_specs = [
        full((B, S, H)),                   # embeddings
        full((B, 1, S)),                   # additive attention mask
        full((1, H)), full((1, H)),        # embedding LN gamma/beta
        full((NLAYERS, H, 3 * H)),         # fused QKV weights (bf16)
        full((NLAYERS, 1, 3 * H)),         # fused QKV bias
        full((NLAYERS, H, H)),             # Wo (bf16)
        full((NLAYERS, 1, H)),             # bo
        full((NLAYERS, 1, H)), full((NLAYERS, 1, H)),   # attn LN gamma/beta
        full((NLAYERS, H, I)),             # W1 (bf16)
        full((NLAYERS, 1, I)),             # b1
        full((NLAYERS, I, H)),             # W2 (bf16)
        full((NLAYERS, 1, H)),             # b2
        full((NLAYERS, 1, H)), full((NLAYERS, 1, H)),   # out LN gamma/beta
        full((H, H)), full((1, H)),        # pooler W (bf16), b
        full((1, H)), full((1, 1)),        # selected regression head (row), bias
    ]
    return pl.pallas_call(
        fused_bert_kernel,
        out_shape=jax.ShapeDtypeStruct((B, 1), jnp.float32),
        grid=(1,),
        in_specs=in_specs,
        out_specs=pl.BlockSpec((B, 1), lambda i: (0, 0)),
        compiler_params=pltpu.CompilerParams(
            dimension_semantics=("arbitrary",)),
    )(emb, attn_bias,
      p["emb_ln_g"], p["emb_ln_b"],
      p["wqkv"], p["bqkv"], p["wo"], p["bo"],
      p["ln1_g"], p["ln1_b"], p["w1"], p["b1"],
      p["w2"], p["b2"], p["ln2_g"], p["ln2_b"],
      p["pool_w"], p["pool_b"], head_w_row, head_b)


# --------------------------- parameter construction ----------------------------
def init_params(key):
    def normal(key, shape, scale=0.02):
        return scale * jax.random.normal(key, shape, dtype=jnp.float32)

    keys = iter(jax.random.split(key, 64))
    p = {
        "word_emb": normal(next(keys), (VOCAB, H)),
        "pos_emb": normal(next(keys), (MAX_POS, H)),
        "type_emb": normal(next(keys), (TYPE_VOCAB, H)),
        "emb_ln_g": jnp.ones((1, H), jnp.float32),
        "emb_ln_b": jnp.zeros((1, H), jnp.float32),
        "pool_w": normal(next(keys), (H, H)).astype(jnp.bfloat16),
        "pool_b": jnp.zeros((1, H), jnp.float32),
    }
    # Stacked per-layer weights; matmul weights stored in bf16.
    p["wqkv"] = jnp.stack([
        jnp.concatenate([normal(next(keys), (H, H)) for _ in range(3)], axis=-1)
        for _ in range(NLAYERS)]).astype(jnp.bfloat16)        # [L, H, 3H]
    p["bqkv"] = jnp.zeros((NLAYERS, 1, 3 * H), jnp.float32)
    p["wo"] = jnp.stack([normal(next(keys), (H, H))
                         for _ in range(NLAYERS)]).astype(jnp.bfloat16)
    p["bo"] = jnp.zeros((NLAYERS, 1, H), jnp.float32)
    p["ln1_g"] = jnp.ones((NLAYERS, 1, H), jnp.float32)
    p["ln1_b"] = jnp.zeros((NLAYERS, 1, H), jnp.float32)
    p["w1"] = jnp.stack([normal(next(keys), (H, I))
                         for _ in range(NLAYERS)]).astype(jnp.bfloat16)
    p["b1"] = jnp.zeros((NLAYERS, 1, I), jnp.float32)
    p["w2"] = jnp.stack([normal(next(keys), (I, H))
                         for _ in range(NLAYERS)]).astype(jnp.bfloat16)
    p["b2"] = jnp.zeros((NLAYERS, 1, H), jnp.float32)
    p["ln2_g"] = jnp.ones((NLAYERS, 1, H), jnp.float32)
    p["ln2_b"] = jnp.zeros((NLAYERS, 1, H), jnp.float32)
    # 5 trust-function regression heads: Linear(H, 1), stored as [1, H] rows
    # so the kernel can do a VPU reduction instead of an N=1 matmul.
    p["heads"] = {}
    for name in ("Reliability", "Privacy", "Security", "Resilience", "Safety"):
        p["heads"][name] = (normal(next(keys), (1, H)),
                            jnp.zeros((1, 1), jnp.float32))
    return p


# --------------------------------- forward -------------------------------------
def bert_for_quantification(params, input_ids, attention_mask, class_type):
    if class_type not in params["heads"]:
        raise ValueError("Invalid class_type. Must be one of: Reliability, "
                         "Privacy, Security, Resilience, Safety.")

    # Embedding gathers (plain-JAX glue).
    positions = jnp.arange(S, dtype=jnp.int32)
    token_type_ids = jnp.zeros((B, S), jnp.int32)
    emb = (jnp.take(params["word_emb"], input_ids, axis=0)
           + jnp.take(params["pos_emb"], positions, axis=0)[None, :, :]
           + jnp.take(params["type_emb"], token_type_ids, axis=0))

    # Additive attention-mask bias, shape [B, 1, S].
    attn_bias = ((1.0 - attention_mask.astype(jnp.float32)) * -1e9)[:, None, :]

    head_w_row, head_b = params["heads"][class_type]
    return pallas_bert_forward(emb.astype(jnp.float32), attn_bias, params,
                               head_w_row, head_b)           # [B, 1]


# ----------------------------------- main ---------------------------------------
if __name__ == "__main__":
    key = jax.random.PRNGKey(0)
    k_params, k_ids = jax.random.split(key)
    params = init_params(k_params)

    input_ids = jax.random.randint(k_ids, (B, S), 0, VOCAB, dtype=jnp.int32)
    attention_mask = jnp.ones((B, S), jnp.int32).at[1, 6:].set(0)  # pad tail of row 1

    score = bert_for_quantification(params, input_ids, attention_mask, "Reliability")
    score = jax.block_until_ready(score)
    assert score.shape == (B, 1) and score.dtype == jnp.float32
    assert bool(jnp.all(jnp.isfinite(score)))
    print("KERNEL_OK")
</pallas_src>

<mosaic_0001>
module attributes {stable_mosaic.version = 11 : i64} {
  func.func @fused_bert_kernel(%arg0: i32, %arg1: memref<2x8x128xf32, #tpu.memory_space<vmem>>, %arg2: memref<2x1x8xf32, #tpu.memory_space<vmem>>, %arg3: memref<1x128xf32, #tpu.memory_space<vmem>>, %arg4: memref<1x128xf32, #tpu.memory_space<vmem>>, %arg5: memref<2x128x384xbf16, #tpu.memory_space<vmem>>, %arg6: memref<2x1x384xf32, #tpu.memory_space<vmem>>, %arg7: memref<2x128x128xbf16, #tpu.memory_space<vmem>>, %arg8: memref<2x1x128xf32, #tpu.memory_space<vmem>>, %arg9: memref<2x1x128xf32, #tpu.memory_space<vmem>>, %arg10: memref<2x1x128xf32, #tpu.memory_space<vmem>>, %arg11: memref<2x128x256xbf16, #tpu.memory_space<vmem>>, %arg12: memref<2x1x256xf32, #tpu.memory_space<vmem>>, %arg13: memref<2x256x128xbf16, #tpu.memory_space<vmem>>, %arg14: memref<2x1x128xf32, #tpu.memory_space<vmem>>, %arg15: memref<2x1x128xf32, #tpu.memory_space<vmem>>, %arg16: memref<2x1x128xf32, #tpu.memory_space<vmem>>, %arg17: memref<128x128xbf16, #tpu.memory_space<vmem>>, %arg18: memref<1x128xf32, #tpu.memory_space<vmem>>, %arg19: memref<1x128xf32, #tpu.memory_space<vmem>>, %arg20: memref<1x1xf32, #tpu.memory_space<vmem>>, %arg21: memref<2x1xf32, #tpu.memory_space<vmem>>) attributes {dimension_semantics = [#tpu.dimension_semantics<arbitrary>], iteration_bounds = array<i64: 1>, scalar_prefetch = 0 : i64, scratch_operands = 0 : i64, tpu.core_type = #tpu.core_type<tc>, window_params = [{pipeline_mode = #tpu.pipeline_mode<synchronous>, transform_indices = @transform_0, window_bounds = array<i64: 2, 8, 128>}, {pipeline_mode = #tpu.pipeline_mode<synchronous>, transform_indices = @transform_1, window_bounds = array<i64: 2, 1, 8>}, {pipeline_mode = #tpu.pipeline_mode<synchronous>, transform_indices = @transform_2, window_bounds = array<i64: 1, 128>}, {pipeline_mode = #tpu.pipeline_mode<synchronous>, transform_indices = @transform_3, window_bounds = array<i64: 1, 128>}, {pipeline_mode = #tpu.pipeline_mode<synchronous>, transform_indices = @transform_4, window_bounds = array<i64: 2, 128, 384>}, {pipeline_mode = #tpu.pipeline_mode<synchronous>, transform_indices = @transform_5, window_bounds = array<i64: 2, 1, 384>}, {pipeline_mode = #tpu.pipeline_mode<synchronous>, transform_indices = @transform_6, window_bounds = array<i64: 2, 128, 128>}, {pipeline_mode = #tpu.pipeline_mode<synchronous>, transform_indices = @transform_7, window_bounds = array<i64: 2, 1, 128>}, {pipeline_mode = #tpu.pipeline_mode<synchronous>, transform_indices = @transform_8, window_bounds = array<i64: 2, 1, 128>}, {pipeline_mode = #tpu.pipeline_mode<synchronous>, transform_indices = @transform_9, window_bounds = array<i64: 2, 1, 128>}, {pipeline_mode = #tpu.pipeline_mode<synchronous>, transform_indices = @transform_10, window_bounds = array<i64: 2, 128, 256>}, {pipeline_mode = #tpu.pipeline_mode<synchronous>, transform_indices = @transform_11, window_bounds = array<i64: 2, 1, 256>}, {pipeline_mode = #tpu.pipeline_mode<synchronous>, transform_indices = @transform_12, window_bounds = array<i64: 2, 256, 128>}, {pipeline_mode = #tpu.pipeline_mode<synchronous>, transform_indices = @transform_13, window_bounds = array<i64: 2, 1, 128>}, {pipeline_mode = #tpu.pipeline_mode<synchronous>, transform_indices = @transform_14, window_bounds = array<i64: 2, 1, 128>}, {pipeline_mode = #tpu.pipeline_mode<synchronous>, transform_indices = @transform_15, window_bounds = array<i64: 2, 1, 128>}, {pipeline_mode = #tpu.pipeline_mode<synchronous>, transform_indices = @transform_16, window_bounds = array<i64: 128, 128>}, {pipeline_mode = #tpu.pipeline_mode<synchronous>, transform_indices = @transform_17, window_bounds = array<i64: 1, 128>}, {pipeline_mode = #tpu.pipeline_mode<synchronous>, transform_indices = @transform_18, window_bounds = array<i64: 1, 128>}, {pipeline_mode = #tpu.pipeline_mode<synchronous>, transform_indices = @transform_19, window_bounds = array<i64: 1, 1>}, {pipeline_mode = #tpu.pipeline_mode<synchronous>, transform_indices = @transform_20, window_bounds = array<i64: 2, 1>}]} {
    %c0 = arith.constant 0 : index
    %c0_0 = arith.constant 0 : index
    %c0_1 = arith.constant 0 : index
    %0 = vector.load %arg1[%c0, %c0_0, %c0_1] : memref<2x8x128xf32, #tpu.memory_space<vmem>>, vector<2x8x128xf32>
    %1 = vector.shape_cast %0 : vector<2x8x128xf32> to vector<16x128xf32>
    %c0_2 = arith.constant 0 : index
    %c0_3 = arith.constant 0 : index
    %2 = vector.load %arg3[%c0_2, %c0_3] : memref<1x128xf32, #tpu.memory_space<vmem>>, vector<1x128xf32>
    %c0_4 = arith.constant 0 : index
    %c0_5 = arith.constant 0 : index
    %3 = vector.load %arg4[%c0_4, %c0_5] : memref<1x128xf32, #tpu.memory_space<vmem>>, vector<1x128xf32>
    %cst = arith.constant dense<0.000000e+00> : vector<16xf32>
    %4 = vector.multi_reduction <add>, %1, %cst [1] : vector<16x128xf32> to vector<16xf32>
    %5 = vector.shape_cast %4 : vector<16xf32> to vector<16x1xf32>
    %cst_6 = arith.constant 1.280000e+02 : f32
    %6 = vector.broadcast %cst_6 : f32 to vector<16x1xf32>
    %7 = arith.divf %5, %6 : vector<16x1xf32>
    %8 = vector.broadcast %7 : vector<16x1xf32> to vector<16x128xf32>
    %9 = arith.subf %1, %8 : vector<16x128xf32>
    %10 = arith.mulf %9, %9 : vector<16x128xf32>
    %cst_7 = arith.constant dense<0.000000e+00> : vector<16xf32>
    %11 = vector.multi_reduction <add>, %10, %cst_7 [1] : vector<16x128xf32> to vector<16xf32>
    %12 = vector.shape_cast %11 : vector<16xf32> to vector<16x1xf32>
    %cst_8 = arith.constant 1.280000e+02 : f32
    %13 = vector.broadcast %cst_8 : f32 to vector<16x1xf32>
    %14 = arith.divf %12, %13 : vector<16x1xf32>
    %cst_9 = arith.constant 9.99999996E-13 : f32
    %15 = vector.broadcast %cst_9 : f32 to vector<16x1xf32>
    %16 = arith.addf %14, %15 : vector<16x1xf32>
    %17 = math.rsqrt %16 : vector<16x1xf32>
    %18 = vector.broadcast %17 : vector<16x1xf32> to vector<16x128xf32>
    %19 = arith.mulf %9, %18 : vector<16x128xf32>
    %20 = vector.broadcast %2 : vector<1x128xf32> to vector<16x128xf32>
    %21 = arith.mulf %19, %20 : vector<16x128xf32>
    %22 = vector.broadcast %3 : vector<1x128xf32> to vector<16x128xf32>
    %23 = arith.addf %21, %22 : vector<16x128xf32>
    %24 = arith.truncf %23 : vector<16x128xf32> to vector<16x128xbf16>
    %c0_10 = arith.constant 0 : index
    %c0_11 = arith.constant 0 : index
    %c0_12 = arith.constant 0 : index
    %25 = vector.load %arg5[%c0_10, %c0_11, %c0_12] : memref<2x128x384xbf16, #tpu.memory_space<vmem>>, vector<1x128x384xbf16>
    %26 = vector.shape_cast %25 : vector<1x128x384xbf16> to vector<128x384xbf16>
    %cst_13 = arith.constant dense<0.000000e+00> : vector<16x384xf32>
    %27 = tpu.matmul %24, %26, %cst_13 {dimension_numbers = #tpu.dot_dimension_numbers<[1], [0], [0], [1], [0, 0, 1, 1], [], []>} : vector<16x128xbf16>, vector<128x384xbf16>, vector<16x384xf32> -> vector<16x384xf32>
    %c0_14 = arith.constant 0 : index
    %c0_15 = arith.constant 0 : index
    %c0_16 = arith.constant 0 : index
    %28 = vector.load %arg6[%c0_14, %c0_15, %c0_16] : memref<2x1x384xf32, #tpu.memory_space<vmem>>, vector<1x1x384xf32>
    %29 = vector.shape_cast %28 : vector<1x1x384xf32> to vector<1x384xf32>
    %30 = vector.broadcast %29 : vector<1x384xf32> to vector<16x384xf32>
    %31 = arith.addf %27, %30 : vector<16x384xf32>
    %32 = vector.extract_strided_slice %31 {offsets = [0, 0], sizes = [16, 128], strides = [1, 1]} : vector<16x384xf32> to vector<16x128xf32>
    %33 = vector.extract_strided_slice %31 {offsets = [0, 128], sizes = [16, 128], strides = [1, 1]} : vector<16x384xf32> to vector<16x128xf32>
    %34 = vector.extract_strided_slice %31 {offsets = [0, 256], sizes = [16, 128], strides = [1, 1]} : vector<16x384xf32> to vector<16x128xf32>
    %c0_17 = arith.constant 0 : index
    %c0_18 = arith.constant 0 : index
    %c0_19 = arith.constant 0 : index
    %35 = vector.load %arg7[%c0_17, %c0_18, %c0_19] : memref<2x128x128xbf16, #tpu.memory_space<vmem>>, vector<1x128x128xbf16>
    %36 = vector.shape_cast %35 : vector<1x128x128xbf16> to vector<128x128xbf16>
    %c0_20 = arith.constant 0 : index
    %c0_21 = arith.constant 0 : index
    %c0_22 = arith.constant 0 : index
    %37 = vector.load %arg2[%c0_20, %c0_21, %c0_22] : memref<2x1x8xf32, #tpu.memory_space<vmem>>, vector<1x1x8xf32>
    %38 = vector.shape_cast %37 : vector<1x1x8xf32> to vector<1x8xf32>
    %cst_23 = arith.constant 0.000000e+00 : f32
    %39 = vector.broadcast %cst_23 : f32 to vector<8x128xf32>
    %40 = vector.extract_strided_slice %32 {offsets = [0, 0], sizes = [8, 64], strides = [1, 1]} : vector<16x128xf32> to vector<8x64xf32>
    %41 = vector.extract_strided_slice %33 {offsets = [0, 0], sizes = [8, 64], strides = [1, 1]} : vector<16x128xf32> to vector<8x64xf32>
    %42 = vector.extract_strided_slice %34 {offsets = [0, 0], sizes = [8, 64], strides = [1, 1]} : vector<16x128xf32> to vector<8x64xf32>
    %cst_24 = arith.constant dense<0.000000e+00> : vector<8x8xf32>
    %43 = tpu.matmul %40, %41, %cst_24 {dimension_numbers = #tpu.dot_dimension_numbers<[1], [1], [0], [0], [0, 0, 1, 0], [], []>} : vector<8x64xf32>, vector<8x64xf32>, vector<8x8xf32> -> vector<8x8xf32>
    %cst_25 = arith.constant 1.250000e-01 : f32
    %44 = vector.broadcast %cst_25 : f32 to vector<8x8xf32>
    %45 = arith.mulf %43, %44 : vector<8x8xf32>
    %46 = vector.broadcast %38 : vector<1x8xf32> to vector<8x8xf32>
    %47 = arith.addf %45, %46 : vector<8x8xf32>
    %cst_26 = arith.constant dense<0xFF800000> : vector<8xf32>
    %48 = vector.multi_reduction <maximumf>, %47, %cst_26 [1] : vector<8x8xf32> to vector<8xf32>
    %49 = vector.shape_cast %48 : vector<8xf32> to vector<8x1xf32>
    %50 = vector.broadcast %49 : vector<8x1xf32> to vector<8x8xf32>
    %51 = arith.subf %47, %50 : vector<8x8xf32>
    %52 = math.exp %51 : vector<8x8xf32>
    %cst_27 = arith.constant dense<0.000000e+00> : vector<8xf32>
    %53 = vector.multi_reduction <add>, %52, %cst_27 [1] : vector<8x8xf32> to vector<8xf32>
    %54 = vector.shape_cast %53 : vector<8xf32> to vector<8x1xf32>
    %55 = tpu.reciprocal %54 {approx = true} : vector<8x1xf32> -> vector<8x1xf32>
    %56 = vector.broadcast %55 : vector<8x1xf32> to vector<8x8xf32>
    %57 = arith.mulf %52, %56 : vector<8x8xf32>
    %cst_28 = arith.constant dense<0.000000e+00> : vector<8x64xf32>
    %58 = tpu.matmul %57, %42, %cst_28 {dimension_numbers = #tpu.dot_dimension_numbers<[1], [0], [0], [1], [0, 0, 1, 1], [], []>} : vector<8x8xf32>, vector<8x64xf32>, vector<8x64xf32> -> vector<8x64xf32>
    %59 = arith.truncf %58 : vector<8x64xf32> to vector<8x64xbf16>
    %60 = vector.extract_strided_slice %36 {offsets = [0, 0], sizes = [64, 128], strides = [1, 1]} : vector<128x128xbf16> to vector<64x128xbf16>
    %cst_29 = arith.constant dense<0.000000e+00> : vector<8x128xf32>
    %61 = tpu.matmul %59, %60, %cst_29 {dimension_numbers = #tpu.dot_dimension_numbers<[1], [0], [0], [1], [0, 0, 1, 1], [], []>} : vector<8x64xbf16>, vector<64x128xbf16>, vector<8x128xf32> -> vector<8x128xf32>
    %62 = arith.addf %39, %61 : vector<8x128xf32>
    %63 = vector.extract_strided_slice %32 {offsets = [0, 64], sizes = [8, 64], strides = [1, 1]} : vector<16x128xf32> to vector<8x64xf32>
    %64 = vector.extract_strided_slice %33 {offsets = [0, 64], sizes = [8, 64], strides = [1, 1]} : vector<16x128xf32> to vector<8x64xf32>
    %65 = vector.extract_strided_slice %34 {offsets = [0, 64], sizes = [8, 64], strides = [1, 1]} : vector<16x128xf32> to vector<8x64xf32>
    %cst_30 = arith.constant dense<0.000000e+00> : vector<8x8xf32>
    %66 = tpu.matmul %63, %64, %cst_30 {dimension_numbers = #tpu.dot_dimension_numbers<[1], [1], [0], [0], [0, 0, 1, 0], [], []>} : vector<8x64xf32>, vector<8x64xf32>, vector<8x8xf32> -> vector<8x8xf32>
    %cst_31 = arith.constant 1.250000e-01 : f32
    %67 = vector.broadcast %cst_31 : f32 to vector<8x8xf32>
    %68 = arith.mulf %66, %67 : vector<8x8xf32>
    %69 = vector.broadcast %38 : vector<1x8xf32> to vector<8x8xf32>
    %70 = arith.addf %68, %69 : vector<8x8xf32>
    %cst_32 = arith.constant dense<0xFF800000> : vector<8xf32>
    %71 = vector.multi_reduction <maximumf>, %70, %cst_32 [1] : vector<8x8xf32> to vector<8xf32>
    %72 = vector.shape_cast %71 : vector<8xf32> to vector<8x1xf32>
    %73 = vector.broadcast %72 : vector<8x1xf32> to vector<8x8xf32>
    %74 = arith.subf %70, %73 : vector<8x8xf32>
    %75 = math.exp %74 : vector<8x8xf32>
    %cst_33 = arith.constant dense<0.000000e+00> : vector<8xf32>
    %76 = vector.multi_reduction <add>, %75, %cst_33 [1] : vector<8x8xf32> to vector<8xf32>
    %77 = vector.shape_cast %76 : vector<8xf32> to vector<8x1xf32>
    %78 = tpu.reciprocal %77 {approx = true} : vector<8x1xf32> -> vector<8x1xf32>
    %79 = vector.broadcast %78 : vector<8x1xf32> to vector<8x8xf32>
    %80 = arith.mulf %75, %79 : vector<8x8xf32>
    %cst_34 = arith.constant dense<0.000000e+00> : vector<8x64xf32>
    %81 = tpu.matmul %80, %65, %cst_34 {dimension_numbers = #tpu.dot_dimension_numbers<[1], [0], [0], [1], [0, 0, 1, 1], [], []>} : vector<8x8xf32>, vector<8x64xf32>, vector<8x64xf32> -> vector<8x64xf32>
    %82 = arith.truncf %81 : vector<8x64xf32> to vector<8x64xbf16>
    %83 = vector.extract_strided_slice %36 {offsets = [64, 0], sizes = [64, 128], strides = [1, 1]} : vector<128x128xbf16> to vector<64x128xbf16>
    %cst_35 = arith.constant dense<0.000000e+00> : vector<8x128xf32>
    %84 = tpu.matmul %82, %83, %cst_35 {dimension_numbers = #tpu.dot_dimension_numbers<[1], [0], [0], [1], [0, 0, 1, 1], [], []>} : vector<8x64xbf16>, vector<64x128xbf16>, vector<8x128xf32> -> vector<8x128xf32>
    %85 = arith.addf %62, %84 : vector<8x128xf32>
    %c1 = arith.constant 1 : index
    %c0_36 = arith.constant 0 : index
    %c0_37 = arith.constant 0 : index
    %86 = vector.load %arg2[%c1, %c0_36, %c0_37] : memref<2x1x8xf32, #tpu.memory_space<vmem>>, vector<1x1x8xf32>
    %87 = vector.shape_cast %86 : vector<1x1x8xf32> to vector<1x8xf32>
    %cst_38 = arith.constant 0.000000e+00 : f32
    %88 = vector.broadcast %cst_38 : f32 to vector<8x128xf32>
    %89 = vector.extract_strided_slice %32 {offsets = [8, 0], sizes = [8, 64], strides = [1, 1]} : vector<16x128xf32> to vector<8x64xf32>
    %90 = vector.extract_strided_slice %33 {offsets = [8, 0], sizes = [8, 64], strides = [1, 1]} : vector<16x128xf32> to vector<8x64xf32>
    %91 = vector.extract_strided_slice %34 {offsets = [8, 0], sizes = [8, 64], strides = [1, 1]} : vector<16x128xf32> to vector<8x64xf32>
    %cst_39 = arith.constant dense<0.000000e+00> : vector<8x8xf32>
    %92 = tpu.matmul %89, %90, %cst_39 {dimension_numbers = #tpu.dot_dimension_numbers<[1], [1], [0], [0], [0, 0, 1, 0], [], []>} : vector<8x64xf32>, vector<8x64xf32>, vector<8x8xf32> -> vector<8x8xf32>
    %cst_40 = arith.constant 1.250000e-01 : f32
    %93 = vector.broadcast %cst_40 : f32 to vector<8x8xf32>
    %94 = arith.mulf %92, %93 : vector<8x8xf32>
    %95 = vector.broadcast %87 : vector<1x8xf32> to vector<8x8xf32>
    %96 = arith.addf %94, %95 : vector<8x8xf32>
    %cst_41 = arith.constant dense<0xFF800000> : vector<8xf32>
    %97 = vector.multi_reduction <maximumf>, %96, %cst_41 [1] : vector<8x8xf32> to vector<8xf32>
    %98 = vector.shape_cast %97 : vector<8xf32> to vector<8x1xf32>
    %99 = vector.broadcast %98 : vector<8x1xf32> to vector<8x8xf32>
    %100 = arith.subf %96, %99 : vector<8x8xf32>
    %101 = math.exp %100 : vector<8x8xf32>
    %cst_42 = arith.constant dense<0.000000e+00> : vector<8xf32>
    %102 = vector.multi_reduction <add>, %101, %cst_42 [1] : vector<8x8xf32> to vector<8xf32>
    %103 = vector.shape_cast %102 : vector<8xf32> to vector<8x1xf32>
    %104 = tpu.reciprocal %103 {approx = true} : vector<8x1xf32> -> vector<8x1xf32>
    %105 = vector.broadcast %104 : vector<8x1xf32> to vector<8x8xf32>
    %106 = arith.mulf %101, %105 : vector<8x8xf32>
    %cst_43 = arith.constant dense<0.000000e+00> : vector<8x64xf32>
    %107 = tpu.matmul %106, %91, %cst_43 {dimension_numbers = #tpu.dot_dimension_numbers<[1], [0], [0], [1], [0, 0, 1, 1], [], []>} : vector<8x8xf32>, vector<8x64xf32>, vector<8x64xf32> -> vector<8x64xf32>
    %108 = arith.truncf %107 : vector<8x64xf32> to vector<8x64xbf16>
    %109 = vector.extract_strided_slice %36 {offsets = [0, 0], sizes = [64, 128], strides = [1, 1]} : vector<128x128xbf16> to vector<64x128xbf16>
    %cst_44 = arith.constant dense<0.000000e+00> : vector<8x128xf32>
    %110 = tpu.matmul %108, %109, %cst_44 {dimension_numbers = #tpu.dot_dimension_numbers<[1], [0], [0], [1], [0, 0, 1, 1], [], []>} : vector<8x64xbf16>, vector<64x128xbf16>, vector<8x128xf32> -> vector<8x128xf32>
    %111 = arith.addf %88, %110 : vector<8x128xf32>
    %112 = vector.extract_strided_slice %32 {offsets = [8, 64], sizes = [8, 64], strides = [1, 1]} : vector<16x128xf32> to vector<8x64xf32>
    %113 = vector.extract_strided_slice %33 {offsets = [8, 64], sizes = [8, 64], strides = [1, 1]} : vector<16x128xf32> to vector<8x64xf32>
    %114 = vector.extract_strided_slice %34 {offsets = [8, 64], sizes = [8, 64], strides = [1, 1]} : vector<16x128xf32> to vector<8x64xf32>
    %cst_45 = arith.constant dense<0.000000e+00> : vector<8x8xf32>
    %115 = tpu.matmul %112, %113, %cst_45 {dimension_numbers = #tpu.dot_dimension_numbers<[1], [1], [0], [0], [0, 0, 1, 0], [], []>} : vector<8x64xf32>, vector<8x64xf32>, vector<8x8xf32> -> vector<8x8xf32>
    %cst_46 = arith.constant 1.250000e-01 : f32
    %116 = vector.broadcast %cst_46 : f32 to vector<8x8xf32>
    %117 = arith.mulf %115, %116 : vector<8x8xf32>
    %118 = vector.broadcast %87 : vector<1x8xf32> to vector<8x8xf32>
    %119 = arith.addf %117, %118 : vector<8x8xf32>
    %cst_47 = arith.constant dense<0xFF800000> : vector<8xf32>
    %120 = vector.multi_reduction <maximumf>, %119, %cst_47 [1] : vector<8x8xf32> to vector<8xf32>
    %121 = vector.shape_cast %120 : vector<8xf32> to vector<8x1xf32>
    %122 = vector.broadcast %121 : vector<8x1xf32> to vector<8x8xf32>
    %123 = arith.subf %119, %122 : vector<8x8xf32>
    %124 = math.exp %123 : vector<8x8xf32>
    %cst_48 = arith.constant dense<0.000000e+00> : vector<8xf32>
    %125 = vector.multi_reduction <add>, %124, %cst_48 [1] : vector<8x8xf32> to vector<8xf32>
    %126 = vector.shape_cast %125 : vector<8xf32> to vector<8x1xf32>
    %127 = tpu.reciprocal %126 {approx = true} : vector<8x1xf32> -> vector<8x1xf32>
    %128 = vector.broadcast %127 : vector<8x1xf32> to vector<8x8xf32>
    %129 = arith.mulf %124, %128 : vector<8x8xf32>
    %cst_49 = arith.constant dense<0.000000e+00> : vector<8x64xf32>
    %130 = tpu.matmul %129, %114, %cst_49 {dimension_numbers = #tpu.dot_dimension_numbers<[1], [0], [0], [1], [0, 0, 1, 1], [], []>} : vector<8x8xf32>, vector<8x64xf32>, vector<8x64xf32> -> vector<8x64xf32>
    %131 = arith.truncf %130 : vector<8x64xf32> to vector<8x64xbf16>
    %132 = vector.extract_strided_slice %36 {offsets = [64, 0], sizes = [64, 128], strides = [1, 1]} : vector<128x128xbf16> to vector<64x128xbf16>
    %cst_50 = arith.constant dense<0.000000e+00> : vector<8x128xf32>
    %133 = tpu.matmul %131, %132, %cst_50 {dimension_numbers = #tpu.dot_dimension_numbers<[1], [0], [0], [1], [0, 0, 1, 1], [], []>} : vector<8x64xbf16>, vector<64x128xbf16>, vector<8x128xf32> -> vector<8x128xf32>
    %134 = arith.addf %111, %133 : vector<8x128xf32>
    %135 = tpu.concatenate %85, %134 in 0 : vector<8x128xf32>, vector<8x128xf32> -> vector<16x128xf32>
    %c0_51 = arith.constant 0 : index
    %c0_52 = arith.constant 0 : index
    %c0_53 = arith.constant 0 : index
    %136 = vector.load %arg8[%c0_51, %c0_52, %c0_53] : memref<2x1x128xf32, #tpu.memory_space<vmem>>, vector<1x1x128xf32>
    %137 = vector.shape_cast %136 : vector<1x1x128xf32> to vector<1x128xf32>
    %138 = vector.broadcast %137 : vector<1x128xf32> to vector<16x128xf32>
    %139 = arith.addf %135, %138 : vector<16x128xf32>
    %140 = arith.addf %139, %23 : vector<16x128xf32>
    %c0_54 = arith.constant 0 : index
    %c0_55 = arith.constant 0 : index
    %c0_56 = arith.constant 0 : index
    %141 = vector.load %arg9[%c0_54, %c0_55, %c0_56] : memref<2x1x128xf32, #tpu.memory_space<vmem>>, vector<1x1x128xf32>
    %142 = vector.shape_cast %141 : vector<1x1x128xf32> to vector<1x128xf32>
    %c0_57 = arith.constant 0 : index
    %c0_58 = arith.constant 0 : index
    %c0_59 = arith.constant 0 : index
    %143 = vector.load %arg10[%c0_57, %c0_58, %c0_59] : memref<2x1x128xf32, #tpu.memory_space<vmem>>, vector<1x1x128xf32>
    %144 = vector.shape_cast %143 : vector<1x1x128xf32> to vector<1x128xf32>
    %cst_60 = arith.constant dense<0.000000e+00> : vector<16xf32>
    %145 = vector.multi_reduction <add>, %140, %cst_60 [1] : vector<16x128xf32> to vector<16xf32>
    %146 = vector.shape_cast %145 : vector<16xf32> to vector<16x1xf32>
    %cst_61 = arith.constant 1.280000e+02 : f32
    %147 = vector.broadcast %cst_61 : f32 to vector<16x1xf32>
    %148 = arith.divf %146, %147 : vector<16x1xf32>
    %149 = vector.broadcast %148 : vector<16x1xf32> to vector<16x128xf32>
    %150 = arith.subf %140, %149 : vector<16x128xf32>
    %151 = arith.mulf %150, %150 : vector<16x128xf32>
    %cst_62 = arith.constant dense<0.000000e+00> : vector<16xf32>
    %152 = vector.multi_reduction <add>, %151, %cst_62 [1] : vector<16x128xf32> to vector<16xf32>
    %153 = vector.shape_cast %152 : vector<16xf32> to vector<16x1xf32>
    %cst_63 = arith.constant 1.280000e+02 : f32
    %154 = vector.broadcast %cst_63 : f32 to vector<16x1xf32>
    %155 = arith.divf %153, %154 : vector<16x1xf32>
    %cst_64 = arith.constant 9.99999996E-13 : f32
    %156 = vector.broadcast %cst_64 : f32 to vector<16x1xf32>
    %157 = arith.addf %155, %156 : vector<16x1xf32>
    %158 = math.rsqrt %157 : vector<16x1xf32>
    %159 = vector.broadcast %158 : vector<16x1xf32> to vector<16x128xf32>
    %160 = arith.mulf %150, %159 : vector<16x128xf32>
    %161 = vector.broadcast %142 : vector<1x128xf32> to vector<16x128xf32>
    %162 = arith.mulf %160, %161 : vector<16x128xf32>
    %163 = vector.broadcast %144 : vector<1x128xf32> to vector<16x128xf32>
    %164 = arith.addf %162, %163 : vector<16x128xf32>
    %165 = arith.truncf %164 : vector<16x128xf32> to vector<16x128xbf16>
    %c0_65 = arith.constant 0 : index
    %c0_66 = arith.constant 0 : index
    %c0_67 = arith.constant 0 : index
    %166 = vector.load %arg11[%c0_65, %c0_66, %c0_67] : memref<2x128x256xbf16, #tpu.memory_space<vmem>>, vector<1x128x256xbf16>
    %167 = vector.shape_cast %166 : vector<1x128x256xbf16> to vector<128x256xbf16>
    %cst_68 = arith.constant dense<0.000000e+00> : vector<16x256xf32>
    %168 = tpu.matmul %165, %167, %cst_68 {dimension_numbers = #tpu.dot_dimension_numbers<[1], [0], [0], [1], [0, 0, 1, 1], [], []>} : vector<16x128xbf16>, vector<128x256xbf16>, vector<16x256xf32> -> vector<16x256xf32>
    %c0_69 = arith.constant 0 : index
    %c0_70 = arith.constant 0 : index
    %c0_71 = arith.constant 0 : index
    %169 = vector.load %arg12[%c0_69, %c0_70, %c0_71] : memref<2x1x256xf32, #tpu.memory_space<vmem>>, vector<1x1x256xf32>
    %170 = vector.shape_cast %169 : vector<1x1x256xf32> to vector<1x256xf32>
    %171 = vector.broadcast %170 : vector<1x256xf32> to vector<16x256xf32>
    %172 = arith.addf %168, %171 : vector<16x256xf32>
    %cst_72 = arith.constant 5.000000e-01 : f32
    %173 = vector.broadcast %cst_72 : f32 to vector<16x256xf32>
    %174 = arith.mulf %173, %172 : vector<16x256xf32>
    %cst_73 = arith.constant 4.471500e-02 : f32
    %175 = vector.broadcast %cst_73 : f32 to vector<16x256xf32>
    %176 = arith.mulf %175, %172 : vector<16x256xf32>
    %177 = arith.mulf %176, %172 : vector<16x256xf32>
    %178 = arith.mulf %177, %172 : vector<16x256xf32>
    %179 = arith.addf %172, %178 : vector<16x256xf32>
    %cst_74 = arith.constant 0.797884583 : f32
    %180 = vector.broadcast %cst_74 : f32 to vector<16x256xf32>
    %181 = arith.mulf %180, %179 : vector<16x256xf32>
    %182 = math.tanh %181 : vector<16x256xf32>
    %cst_75 = arith.constant 1.000000e+00 : f32
    %183 = vector.broadcast %cst_75 : f32 to vector<16x256xf32>
    %184 = arith.addf %183, %182 : vector<16x256xf32>
    %185 = arith.mulf %174, %184 : vector<16x256xf32>
    %186 = arith.truncf %185 : vector<16x256xf32> to vector<16x256xbf16>
    %c0_76 = arith.constant 0 : index
    %c0_77 = arith.constant 0 : index
    %c0_78 = arith.constant 0 : index
    %187 = vector.load %arg13[%c0_76, %c0_77, %c0_78] : memref<2x256x128xbf16, #tpu.memory_space<vmem>>, vector<1x256x128xbf16>
    %188 = vector.shape_cast %187 : vector<1x256x128xbf16> to vector<256x128xbf16>
    %cst_79 = arith.constant dense<0.000000e+00> : vector<16x128xf32>
    %189 = tpu.matmul %186, %188, %cst_79 {dimension_numbers = #tpu.dot_dimension_numbers<[1], [0], [0], [1], [0, 0, 1, 1], [], []>} : vector<16x256xbf16>, vector<256x128xbf16>, vector<16x128xf32> -> vector<16x128xf32>
    %c0_80 = arith.constant 0 : index
    %c0_81 = arith.constant 0 : index
    %c0_82 = arith.constant 0 : index
    %190 = vector.load %arg14[%c0_80, %c0_81, %c0_82] : memref<2x1x128xf32, #tpu.memory_space<vmem>>, vector<1x1x128xf32>
    %191 = vector.shape_cast %190 : vector<1x1x128xf32> to vector<1x128xf32>
    %192 = vector.broadcast %191 : vector<1x128xf32> to vector<16x128xf32>
    %193 = arith.addf %189, %192 : vector<16x128xf32>
    %194 = arith.addf %193, %164 : vector<16x128xf32>
    %c0_83 = arith.constant 0 : index
    %c0_84 = arith.constant 0 : index
    %c0_85 = arith.constant 0 : index
    %195 = vector.load %arg15[%c0_83, %c0_84, %c0_85] : memref<2x1x128xf32, #tpu.memory_space<vmem>>, vector<1x1x128xf32>
    %196 = vector.shape_cast %195 : vector<1x1x128xf32> to vector<1x128xf32>
    %c0_86 = arith.constant 0 : index
    %c0_87 = arith.constant 0 : index
    %c0_88 = arith.constant 0 : index
    %197 = vector.load %arg16[%c0_86, %c0_87, %c0_88] : memref<2x1x128xf32, #tpu.memory_space<vmem>>, vector<1x1x128xf32>
    %198 = vector.shape_cast %197 : vector<1x1x128xf32> to vector<1x128xf32>
    %cst_89 = arith.constant dense<0.000000e+00> : vector<16xf32>
    %199 = vector.multi_reduction <add>, %194, %cst_89 [1] : vector<16x128xf32> to vector<16xf32>
    %200 = vector.shape_cast %199 : vector<16xf32> to vector<16x1xf32>
    %cst_90 = arith.constant 1.280000e+02 : f32
    %201 = vector.broadcast %cst_90 : f32 to vector<16x1xf32>
    %202 = arith.divf %200, %201 : vector<16x1xf32>
    %203 = vector.broadcast %202 : vector<16x1xf32> to vector<16x128xf32>
    %204 = arith.subf %194, %203 : vector<16x128xf32>
    %205 = arith.mulf %204, %204 : vector<16x128xf32>
    %cst_91 = arith.constant dense<0.000000e+00> : vector<16xf32>
    %206 = vector.multi_reduction <add>, %205, %cst_91 [1] : vector<16x128xf32> to vector<16xf32>
    %207 = vector.shape_cast %206 : vector<16xf32> to vector<16x1xf32>
    %cst_92 = arith.constant 1.280000e+02 : f32
    %208 = vector.broadcast %cst_92 : f32 to vector<16x1xf32>
    %209 = arith.divf %207, %208 : vector<16x1xf32>
    %cst_93 = arith.constant 9.99999996E-13 : f32
    %210 = vector.broadcast %cst_93 : f32 to vector<16x1xf32>
    %211 = arith.addf %209, %210 : vector<16x1xf32>
    %212 = math.rsqrt %211 : vector<16x1xf32>
    %213 = vector.broadcast %212 : vector<16x1xf32> to vector<16x128xf32>
    %214 = arith.mulf %204, %213 : vector<16x128xf32>
    %215 = vector.broadcast %196 : vector<1x128xf32> to vector<16x128xf32>
    %216 = arith.mulf %214, %215 : vector<16x128xf32>
    %217 = vector.broadcast %198 : vector<1x128xf32> to vector<16x128xf32>
    %218 = arith.addf %216, %217 : vector<16x128xf32>
    %219 = arith.truncf %218 : vector<16x128xf32> to vector<16x128xbf16>
    %c1_94 = arith.constant 1 : index
    %c0_95 = arith.constant 0 : index
    %c0_96 = arith.constant 0 : index
    %220 = vector.load %arg5[%c1_94, %c0_95, %c0_96] : memref<2x128x384xbf16, #tpu.memory_space<vmem>>, vector<1x128x384xbf16>
    %221 = vector.shape_cast %220 : vector<1x128x384xbf16> to vector<128x384xbf16>
    %cst_97 = arith.constant dense<0.000000e+00> : vector<16x384xf32>
    %222 = tpu.matmul %219, %221, %cst_97 {dimension_numbers = #tpu.dot_dimension_numbers<[1], [0], [0], [1], [0, 0, 1, 1], [], []>} : vector<16x128xbf16>, vector<128x384xbf16>, vector<16x384xf32> -> vector<16x384xf32>
    %c1_98 = arith.constant 1 : index
    %c0_99 = arith.constant 0 : index
    %c0_100 = arith.constant 0 : index
    %223 = vector.load %arg6[%c1_98, %c0_99, %c0_100] : memref<2x1x384xf32, #tpu.memory_space<vmem>>, vector<1x1x384xf32>
    %224 = vector.shape_cast %223 : vector<1x1x384xf32> to vector<1x384xf32>
    %225 = vector.broadcast %224 : vector<1x384xf32> to vector<16x384xf32>
    %226 = arith.addf %222, %225 : vector<16x384xf32>
    %227 = vector.extract_strided_slice %226 {offsets = [0, 0], sizes = [16, 128], strides = [1, 1]} : vector<16x384xf32> to vector<16x128xf32>
    %228 = vector.extract_strided_slice %226 {offsets = [0, 128], sizes = [16, 128], strides = [1, 1]} : vector<16x384xf32> to vector<16x128xf32>
    %229 = vector.extract_strided_slice %226 {offsets = [0, 256], sizes = [16, 128], strides = [1, 1]} : vector<16x384xf32> to vector<16x128xf32>
    %c1_101 = arith.constant 1 : index
    %c0_102 = arith.constant 0 : index
    %c0_103 = arith.constant 0 : index
    %230 = vector.load %arg7[%c1_101, %c0_102, %c0_103] : memref<2x128x128xbf16, #tpu.memory_space<vmem>>, vector<1x128x128xbf16>
    %231 = vector.shape_cast %230 : vector<1x128x128xbf16> to vector<128x128xbf16>
    %c0_104 = arith.constant 0 : index
    %c0_105 = arith.constant 0 : index
    %c0_106 = arith.constant 0 : index
    %232 = vector.load %arg2[%c0_104, %c0_105, %c0_106] : memref<2x1x8xf32, #tpu.memory_space<vmem>>, vector<1x1x8xf32>
    %233 = vector.shape_cast %232 : vector<1x1x8xf32> to vector<1x8xf32>
    %cst_107 = arith.constant 0.000000e+00 : f32
    %234 = vector.broadcast %cst_107 : f32 to vector<8x128xf32>
    %235 = vector.extract_strided_slice %227 {offsets = [0, 0], sizes = [8, 64], strides = [1, 1]} : vector<16x128xf32> to vector<8x64xf32>
    %236 = vector.extract_strided_slice %228 {offsets = [0, 0], sizes = [8, 64], strides = [1, 1]} : vector<16x128xf32> to vector<8x64xf32>
    %237 = vector.extract_strided_slice %229 {offsets = [0, 0], sizes = [8, 64], strides = [1, 1]} : vector<16x128xf32> to vector<8x64xf32>
    %cst_108 = arith.constant dense<0.000000e+00> : vector<8x8xf32>
    %238 = tpu.matmul %235, %236, %cst_108 {dimension_numbers = #tpu.dot_dimension_numbers<[1], [1], [0], [0], [0, 0, 1, 0], [], []>} : vector<8x64xf32>, vector<8x64xf32>, vector<8x8xf32> -> vector<8x8xf32>
    %cst_109 = arith.constant 1.250000e-01 : f32
    %239 = vector.broadcast %cst_109 : f32 to vector<8x8xf32>
    %240 = arith.mulf %238, %239 : vector<8x8xf32>
    %241 = vector.broadcast %233 : vector<1x8xf32> to vector<8x8xf32>
    %242 = arith.addf %240, %241 : vector<8x8xf32>
    %cst_110 = arith.constant dense<0xFF800000> : vector<8xf32>
    %243 = vector.multi_reduction <maximumf>, %242, %cst_110 [1] : vector<8x8xf32> to vector<8xf32>
    %244 = vector.shape_cast %243 : vector<8xf32> to vector<8x1xf32>
    %245 = vector.broadcast %244 : vector<8x1xf32> to vector<8x8xf32>
    %246 = arith.subf %242, %245 : vector<8x8xf32>
    %247 = math.exp %246 : vector<8x8xf32>
    %cst_111 = arith.constant dense<0.000000e+00> : vector<8xf32>
    %248 = vector.multi_reduction <add>, %247, %cst_111 [1] : vector<8x8xf32> to vector<8xf32>
    %249 = vector.shape_cast %248 : vector<8xf32> to vector<8x1xf32>
    %250 = tpu.reciprocal %249 {approx = true} : vector<8x1xf32> -> vector<8x1xf32>
    %251 = vector.broadcast %250 : vector<8x1xf32> to vector<8x8xf32>
    %252 = arith.mulf %247, %251 : vector<8x8xf32>
    %cst_112 = arith.constant dense<0.000000e+00> : vector<8x64xf32>
    %253 = tpu.matmul %252, %237, %cst_112 {dimension_numbers = #tpu.dot_dimension_numbers<[1], [0], [0], [1], [0, 0, 1, 1], [], []>} : vector<8x8xf32>, vector<8x64xf32>, vector<8x64xf32> -> vector<8x64xf32>
    %254 = arith.truncf %253 : vector<8x64xf32> to vector<8x64xbf16>
    %255 = vector.extract_strided_slice %231 {offsets = [0, 0], sizes = [64, 128], strides = [1, 1]} : vector<128x128xbf16> to vector<64x128xbf16>
    %cst_113 = arith.constant dense<0.000000e+00> : vector<8x128xf32>
    %256 = tpu.matmul %254, %255, %cst_113 {dimension_numbers = #tpu.dot_dimension_numbers<[1], [0], [0], [1], [0, 0, 1, 1], [], []>} : vector<8x64xbf16>, vector<64x128xbf16>, vector<8x128xf32> -> vector<8x128xf32>
    %257 = arith.addf %234, %256 : vector<8x128xf32>
    %258 = vector.extract_strided_slice %227 {offsets = [0, 64], sizes = [8, 64], strides = [1, 1]} : vector<16x128xf32> to vector<8x64xf32>
    %259 = vector.extract_strided_slice %228 {offsets = [0, 64], sizes = [8, 64], strides = [1, 1]} : vector<16x128xf32> to vector<8x64xf32>
    %260 = vector.extract_strided_slice %229 {offsets = [0, 64], sizes = [8, 64], strides = [1, 1]} : vector<16x128xf32> to vector<8x64xf32>
    %cst_114 = arith.constant dense<0.000000e+00> : vector<8x8xf32>
    %261 = tpu.matmul %258, %259, %cst_114 {dimension_numbers = #tpu.dot_dimension_numbers<[1], [1], [0], [0], [0, 0, 1, 0], [], []>} : vector<8x64xf32>, vector<8x64xf32>, vector<8x8xf32> -> vector<8x8xf32>
    %cst_115 = arith.constant 1.250000e-01 : f32
    %262 = vector.broadcast %cst_115 : f32 to vector<8x8xf32>
    %263 = arith.mulf %261, %262 : vector<8x8xf32>
    %264 = vector.broadcast %233 : vector<1x8xf32> to vector<8x8xf32>
    %265 = arith.addf %263, %264 : vector<8x8xf32>
    %cst_116 = arith.constant dense<0xFF800000> : vector<8xf32>
    %266 = vector.multi_reduction <maximumf>, %265, %cst_116 [1] : vector<8x8xf32> to vector<8xf32>
    %267 = vector.shape_cast %266 : vector<8xf32> to vector<8x1xf32>
    %268 = vector.broadcast %267 : vector<8x1xf32> to vector<8x8xf32>
    %269 = arith.subf %265, %268 : vector<8x8xf32>
    %270 = math.exp %269 : vector<8x8xf32>
    %cst_117 = arith.constant dense<0.000000e+00> : vector<8xf32>
    %271 = vector.multi_reduction <add>, %270, %cst_117 [1] : vector<8x8xf32> to vector<8xf32>
    %272 = vector.shape_cast %271 : vector<8xf32> to vector<8x1xf32>
    %273 = tpu.reciprocal %272 {approx = true} : vector<8x1xf32> -> vector<8x1xf32>
    %274 = vector.broadcast %273 : vector<8x1xf32> to vector<8x8xf32>
    %275 = arith.mulf %270, %274 : vector<8x8xf32>
    %cst_118 = arith.constant dense<0.000000e+00> : vector<8x64xf32>
    %276 = tpu.matmul %275, %260, %cst_118 {dimension_numbers = #tpu.dot_dimension_numbers<[1], [0], [0], [1], [0, 0, 1, 1], [], []>} : vector<8x8xf32>, vector<8x64xf32>, vector<8x64xf32> -> vector<8x64xf32>
    %277 = arith.truncf %276 : vector<8x64xf32> to vector<8x64xbf16>
    %278 = vector.extract_strided_slice %231 {offsets = [64, 0], sizes = [64, 128], strides = [1, 1]} : vector<128x128xbf16> to vector<64x128xbf16>
    %cst_119 = arith.constant dense<0.000000e+00> : vector<8x128xf32>
    %279 = tpu.matmul %277, %278, %cst_119 {dimension_numbers = #tpu.dot_dimension_numbers<[1], [0], [0], [1], [0, 0, 1, 1], [], []>} : vector<8x64xbf16>, vector<64x128xbf16>, vector<8x128xf32> -> vector<8x128xf32>
    %280 = arith.addf %257, %279 : vector<8x128xf32>
    %c1_120 = arith.constant 1 : index
    %c0_121 = arith.constant 0 : index
    %c0_122 = arith.constant 0 : index
    %281 = vector.load %arg2[%c1_120, %c0_121, %c0_122] : memref<2x1x8xf32, #tpu.memory_space<vmem>>, vector<1x1x8xf32>
    %282 = vector.shape_cast %281 : vector<1x1x8xf32> to vector<1x8xf32>
    %cst_123 = arith.constant 0.000000e+00 : f32
    %283 = vector.broadcast %cst_123 : f32 to vector<8x128xf32>
    %284 = vector.extract_strided_slice %227 {offsets = [8, 0], sizes = [8, 64], strides = [1, 1]} : vector<16x128xf32> to vector<8x64xf32>
    %285 = vector.extract_strided_slice %228 {offsets = [8, 0], sizes = [8, 64], strides = [1, 1]} : vector<16x128xf32> to vector<8x64xf32>
    %286 = vector.extract_strided_slice %229 {offsets = [8, 0], sizes = [8, 64], strides = [1, 1]} : vector<16x128xf32> to vector<8x64xf32>
    %cst_124 = arith.constant dense<0.000000e+00> : vector<8x8xf32>
    %287 = tpu.matmul %284, %285, %cst_124 {dimension_numbers = #tpu.dot_dimension_numbers<[1], [1], [0], [0], [0, 0, 1, 0], [], []>} : vector<8x64xf32>, vector<8x64xf32>, vector<8x8xf32> -> vector<8x8xf32>
    %cst_125 = arith.constant 1.250000e-01 : f32
    %288 = vector.broadcast %cst_125 : f32 to vector<8x8xf32>
    %289 = arith.mulf %287, %288 : vector<8x8xf32>
    %290 = vector.broadcast %282 : vector<1x8xf32> to vector<8x8xf32>
    %291 = arith.addf %289, %290 : vector<8x8xf32>
    %cst_126 = arith.constant dense<0xFF800000> : vector<8xf32>
    %292 = vector.multi_reduction <maximumf>, %291, %cst_126 [1] : vector<8x8xf32> to vector<8xf32>
    %293 = vector.shape_cast %292 : vector<8xf32> to vector<8x1xf32>
    %294 = vector.broadcast %293 : vector<8x1xf32> to vector<8x8xf32>
    %295 = arith.subf %291, %294 : vector<8x8xf32>
    %296 = math.exp %295 : vector<8x8xf32>
    %cst_127 = arith.constant dense<0.000000e+00> : vector<8xf32>
    %297 = vector.multi_reduction <add>, %296, %cst_127 [1] : vector<8x8xf32> to vector<8xf32>
    %298 = vector.shape_cast %297 : vector<8xf32> to vector<8x1xf32>
    %299 = tpu.reciprocal %298 {approx = true} : vector<8x1xf32> -> vector<8x1xf32>
    %300 = vector.broadcast %299 : vector<8x1xf32> to vector<8x8xf32>
    %301 = arith.mulf %296, %300 : vector<8x8xf32>
    %cst_128 = arith.constant dense<0.000000e+00> : vector<8x64xf32>
    %302 = tpu.matmul %301, %286, %cst_128 {dimension_numbers = #tpu.dot_dimension_numbers<[1], [0], [0], [1], [0, 0, 1, 1], [], []>} : vector<8x8xf32>, vector<8x64xf32>, vector<8x64xf32> -> vector<8x64xf32>
    %303 = arith.truncf %302 : vector<8x64xf32> to vector<8x64xbf16>
    %304 = vector.extract_strided_slice %231 {offsets = [0, 0], sizes = [64, 128], strides = [1, 1]} : vector<128x128xbf16> to vector<64x128xbf16>
    %cst_129 = arith.constant dense<0.000000e+00> : vector<8x128xf32>
    %305 = tpu.matmul %303, %304, %cst_129 {dimension_numbers = #tpu.dot_dimension_numbers<[1], [0], [0], [1], [0, 0, 1, 1], [], []>} : vector<8x64xbf16>, vector<64x128xbf16>, vector<8x128xf32> -> vector<8x128xf32>
    %306 = arith.addf %283, %305 : vector<8x128xf32>
    %307 = vector.extract_strided_slice %227 {offsets = [8, 64], sizes = [8, 64], strides = [1, 1]} : vector<16x128xf32> to vector<8x64xf32>
    %308 = vector.extract_strided_slice %228 {offsets = [8, 64], sizes = [8, 64], strides = [1, 1]} : vector<16x128xf32> to vector<8x64xf32>
    %309 = vector.extract_strided_slice %229 {offsets = [8, 64], sizes = [8, 64], strides = [1, 1]} : vector<16x128xf32> to vector<8x64xf32>
    %cst_130 = arith.constant dense<0.000000e+00> : vector<8x8xf32>
    %310 = tpu.matmul %307, %308, %cst_130 {dimension_numbers = #tpu.dot_dimension_numbers<[1], [1], [0], [0], [0, 0, 1, 0], [], []>} : vector<8x64xf32>, vector<8x64xf32>, vector<8x8xf32> -> vector<8x8xf32>
    %cst_131 = arith.constant 1.250000e-01 : f32
    %311 = vector.broadcast %cst_131 : f32 to vector<8x8xf32>
    %312 = arith.mulf %310, %311 : vector<8x8xf32>
    %313 = vector.broadcast %282 : vector<1x8xf32> to vector<8x8xf32>
    %314 = arith.addf %312, %313 : vector<8x8xf32>
    %cst_132 = arith.constant dense<0xFF800000> : vector<8xf32>
    %315 = vector.multi_reduction <maximumf>, %314, %cst_132 [1] : vector<8x8xf32> to vector<8xf32>
    %316 = vector.shape_cast %315 : vector<8xf32> to vector<8x1xf32>
    %317 = vector.broadcast %316 : vector<8x1xf32> to vector<8x8xf32>
    %318 = arith.subf %314, %317 : vector<8x8xf32>
    %319 = math.exp %318 : vector<8x8xf32>
    %cst_133 = arith.constant dense<0.000000e+00> : vector<8xf32>
    %320 = vector.multi_reduction <add>, %319, %cst_133 [1] : vector<8x8xf32> to vector<8xf32>
    %321 = vector.shape_cast %320 : vector<8xf32> to vector<8x1xf32>
    %322 = tpu.reciprocal %321 {approx = true} : vector<8x1xf32> -> vector<8x1xf32>
    %323 = vector.broadcast %322 : vector<8x1xf32> to vector<8x8xf32>
    %324 = arith.mulf %319, %323 : vector<8x8xf32>
    %cst_134 = arith.constant dense<0.000000e+00> : vector<8x64xf32>
    %325 = tpu.matmul %324, %309, %cst_134 {dimension_numbers = #tpu.dot_dimension_numbers<[1], [0], [0], [1], [0, 0, 1, 1], [], []>} : vector<8x8xf32>, vector<8x64xf32>, vector<8x64xf32> -> vector<8x64xf32>
    %326 = arith.truncf %325 : vector<8x64xf32> to vector<8x64xbf16>
    %327 = vector.extract_strided_slice %231 {offsets = [64, 0], sizes = [64, 128], strides = [1, 1]} : vector<128x128xbf16> to vector<64x128xbf16>
    %cst_135 = arith.constant dense<0.000000e+00> : vector<8x128xf32>
    %328 = tpu.matmul %326, %327, %cst_135 {dimension_numbers = #tpu.dot_dimension_numbers<[1], [0], [0], [1], [0, 0, 1, 1], [], []>} : vector<8x64xbf16>, vector<64x128xbf16>, vector<8x128xf32> -> vector<8x128xf32>
    %329 = arith.addf %306, %328 : vector<8x128xf32>
    %330 = tpu.concatenate %280, %329 in 0 : vector<8x128xf32>, vector<8x128xf32> -> vector<16x128xf32>
    %c1_136 = arith.constant 1 : index
    %c0_137 = arith.constant 0 : index
    %c0_138 = arith.constant 0 : index
    %331 = vector.load %arg8[%c1_136, %c0_137, %c0_138] : memref<2x1x128xf32, #tpu.memory_space<vmem>>, vector<1x1x128xf32>
    %332 = vector.shape_cast %331 : vector<1x1x128xf32> to vector<1x128xf32>
    %333 = vector.broadcast %332 : vector<1x128xf32> to vector<16x128xf32>
    %334 = arith.addf %330, %333 : vector<16x128xf32>
    %335 = arith.addf %334, %218 : vector<16x128xf32>
    %c1_139 = arith.constant 1 : index
    %c0_140 = arith.constant 0 : index
    %c0_141 = arith.constant 0 : index
    %336 = vector.load %arg9[%c1_139, %c0_140, %c0_141] : memref<2x1x128xf32, #tpu.memory_space<vmem>>, vector<1x1x128xf32>
    %337 = vector.shape_cast %336 : vector<1x1x128xf32> to vector<1x128xf32>
    %c1_142 = arith.constant 1 : index
    %c0_143 = arith.constant 0 : index
    %c0_144 = arith.constant 0 : index
    %338 = vector.load %arg10[%c1_142, %c0_143, %c0_144] : memref<2x1x128xf32, #tpu.memory_space<vmem>>, vector<1x1x128xf32>
    %339 = vector.shape_cast %338 : vector<1x1x128xf32> to vector<1x128xf32>
    %cst_145 = arith.constant dense<0.000000e+00> : vector<16xf32>
    %340 = vector.multi_reduction <add>, %335, %cst_145 [1] : vector<16x128xf32> to vector<16xf32>
    %341 = vector.shape_cast %340 : vector<16xf32> to vector<16x1xf32>
    %cst_146 = arith.constant 1.280000e+02 : f32
    %342 = vector.broadcast %cst_146 : f32 to vector<16x1xf32>
    %343 = arith.divf %341, %342 : vector<16x1xf32>
    %344 = vector.broadcast %343 : vector<16x1xf32> to vector<16x128xf32>
    %345 = arith.subf %335, %344 : vector<16x128xf32>
    %346 = arith.mulf %345, %345 : vector<16x128xf32>
    %cst_147 = arith.constant dense<0.000000e+00> : vector<16xf32>
    %347 = vector.multi_reduction <add>, %346, %cst_147 [1] : vector<16x128xf32> to vector<16xf32>
    %348 = vector.shape_cast %347 : vector<16xf32> to vector<16x1xf32>
    %cst_148 = arith.constant 1.280000e+02 : f32
    %349 = vector.broadcast %cst_148 : f32 to vector<16x1xf32>
    %350 = arith.divf %348, %349 : vector<16x1xf32>
    %cst_149 = arith.constant 9.99999996E-13 : f32
    %351 = vector.broadcast %cst_149 : f32 to vector<16x1xf32>
    %352 = arith.addf %350, %351 : vector<16x1xf32>
    %353 = math.rsqrt %352 : vector<16x1xf32>
    %354 = vector.broadcast %353 : vector<16x1xf32> to vector<16x128xf32>
    %355 = arith.mulf %345, %354 : vector<16x128xf32>
    %356 = vector.broadcast %337 : vector<1x128xf32> to vector<16x128xf32>
    %357 = arith.mulf %355, %356 : vector<16x128xf32>
    %358 = vector.broadcast %339 : vector<1x128xf32> to vector<16x128xf32>
    %359 = arith.addf %357, %358 : vector<16x128xf32>
    %360 = arith.truncf %359 : vector<16x128xf32> to vector<16x128xbf16>
    %c1_150 = arith.constant 1 : index
    %c0_151 = arith.constant 0 : index
    %c0_152 = arith.constant 0 : index
    %361 = vector.load %arg11[%c1_150, %c0_151, %c0_152] : memref<2x128x256xbf16, #tpu.memory_space<vmem>>, vector<1x128x256xbf16>
    %362 = vector.shape_cast %361 : vector<1x128x256xbf16> to vector<128x256xbf16>
    %cst_153 = arith.constant dense<0.000000e+00> : vector<16x256xf32>
    %363 = tpu.matmul %360, %362, %cst_153 {dimension_numbers = #tpu.dot_dimension_numbers<[1], [0], [0], [1], [0, 0, 1, 1], [], []>} : vector<16x128xbf16>, vector<128x256xbf16>, vector<16x256xf32> -> vector<16x256xf32>
    %c1_154 = arith.constant 1 : index
    %c0_155 = arith.constant 0 : index
    %c0_156 = arith.constant 0 : index
    %364 = vector.load %arg12[%c1_154, %c0_155, %c0_156] : memref<2x1x256xf32, #tpu.memory_space<vmem>>, vector<1x1x256xf32>
    %365 = vector.shape_cast %364 : vector<1x1x256xf32> to vector<1x256xf32>
    %366 = vector.broadcast %365 : vector<1x256xf32> to vector<16x256xf32>
    %367 = arith.addf %363, %366 : vector<16x256xf32>
    %cst_157 = arith.constant 5.000000e-01 : f32
    %368 = vector.broadcast %cst_157 : f32 to vector<16x256xf32>
    %369 = arith.mulf %368, %367 : vector<16x256xf32>
    %cst_158 = arith.constant 4.471500e-02 : f32
    %370 = vector.broadcast %cst_158 : f32 to vector<16x256xf32>
    %371 = arith.mulf %370, %367 : vector<16x256xf32>
    %372 = arith.mulf %371, %367 : vector<16x256xf32>
    %373 = arith.mulf %372, %367 : vector<16x256xf32>
    %374 = arith.addf %367, %373 : vector<16x256xf32>
    %cst_159 = arith.constant 0.797884583 : f32
    %375 = vector.broadcast %cst_159 : f32 to vector<16x256xf32>
    %376 = arith.mulf %375, %374 : vector<16x256xf32>
    %377 = math.tanh %376 : vector<16x256xf32>
    %cst_160 = arith.constant 1.000000e+00 : f32
    %378 = vector.broadcast %cst_160 : f32 to vector<16x256xf32>
    %379 = arith.addf %378, %377 : vector<16x256xf32>
    %380 = arith.mulf %369, %379 : vector<16x256xf32>
    %381 = arith.truncf %380 : vector<16x256xf32> to vector<16x256xbf16>
    %c1_161 = arith.constant 1 : index
    %c0_162 = arith.constant 0 : index
    %c0_163 = arith.constant 0 : index
    %382 = vector.load %arg13[%c1_161, %c0_162, %c0_163] : memref<2x256x128xbf16, #tpu.memory_space<vmem>>, vector<1x256x128xbf16>
    %383 = vector.shape_cast %382 : vector<1x256x128xbf16> to vector<256x128xbf16>
    %cst_164 = arith.constant dense<0.000000e+00> : vector<16x128xf32>
    %384 = tpu.matmul %381, %383, %cst_164 {dimension_numbers = #tpu.dot_dimension_numbers<[1], [0], [0], [1], [0, 0, 1, 1], [], []>} : vector<16x256xbf16>, vector<256x128xbf16>, vector<16x128xf32> -> vector<16x128xf32>
    %c1_165 = arith.constant 1 : index
    %c0_166 = arith.constant 0 : index
    %c0_167 = arith.constant 0 : index
    %385 = vector.load %arg14[%c1_165, %c0_166, %c0_167] : memref<2x1x128xf32, #tpu.memory_space<vmem>>, vector<1x1x128xf32>
    %386 = vector.shape_cast %385 : vector<1x1x128xf32> to vector<1x128xf32>
    %387 = vector.broadcast %386 : vector<1x128xf32> to vector<16x128xf32>
    %388 = arith.addf %384, %387 : vector<16x128xf32>
    %389 = arith.addf %388, %359 : vector<16x128xf32>
    %c1_168 = arith.constant 1 : index
    %c0_169 = arith.constant 0 : index
    %c0_170 = arith.constant 0 : index
    %390 = vector.load %arg15[%c1_168, %c0_169, %c0_170] : memref<2x1x128xf32, #tpu.memory_space<vmem>>, vector<1x1x128xf32>
    %391 = vector.shape_cast %390 : vector<1x1x128xf32> to vector<1x128xf32>
    %c1_171 = arith.constant 1 : index
    %c0_172 = arith.constant 0 : index
    %c0_173 = arith.constant 0 : index
    %392 = vector.load %arg16[%c1_171, %c0_172, %c0_173] : memref<2x1x128xf32, #tpu.memory_space<vmem>>, vector<1x1x128xf32>
    %393 = vector.shape_cast %392 : vector<1x1x128xf32> to vector<1x128xf32>
    %cst_174 = arith.constant dense<0.000000e+00> : vector<16xf32>
    %394 = vector.multi_reduction <add>, %389, %cst_174 [1] : vector<16x128xf32> to vector<16xf32>
    %395 = vector.shape_cast %394 : vector<16xf32> to vector<16x1xf32>
    %cst_175 = arith.constant 1.280000e+02 : f32
    %396 = vector.broadcast %cst_175 : f32 to vector<16x1xf32>
    %397 = arith.divf %395, %396 : vector<16x1xf32>
    %398 = vector.broadcast %397 : vector<16x1xf32> to vector<16x128xf32>
    %399 = arith.subf %389, %398 : vector<16x128xf32>
    %400 = arith.mulf %399, %399 : vector<16x128xf32>
    %cst_176 = arith.constant dense<0.000000e+00> : vector<16xf32>
    %401 = vector.multi_reduction <add>, %400, %cst_176 [1] : vector<16x128xf32> to vector<16xf32>
    %402 = vector.shape_cast %401 : vector<16xf32> to vector<16x1xf32>
    %cst_177 = arith.constant 1.280000e+02 : f32
    %403 = vector.broadcast %cst_177 : f32 to vector<16x1xf32>
    %404 = arith.divf %402, %403 : vector<16x1xf32>
    %cst_178 = arith.constant 9.99999996E-13 : f32
    %405 = vector.broadcast %cst_178 : f32 to vector<16x1xf32>
    %406 = arith.addf %404, %405 : vector<16x1xf32>
    %407 = math.rsqrt %406 : vector<16x1xf32>
    %408 = vector.broadcast %407 : vector<16x1xf32> to vector<16x128xf32>
    %409 = arith.mulf %399, %408 : vector<16x128xf32>
    %410 = vector.broadcast %391 : vector<1x128xf32> to vector<16x128xf32>
    %411 = arith.mulf %409, %410 : vector<16x128xf32>
    %412 = vector.broadcast %393 : vector<1x128xf32> to vector<16x128xf32>
    %413 = arith.addf %411, %412 : vector<16x128xf32>
    %414 = vector.extract_strided_slice %413 {offsets = [0, 0], sizes = [1, 128], strides = [1, 1]} : vector<16x128xf32> to vector<1x128xf32>
    %415 = vector.extract_strided_slice %413 {offsets = [8, 0], sizes = [1, 128], strides = [1, 1]} : vector<16x128xf32> to vector<1x128xf32>
    %416 = tpu.concatenate %414, %415 in 0 : vector<1x128xf32>, vector<1x128xf32> -> vector<2x128xf32>
    %417 = arith.truncf %416 : vector<2x128xf32> to vector<2x128xbf16>
    %c0_179 = arith.constant 0 : index
    %c0_180 = arith.constant 0 : index
    %418 = vector.load %arg17[%c0_179, %c0_180] : memref<128x128xbf16, #tpu.memory_space<vmem>>, vector<128x128xbf16>
    %cst_181 = arith.constant dense<0.000000e+00> : vector<2x128xf32>
    %419 = tpu.matmul %417, %418, %cst_181 {dimension_numbers = #tpu.dot_dimension_numbers<[1], [0], [0], [1], [0, 0, 1, 1], [], []>} : vector<2x128xbf16>, vector<128x128xbf16>, vector<2x128xf32> -> vector<2x128xf32>
    %c0_182 = arith.constant 0 : index
    %c0_183 = arith.constant 0 : index
    %420 = vector.load %arg18[%c0_182, %c0_183] : memref<1x128xf32, #tpu.memory_space<vmem>>, vector<1x128xf32>
    %421 = vector.broadcast %420 : vector<1x128xf32> to vector<2x128xf32>
    %422 = arith.addf %419, %421 : vector<2x128xf32>
    %423 = math.tanh %422 : vector<2x128xf32>
    %c0_184 = arith.constant 0 : index
    %c0_185 = arith.constant 0 : index
    %424 = vector.load %arg19[%c0_184, %c0_185] : memref<1x128xf32, #tpu.memory_space<vmem>>, vector<1x128xf32>
    %425 = vector.broadcast %424 : vector<1x128xf32> to vector<2x128xf32>
    %426 = arith.mulf %423, %425 : vector<2x128xf32>
    %cst_186 = arith.constant dense<0.000000e+00> : vector<2xf32>
    %427 = vector.multi_reduction <add>, %426, %cst_186 [1] : vector<2x128xf32> to vector<2xf32>
    %428 = vector.shape_cast %427 : vector<2xf32> to vector<2x1xf32>
    %c0_187 = arith.constant 0 : index
    %c0_188 = arith.constant 0 : index
    %429 = vector.load %arg20[%c0_187, %c0_188] : memref<1x1xf32, #tpu.memory_space<vmem>>, vector<1x1xf32>
    %430 = vector.broadcast %429 : vector<1x1xf32> to vector<2x1xf32>
    %431 = arith.addf %428, %430 : vector<2x1xf32>
    %c0_189 = arith.constant 0 : index
    %c0_190 = arith.constant 0 : index
    %432 = vector.load %arg21[%c0_189, %c0_190] : memref<2x1xf32, #tpu.memory_space<vmem>>, vector<2x1xf32>
    tpu.vector_store %arg21[%c0_189, %c0_190], %431 {strides = array<i32>} : memref<2x1xf32, #tpu.memory_space<vmem>>, vector<2x1xf32>,
    return
  }
  func.func @transform_0(%arg0: i32) -> (i32, i32, i32) {
    %c0_i32 = arith.constant 0 : i32
    %c0_i32_0 = arith.constant 0 : i32
    %c0_i32_1 = arith.constant 0 : i32
    %c0_i32_2 = arith.constant 0 : i32
    return %c0_i32, %c0_i32_0, %c0_i32_1 : i32, i32, i32
  }
  func.func @transform_1(%arg0: i32) -> (i32, i32, i32) {
    %c0_i32 = arith.constant 0 : i32
    %c0_i32_0 = arith.constant 0 : i32
    %c0_i32_1 = arith.constant 0 : i32
    %c0_i32_2 = arith.constant 0 : i32
    return %c0_i32, %c0_i32_0, %c0_i32_1 : i32, i32, i32
  }
  func.func @transform_2(%arg0: i32) -> (i32, i32) {
    %c0_i32 = arith.constant 0 : i32
    %c0_i32_0 = arith.constant 0 : i32
    %c0_i32_1 = arith.constant 0 : i32
    return %c0_i32, %c0_i32_0 : i32, i32
  }
  func.func @transform_3(%arg0: i32) -> (i32, i32) {
    %c0_i32 = arith.constant 0 : i32
    %c0_i32_0 = arith.constant 0 : i32
    %c0_i32_1 = arith.constant 0 : i32
    return %c0_i32, %c0_i32_0 : i32, i32
  }
  func.func @transform_4(%arg0: i32) -> (i32, i32, i32) {
    %c0_i32 = arith.constant 0 : i32
    %c0_i32_0 = arith.constant 0 : i32
    %c0_i32_1 = arith.constant 0 : i32
    %c0_i32_2 = arith.constant 0 : i32
    return %c0_i32, %c0_i32_0, %c0_i32_1 : i32, i32, i32
  }
  func.func @transform_5(%arg0: i32) -> (i32, i32, i32) {
    %c0_i32 = arith.constant 0 : i32
    %c0_i32_0 = arith.constant 0 : i32
    %c0_i32_1 = arith.constant 0 : i32
    %c0_i32_2 = arith.constant 0 : i32
    return %c0_i32, %c0_i32_0, %c0_i32_1 : i32, i32, i32
  }
  func.func @transform_6(%arg0: i32) -> (i32, i32, i32) {
    %c0_i32 = arith.constant 0 : i32
    %c0_i32_0 = arith.constant 0 : i32
    %c0_i32_1 = arith.constant 0 : i32
    %c0_i32_2 = arith.constant 0 : i32
    return %c0_i32, %c0_i32_0, %c0_i32_1 : i32, i32, i32
  }
  func.func @transform_7(%arg0: i32) -> (i32, i32, i32) {
    %c0_i32 = arith.constant 0 : i32
    %c0_i32_0 = arith.constant 0 : i32
    %c0_i32_1 = arith.constant 0 : i32
    %c0_i32_2 = arith.constant 0 : i32
    return %c0_i32, %c0_i32_0, %c0_i32_1 : i32, i32, i32
  }
  func.func @transform_8(%arg0: i32) -> (i32, i32, i32) {
    %c0_i32 = arith.constant 0 : i32
    %c0_i32_0 = arith.constant 0 : i32
    %c0_i32_1 = arith.constant 0 : i32
    %c0_i32_2 = arith.constant 0 : i32
    return %c0_i32, %c0_i32_0, %c0_i32_1 : i32, i32, i32
  }
  func.func @transform_9(%arg0: i32) -> (i32, i32, i32) {
    %c0_i32 = arith.constant 0 : i32
    %c0_i32_0 = arith.constant 0 : i32
    %c0_i32_1 = arith.constant 0 : i32
    %c0_i32_2 = arith.constant 0 : i32
    return %c0_i32, %c0_i32_0, %c0_i32_1 : i32, i32, i32
  }
  func.func @transform_10(%arg0: i32) -> (i32, i32, i32) {
    %c0_i32 = arith.constant 0 : i32
    %c0_i32_0 = arith.constant 0 : i32
    %c0_i32_1 = arith.constant 0 : i32
    %c0_i32_2 = arith.constant 0 : i32
    return %c0_i32, %c0_i32_0, %c0_i32_1 : i32, i32, i32
  }
  func.func @transform_11(%arg0: i32) -> (i32, i32, i32) {
    %c0_i32 = arith.constant 0 : i32
    %c0_i32_0 = arith.constant 0 : i32
    %c0_i32_1 = arith.constant 0 : i32
    %c0_i32_2 = arith.constant 0 : i32
    return %c0_i32, %c0_i32_0, %c0_i32_1 : i32, i32, i32
  }
  func.func @transform_12(%arg0: i32) -> (i32, i32, i32) {
    %c0_i32 = arith.constant 0 : i32
    %c0_i32_0 = arith.constant 0 : i32
    %c0_i32_1 = arith.constant 0 : i32
    %c0_i32_2 = arith.constant 0 : i32
    return %c0_i32, %c0_i32_0, %c0_i32_1 : i32, i32, i32
  }
  func.func @transform_13(%arg0: i32) -> (i32, i32, i32) {
    %c0_i32 = arith.constant 0 : i32
    %c0_i32_0 = arith.constant 0 : i32
    %c0_i32_1 = arith.constant 0 : i32
    %c0_i32_2 = arith.constant 0 : i32
    return %c0_i32, %c0_i32_0, %c0_i32_1 : i32, i32, i32
  }
  func.func @transform_14(%arg0: i32) -> (i32, i32, i32) {
    %c0_i32 = arith.constant 0 : i32
    %c0_i32_0 = arith.constant 0 : i32
    %c0_i32_1 = arith.constant 0 : i32
    %c0_i32_2 = arith.constant 0 : i32
    return %c0_i32, %c0_i32_0, %c0_i32_1 : i32, i32, i32
  }
  func.func @transform_15(%arg0: i32) -> (i32, i32, i32) {
    %c0_i32 = arith.constant 0 : i32
    %c0_i32_0 = arith.constant 0 : i32
    %c0_i32_1 = arith.constant 0 : i32
    %c0_i32_2 = arith.constant 0 : i32
    return %c0_i32, %c0_i32_0, %c0_i32_1 : i32, i32, i32
  }
  func.func @transform_16(%arg0: i32) -> (i32, i32) {
    %c0_i32 = arith.constant 0 : i32
    %c0_i32_0 = arith.constant 0 : i32
    %c0_i32_1 = arith.constant 0 : i32
    return %c0_i32, %c0_i32_0 : i32, i32
  }
  func.func @transform_17(%arg0: i32) -> (i32, i32) {
    %c0_i32 = arith.constant 0 : i32
    %c0_i32_0 = arith.constant 0 : i32
    %c0_i32_1 = arith.constant 0 : i32
    return %c0_i32, %c0_i32_0 : i32, i32
  }
  func.func @transform_18(%arg0: i32) -> (i32, i32) {
    %c0_i32 = arith.constant 0 : i32
    %c0_i32_0 = arith.constant 0 : i32
    %c0_i32_1 = arith.constant 0 : i32
    return %c0_i32, %c0_i32_0 : i32, i32
  }
  func.func @transform_19(%arg0: i32) -> (i32, i32) {
    %c0_i32 = arith.constant 0 : i32
    %c0_i32_0 = arith.constant 0 : i32
    %c0_i32_1 = arith.constant 0 : i32
    return %c0_i32, %c0_i32_0 : i32, i32
  }
  func.func @transform_20(%arg0: i32) -> (i32, i32) {
    %c0_i32 = arith.constant 0 : i32
    %c0_i32_0 = arith.constant 0 : i32
    %c0_i32_1 = arith.constant 0 : i32
    return %c0_i32, %c0_i32_0 : i32, i32
  }
}

</mosaic_0001>

<bundles_post_ra>
// kernel: tpu_custom_call.1
= control target key start
LH: loop header
LB: loop body
LE: loop exit
PB: predicated region body
PF: predicated region fallthrough
CT: control target
= control target key end

     0   :  { %s5673_s0 = inlined_call_operand.hbm [shape: f32[2,8,128], index: 0, kind: input, shape index: {}]   ;;  %s5674_s1 = inlined_call_operand.hbm [shape: f32[2,1,8], index: 1, kind: input, shape index: {}]   ;;  %s5675_s2 = inlined_call_operand.hbm [shape: f32[1,128], index: 2, kind: input, shape index: {}]   ;;  %s5676_s3 = inlined_call_operand.hbm [shape: f32[1,128], index: 3, kind: input, shape index: {}]   ;;  %s5677_s4 = inlined_call_operand.hbm [shape: bf16[2,128,384], index: 4, kind: input, shape index: {}]   ;;  %s5678_s5 = inlined_call_operand.hbm [shape: f32[2,1,384], index: 5, kind: input, shape index: {}]   ;;  %s5679_s6 = inlined_call_operand.hbm [shape: bf16[2,128,128], index: 6, kind: input, shape index: {}]   ;;  %s5680_s7 = inlined_call_operand.hbm [shape: f32[2,1,128], index: 7, kind: input, shape index: {}]   ;;  %s5681_s8 = inlined_call_operand.hbm [shape: f32[2,1,128], index: 8, kind: input, shape index: {}]   ;;  %s5682_s9 = inlined_call_operand.hbm [shape: f32[2,1,128], index: 9, kind: input, shape index: {}]   ;;  %s5683_s10 = inlined_call_operand.hbm [shape: bf16[2,128,256], index: 10, kind: input, shape index: {}]   ;;  %s5684_s11 = inlined_call_operand.hbm [shape: f32[2,1,256], index: 11, kind: input, shape index: {}]   ;;  %s5685_s12 = inlined_call_operand.hbm [shape: bf16[2,256,128], index: 12, kind: input, shape index: {}]   ;;  %s5686_s13 = inlined_call_operand.hbm [shape: f32[2,1,128], index: 13, kind: input, shape index: {}]   ;;  %s5687_s14 = inlined_call_operand.hbm [shape: f32[2,1,128], index: 14, kind: input, shape index: {}]   ;;  %s5688_s15 = inlined_call_operand.hbm [shape: f32[2,1,128], index: 15, kind: input, shape index: {}]   ;;  %s5689_s16 = inlined_call_operand.vmem [shape: bf16[128,128], index: 16, kind: input, shape index: {}]   ;;  %s5690_s17 = inlined_call_operand.vmem [shape: f32[1,128], index: 17, kind: input, shape index: {}]   ;;  %s5691_s18 = inlined_call_operand.vmem [shape: f32[1,128], index: 18, kind: input, shape index: {}]   ;;  %s5692_s19 = inlined_call_operand.<no memory space> [shape: f32[1,1], index: 19, kind: input, shape index: {}]   ;;  %s5693_s20 = inlined_call_operand.vmem [shape: f32[2,1], index: 20, kind: output, shape index: {}]  }
   0x1   :  { %5699 = sst [smem:[#allocation37_spill]] %s5673_s0  ;;  %v25_v0 = vstv %s5692_s19 }
   0x2   :  { %5700 = sst [smem:[#allocation38_spill]] %s5674_s1  ;;  %26 = vst [vmem:[#allocation2] sm:$0x1] %v25_v0 }
   0x3   :  { %5701 = sst [smem:[#allocation39_spill]] %s5675_s2 }
   0x4   :  { %5702 = sst [smem:[#allocation40_spill]] %s5676_s3 }
   0x5   :  { %5703 = sst [smem:[#allocation41_spill]] %s5677_s4 }
   0x6   :  { %5704 = sst [smem:[#allocation42_spill]] %s5691_s18 }
   0x7   :  { %5705 = sst [smem:[#allocation43_spill]] %s5693_s20 }
   0x8   :  { %27 = vsyncpa [#allocation4], 0 }
   0x9   :  { %28 = vsyncpa [#allocation6], 0 }
   0xa   :  { %29 = vsyncpa [#allocation9], 0 }
   0xb   :  { %30 = vsyncpa [#allocation12], 0 }
   0xc   :  { %31 = vsyncpa [#allocation15], 0 }
   0xd   :  { %32 = vsyncpa [#allocation18], 0 }
   0xe   :  { %33 = vsyncpa [#allocation21], 0 }
   0xf   :  { %34 = vsyncpa [#allocation24], 0 }
  0x10   :  { %35 = vsyncpa [#allocation27], 0  ;;  %s4954_s23 = smov [#allocation5]   ;;  %s5706_s3 = sld [smem:[#allocation38_spill]] }
  0x11   :  { %s53_s24 = sshll.u32 %s4954_s23, 4  ;;  %s54_s24 = int_to_ptr.vmem [resolvable:$true] %s53_s24 }
  0x16   :  { %s4584_s26 = scalar_lea.hbm %s5706_s3, 32 }
  0x17   :  { %p4585_p0 = scmp.ne.s32.totalorder %s5706_s3, %s4584_s26  ;;  %p4588_p1 = scmp.lt.u32.totalorder %s4584_s26, %s5706_s3 }
  0x19   :  { %p4590_p2 = pnand %p4588_p1, %p4585_p0 }
  0x1b   :  { %4593 = shalt.err (!%p4590_p2)
}
  0x1c   :  { %s4594_s29 = scalar_lea.vmem %s54_s24, 32  ;;  %p4599_p4 = scmp.lt.s32.totalorder %s54_s24, %s54_s24 }
  0x1d   :  { %p4595_p3 = scmp.ne.s32.totalorder %s54_s24, %s4594_s29  ;;  %p4600_p5 = scmp.lt.s32.totalorder %s4594_s29, %s4594_s29 }
  0x1f   :  { %p4601_p6 = por %p4600_p5, %p4599_p4 }
  0x21   :  { %p4602_p7 = pnand %p4601_p6, %p4595_p3 }
  0x23   :  { %4605 = shalt.err (!%p4602_p7)
}
  0x24   :  { %s4955_s30 = smov 16   ;;  %s4956_s0 = smov 1  }
  0x25   :  { %59 = dma.hbm_to_vmem [thread:$0]  %s5706_s3, 32, %s54_s24, [#allocation6], %s4955_s30, %s4955_s30, %s4956_s0  }
  0x26   :  { %s4957_s22 = smov [#allocation8]   ;;  %s4958_s2 = smov [#allocation11]  }
  0x27   :  { %s76_s23 = sshll.u32 %s4957_s22, 4  ;;  %s97_s25 = sshll.u32 %s4958_s2, 4  ;;  %s77_s23 = int_to_ptr.vmem [resolvable:$true] %s76_s23  ;;  %s98_s25 = int_to_ptr.vmem [resolvable:$true] %s97_s25 }
  0x28   :  { %s5707_s28 = sld [smem:[#allocation40_spill]] }
  0x2e   :  { %s4606_s19 = scalar_lea.hbm %s5707_s28, 16 }
  0x2f   :  { %p4607_p8 = scmp.ne.s32.totalorder %s5707_s28, %s4606_s19  ;;  %p4610_p9 = scmp.lt.u32.totalorder %s4606_s19, %s5707_s28 }
  0x31   :  { %p4612_p10 = pnand %p4610_p9, %p4607_p8 }
  0x33   :  { %4615 = shalt.err (!%p4612_p10)
}
  0x34   :  { %s4616_s24 = scalar_lea.vmem %s77_s23, 16  ;;  %s4620_s3 = scalar_lea.vmem %s77_s23, 32 }
  0x35   :  { %p4617_p11 = scmp.ne.s32.totalorder %s77_s23, %s4616_s24  ;;  %p4621_p12 = scmp.lt.s32.totalorder %s77_s23, %s77_s23 }
  0x36   :  { %p4622_p13 = scmp.lt.s32.totalorder %s4620_s3, %s4616_s24 }
  0x38   :  { %p4623_p0 = por %p4622_p13, %p4621_p12 }
  0x3a   :  { %p4624_p1 = pnand %p4623_p0, %p4617_p11 }
  0x3c   :  { %4627 = shalt.err (!%p4624_p1)
}
  0x3d   :  { %79 = dma.hbm_to_vmem [thread:$0]  %s5707_s28, 16, %s77_s23, [#allocation9]  }
  0x3e   :  { %s4628_s18 = scalar_lea.hbm %s5678_s5, 96 }
  0x3f   :  { %p4629_p2 = scmp.ne.s32.totalorder %s5678_s5, %s4628_s18  ;;  %p4632_p3 = scmp.lt.u32.totalorder %s4628_s18, %s5678_s5 }
  0x41   :  { %p4634_p4 = pnand %p4632_p3, %p4629_p2 }
  0x43   :  { %4637 = shalt.err (!%p4634_p4)
}
  0x44   :  { %s4638_s4 = scalar_lea.vmem %s98_s25, 96  ;;  %p4643_p6 = scmp.lt.s32.totalorder %s98_s25, %s98_s25 }
  0x45   :  { %p4639_p5 = scmp.ne.s32.totalorder %s98_s25, %s4638_s4  ;;  %p4644_p7 = scmp.lt.s32.totalorder %s4638_s4, %s4638_s4 }
  0x47   :  { %p4645_p8 = por %p4644_p7, %p4643_p6 }
  0x49   :  { %p4646_p9 = pnand %p4645_p8, %p4639_p5 }
  0x4b   :  { %4649 = shalt.err (!%p4646_p9)
}
  0x4c   :  { %s4959_s23 = smov 48   ;;  %s4960_s28 = smov 3  }
  0x4d   :  { %103 = dma.hbm_to_vmem [thread:$0]  %s5678_s5, 96, %s98_s25, [#allocation12], %s4959_s23, %s4959_s23, %s4960_s28  }
  0x4e   :  { %s4961_s3 = smov [#allocation14]   ;;  %s4962_s1 = smov [#allocation17]  }
  0x4f   :  { %s121_s21 = sshll.u32 %s4961_s3, 4  ;;  %s145_s22 = sshll.u32 %s4962_s1, 4  ;;  %s122_s21 = int_to_ptr.vmem [resolvable:$true] %s121_s21  ;;  %s146_s22 = int_to_ptr.vmem [resolvable:$true] %s145_s22 }
  0x50   :  { %s4650_s20 = scalar_lea.hbm %s5680_s7, 32 }
  0x51   :  { %p4651_p10 = scmp.ne.s32.totalorder %s5680_s7, %s4650_s20  ;;  %p4654_p11 = scmp.lt.u32.totalorder %s4650_s20, %s5680_s7 }
  0x53   :  { %p4656_p12 = pnand %p4654_p11, %p4651_p10 }
  0x55   :  { %4659 = shalt.err (!%p4656_p12)
}
  0x56   :  { %s4660_s5 = scalar_lea.vmem %s122_s21, 32  ;;  %p4665_p0 = scmp.lt.s32.totalorder %s122_s21, %s122_s21 }
  0x57   :  { %p4661_p13 = scmp.ne.s32.totalorder %s122_s21, %s4660_s5  ;;  %p4666_p1 = scmp.lt.s32.totalorder %s4660_s5, %s4660_s5 }
  0x59   :  { %p4667_p2 = por %p4666_p1, %p4665_p0 }
  0x5b   :  { %p4668_p3 = pnand %p4667_p2, %p4661_p13 }
  0x5d   :  { %4671 = shalt.err (!%p4668_p3)
}
  0x5e   :  { %127 = dma.hbm_to_vmem [thread:$0]  %s5680_s7, 32, %s122_s21, [#allocation15], %s4955_s30, %s4955_s30, %s4956_s0  }
  0x5f   :  { %s4672_s24 = scalar_lea.hbm %s5682_s9, 32 }
  0x60   :  { %p4673_p4 = scmp.ne.s32.totalorder %s5682_s9, %s4672_s24  ;;  %p4676_p5 = scmp.lt.u32.totalorder %s4672_s24, %s5682_s9 }
  0x62   :  { %p4678_p6 = pnand %p4676_p5, %p4673_p4 }
  0x64   :  { %4681 = shalt.err (!%p4678_p6)
}
  0x65   :  { %s4682_s20 = scalar_lea.vmem %s146_s22, 32  ;;  %p4687_p8 = scmp.lt.s32.totalorder %s146_s22, %s146_s22 }
  0x66   :  { %p4683_p7 = scmp.ne.s32.totalorder %s146_s22, %s4682_s20  ;;  %p4688_p9 = scmp.lt.s32.totalorder %s4682_s20, %s4682_s20 }
  0x68   :  { %p4689_p10 = por %p4688_p9, %p4687_p8 }
  0x6a   :  { %p4690_p11 = pnand %p4689_p10, %p4683_p7 }
  0x6c   :  { %4693 = shalt.err (!%p4690_p11)
}
  0x6d   :  { %151 = dma.hbm_to_vmem [thread:$0]  %s5682_s9, 32, %s146_s22, [#allocation18], %s4955_s30, %s4955_s30, %s4956_s0  }
  0x6e   :  { %s4963_s26 = smov [#allocation20]   ;;  %s4694_s5 = scalar_lea.hbm %s5684_s11, 64 }
  0x6f   :  { %s169_s27 = sshll.u32 %s4963_s26, 4  ;;  %p4695_p12 = scmp.ne.s32.totalorder %s5684_s11, %s4694_s5  ;;  %s170_s27 = int_to_ptr.vmem [resolvable:$true] %s169_s27 }
  0x70   :  { %p4698_p13 = scmp.lt.u32.totalorder %s4694_s5, %s5684_s11 }
  0x72   :  { %p4700_p0 = pnand %p4698_p13, %p4695_p12 }
  0x74   :  { %4703 = shalt.err (!%p4700_p0)
}
  0x75   :  { %s4704_s24 = scalar_lea.vmem %s170_s27, 64  ;;  %p4709_p2 = scmp.lt.s32.totalorder %s170_s27, %s170_s27 }
  0x76   :  { %p4705_p1 = scmp.ne.s32.totalorder %s170_s27, %s4704_s24  ;;  %p4710_p3 = scmp.lt.s32.totalorder %s4704_s24, %s4704_s24 }
  0x78   :  { %p4711_p4 = por %p4710_p3, %p4709_p2 }
  0x7a   :  { %p4712_p5 = pnand %p4711_p4, %p4705_p1 }
  0x7c   :  { %4715 = shalt.err (!%p4712_p5)
}
  0x7d   :  { %s4964_s9 = smov 32   ;;  %s4965_s22 = smov 2  }
  0x7e   :  { %175 = dma.hbm_to_vmem [thread:$0]  %s5684_s11, 64, %s170_s27, [#allocation21], %s4964_s9, %s4964_s9, %s4965_s22  }
  0x7f   :  { %s4966_s2 = smov [#allocation23]   ;;  %s4967_s20 = smov [#allocation3]  }
  0x80   :  { %s193_s18 = sshll.u32 %s4966_s2, 4  ;;  %s41_s7 = sshll.u32 %s4967_s20, 4  ;;  %s194_s18 = int_to_ptr.vmem [resolvable:$true] %s193_s18  ;;  %s5174_s7 = int_to_ptr.vmem [resolvable:$true] %s41_s7 }
  0x81   :  { %s4716_s19 = scalar_lea.hbm %s5686_s13, 32 }
  0x82   :  { %p4717_p6 = scmp.ne.s32.totalorder %s5686_s13, %s4716_s19  ;;  %p4720_p7 = scmp.lt.u32.totalorder %s4716_s19, %s5686_s13 }
  0x84   :  { %p4722_p8 = pnand %p4720_p7, %p4717_p6 }
  0x86   :  { %4725 = shalt.err (!%p4722_p8)
}
  0x87   :  { %s4726_s11 = scalar_lea.vmem %s194_s18, 32  ;;  %p4731_p10 = scmp.lt.s32.totalorder %s194_s18, %s194_s18 }
  0x88   :  { %p4727_p9 = scmp.ne.s32.totalorder %s194_s18, %s4726_s11  ;;  %p4732_p11 = scmp.lt.s32.totalorder %s4726_s11, %s4726_s11 }
  0x8a   :  { %p4733_p12 = por %p4732_p11, %p4731_p10 }
  0x8c   :  { %p4734_p13 = pnand %p4733_p12, %p4727_p9 }
  0x8e   :  { %4737 = shalt.err (!%p4734_p13)
}
  0x8f   :  { %199 = dma.hbm_to_vmem [thread:$0]  %s5686_s13, 32, %s194_s18, [#allocation24], %s4955_s30, %s4955_s30, %s4956_s0  }
  0x90   :  { %s5708_s9 = sld [smem:[#allocation37_spill]] }
  0x96   :  { %s4738_s22 = scalar_lea.hbm %s5708_s9, 256 }
  0x97   :  { %p4739_p0 = scmp.ne.s32.totalorder %s5708_s9, %s4738_s22  ;;  %p4742_p1 = scmp.lt.u32.totalorder %s4738_s22, %s5708_s9 }
  0x99   :  { %p4744_p2 = pnand %p4742_p1, %p4739_p0 }
  0x9b   :  { %4747 = shalt.err (!%p4744_p2)
}
  0x9c   :  { %s4748_s21 = scalar_lea.vmem %s5174_s7, 256  ;;  %p4753_p4 = scmp.lt.s32.totalorder %s5174_s7, %s5174_s7 }
  0x9d   :  { %p4749_p3 = scmp.ne.s32.totalorder %s5174_s7, %s4748_s21  ;;  %p4754_p5 = scmp.lt.s32.totalorder %s4748_s21, %s4748_s21 }
  0x9f   :  { %p4755_p6 = por %p4754_p5, %p4753_p4 }
  0xa1   :  { %p4756_p7 = pnand %p4755_p6, %p4749_p3 }
  0xa3   :  { %4759 = shalt.err (!%p4756_p7)
}
  0xa4   :  { %s4968_s13 = smov 128   ;;  %s4969_s18 = smov 8  }
  0xa5   :  { %47 = dma.hbm_to_vmem [thread:$0]  %s5708_s9, 256, %s5174_s7, [#allocation4], %s4968_s13, %s4968_s13, %s4969_s18  }
  0xa6   :  { %s4970_s4 = smov [#allocation7]   ;;  %s4971_s25 = smov [#allocation10]  }
  0xa7   :  { %s66_s5 = sshll.u32 %s4970_s4, 4  ;;  %s85_s23 = sshll.u32 %s4971_s25, 4  ;;  %s67_s5 = int_to_ptr.vmem [resolvable:$true] %s66_s5  ;;  %s5211_s23 = int_to_ptr.vmem [resolvable:$true] %s85_s23 }
  0xa8   :  { %s5709_s28 = sld [smem:[#allocation39_spill]] }
  0xae   :  { %s4760_s29 = scalar_lea.hbm %s5709_s28, 16 }
  0xaf   :  { %p4761_p8 = scmp.ne.s32.totalorder %s5709_s28, %s4760_s29  ;;  %p4764_p9 = scmp.lt.u32.totalorder %s4760_s29, %s5709_s28 }
  0xb1   :  { %p4766_p10 = pnand %p4764_p9, %p4761_p8 }
  0xb3   :  { %4769 = shalt.err (!%p4766_p10)
}
  0xb4   :  { %s4770_s7 = scalar_lea.vmem %s67_s5, 16  ;;  %s4774_s9 = scalar_lea.vmem %s67_s5, 32 }
  0xb5   :  { %p4771_p11 = scmp.ne.s32.totalorder %s67_s5, %s4770_s7  ;;  %p4775_p12 = scmp.lt.s32.totalorder %s67_s5, %s67_s5 }
  0xb6   :  { %p4776_p13 = scmp.lt.s32.totalorder %s4774_s9, %s4770_s7 }
  0xb8   :  { %p4777_p0 = por %p4776_p13, %p4775_p12 }
  0xba   :  { %p4778_p1 = pnand %p4777_p0, %p4771_p11 }
  0xbc   :  { %4781 = shalt.err (!%p4778_p1)
}
  0xbd   :  { %69 = dma.hbm_to_vmem [thread:$0]  %s5709_s28, 16, %s67_s5, [#allocation6]  }
  0xbe   :  { %s5710_s19 = sld [smem:[#allocation41_spill]] }
  0xc4   :  { %s4782_s4 = scalar_lea.hbm %s5710_s19, 6144 }
  0xc5   :  { %p4783_p2 = scmp.ne.s32.totalorder %s5710_s19, %s4782_s4  ;;  %p4786_p3 = scmp.lt.u32.totalorder %s4782_s4, %s5710_s19 }
  0xc7   :  { %p4788_p4 = pnand %p4786_p3, %p4783_p2 }
  0xc9   :  { %4791 = shalt.err (!%p4788_p4)
}
  0xca   :  { %s4792_s24 = scalar_lea.vmem %s5211_s23, 6144  ;;  %p4797_p6 = scmp.lt.s32.totalorder %s5211_s23, %s5211_s23 }
  0xcb   :  { %p4793_p5 = scmp.ne.s32.totalorder %s5211_s23, %s4792_s24  ;;  %p4798_p7 = scmp.lt.s32.totalorder %s4792_s24, %s4792_s24 }
  0xcd   :  { %p4799_p8 = por %p4798_p7, %p4797_p6 }
  0xcf   :  { %p4800_p9 = pnand %p4799_p8, %p4793_p5 }
  0xd1   :  { %4803 = shalt.err (!%p4800_p9)
}
  0xd2   :  { %s4972_s5 = smov 192   ;;  %s4973_s28 = smov 12  }
  0xd3   :  { %91 = dma.hbm_to_vmem [thread:$0]  %s5710_s19, 6144, %s5211_s23, [#allocation9], %s4972_s5, %s4972_s5, %s4973_s28  }
  0xd4   :  { %s4974_s1 = smov [#allocation13]   ;;  %s4804_s20 = scalar_lea.hbm %s5679_s6, 2048 }
  0xd5   :  { %s109_s7 = sshll.u32 %s4974_s1, 4  ;;  %p4805_p10 = scmp.ne.s32.totalorder %s5679_s6, %s4804_s20  ;;  %s110_s7 = int_to_ptr.vmem [resolvable:$true] %s109_s7 }
  0xd6   :  { %p4808_p11 = scmp.lt.u32.totalorder %s4804_s20, %s5679_s6 }
  0xd8   :  { %p4810_p12 = pnand %p4808_p11, %p4805_p10 }
  0xda   :  { %4813 = shalt.err (!%p4810_p12)
}
  0xdb   :  { %s4814_s11 = scalar_lea.vmem %s110_s7, 2048  ;;  %p4819_p0 = scmp.lt.s32.totalorder %s110_s7, %s110_s7 }
  0xdc   :  { %p4815_p13 = scmp.ne.s32.totalorder %s110_s7, %s4814_s11  ;;  %p4820_p1 = scmp.lt.s32.totalorder %s4814_s11, %s4814_s11 }
  0xde   :  { %p4821_p2 = por %p4820_p1, %p4819_p0 }
  0xe0   :  { %p4822_p3 = pnand %p4821_p2, %p4815_p13 }
  0xe2   :  { %4825 = shalt.err (!%p4822_p3)
}
  0xe3   :  { %s4975_s23 = smov 64   ;;  %s4976_s19 = smov 4  }
  0xe4   :  { %115 = dma.hbm_to_vmem [thread:$0]  %s5679_s6, 2048, %s110_s7, [#allocation12], %s4975_s23, %s4975_s23, %s4976_s19  }
  0xe5   :  { %s4977_s24 = smov [#allocation16]   ;;  %s4978_s28 = smov [#allocation19]  }
  0xe6   :  { %s133_s5 = sshll.u32 %s4977_s24, 4  ;;  %s157_s22 = sshll.u32 %s4978_s28, 4  ;;  %s134_s5 = int_to_ptr.vmem [resolvable:$true] %s133_s5  ;;  %s158_s22 = int_to_ptr.vmem [resolvable:$true] %s157_s22 }
  0xe7   :  { %s4826_s9 = scalar_lea.hbm %s5681_s8, 32 }
  0xe8   :  { %p4827_p4 = scmp.ne.s32.totalorder %s5681_s8, %s4826_s9  ;;  %p4830_p5 = scmp.lt.u32.totalorder %s4826_s9, %s5681_s8 }
  0xea   :  { %p4832_p6 = pnand %p4830_p5, %p4827_p4 }
  0xec   :  { %4835 = shalt.err (!%p4832_p6)
}
  0xed   :  { %s4836_s6 = scalar_lea.vmem %s134_s5, 32  ;;  %p4841_p8 = scmp.lt.s32.totalorder %s134_s5, %s134_s5 }
  0xee   :  { %p4837_p7 = scmp.ne.s32.totalorder %s134_s5, %s4836_s6  ;;  %p4842_p9 = scmp.lt.s32.totalorder %s4836_s6, %s4836_s6 }
  0xf0   :  { %p4843_p10 = por %p4842_p9, %p4841_p8 }
  0xf2   :  { %p4844_p11 = pnand %p4843_p10, %p4837_p7 }
  0xf4   :  { %4847 = shalt.err (!%p4844_p11)
}
  0xf5   :  { %139 = dma.hbm_to_vmem [thread:$0]  %s5681_s8, 32, %s134_s5, [#allocation15], %s4955_s30, %s4955_s30, %s4956_s0  }
  0xf6   :  { %s4848_s27 = scalar_lea.hbm %s5683_s10, 4096 }
  0xf7   :  { %p4849_p12 = scmp.ne.s32.totalorder %s5683_s10, %s4848_s27  ;;  %p4852_p13 = scmp.lt.u32.totalorder %s4848_s27, %s5683_s10 }
  0xf9   :  { %p4854_p0 = pnand %p4852_p13, %p4849_p12 }
  0xfb   :  { %4857 = shalt.err (!%p4854_p0)
}
  0xfc   :  { %s4858_s1 = scalar_lea.vmem %s158_s22, 4096  ;;  %p4863_p2 = scmp.lt.s32.totalorder %s158_s22, %s158_s22 }
  0xfd   :  { %p4859_p1 = scmp.ne.s32.totalorder %s158_s22, %s4858_s1  ;;  %p4864_p3 = scmp.lt.s32.totalorder %s4858_s1, %s4858_s1 }
  0xff   :  { %p4865_p4 = por %p4864_p3, %p4863_p2 }
 0x101   :  { %p4866_p5 = pnand %p4865_p4, %p4859_p1 }
 0x103   :  { %4869 = shalt.err (!%p4866_p5)
}
 0x104   :  { %163 = dma.hbm_to_vmem [thread:$0]  %s5683_s10, 4096, %s158_s22, [#allocation18], %s4968_s13, %s4968_s13, %s4969_s18  }
 0x105   :  { %s4979_s9 = smov [#allocation22]   ;;  %s4980_s20 = smov [#allocation25]  }
 0x106   :  { %s181_s2 = sshll.u32 %s4979_s9, 4  ;;  %s205_s21 = sshll.u32 %s4980_s20, 4  ;;  %s182_s2 = int_to_ptr.vmem [resolvable:$true] %s181_s2  ;;  %s206_s21 = int_to_ptr.vmem [resolvable:$true] %s205_s21 }
 0x107   :  { %s4870_s7 = scalar_lea.hbm %s5685_s12, 4096 }
 0x108   :  { %p4871_p6 = scmp.ne.s32.totalorder %s5685_s12, %s4870_s7  ;;  %p4874_p7 = scmp.lt.u32.totalorder %s4870_s7, %s5685_s12 }
 0x10a   :  { %p4876_p8 = pnand %p4874_p7, %p4871_p6 }
 0x10c   :  { %4879 = shalt.err (!%p4876_p8)
}
 0x10d   :  { %s4880_s10 = scalar_lea.vmem %s182_s2, 4096  ;;  %p4885_p10 = scmp.lt.s32.totalorder %s182_s2, %s182_s2 }
 0x10e   :  { %p4881_p9 = scmp.ne.s32.totalorder %s182_s2, %s4880_s10  ;;  %p4886_p11 = scmp.lt.s32.totalorder %s4880_s10, %s4880_s10 }
 0x110   :  { %p4887_p12 = por %p4886_p11, %p4885_p10 }
 0x112   :  { %p4888_p13 = pnand %p4887_p12, %p4881_p9 }
 0x114   :  { %4891 = shalt.err (!%p4888_p13)
}
 0x115   :  { %187 = dma.hbm_to_vmem [thread:$0]  %s5685_s12, 4096, %s182_s2, [#allocation21], %s4975_s23, %s4975_s23, %s4976_s19  }
 0x116   :  { %s4892_s24 = scalar_lea.hbm %s5687_s14, 32 }
 0x117   :  { %p4893_p0 = scmp.ne.s32.totalorder %s5687_s14, %s4892_s24  ;;  %p4896_p1 = scmp.lt.u32.totalorder %s4892_s24, %s5687_s14 }
 0x119   :  { %p4898_p2 = pnand %p4896_p1, %p4893_p0 }
 0x11b   :  { %4901 = shalt.err (!%p4898_p2)
}
 0x11c   :  { %s4902_s5 = scalar_lea.vmem %s206_s21, 32  ;;  %p4907_p4 = scmp.lt.s32.totalorder %s206_s21, %s206_s21 }
 0x11d   :  { %p4903_p3 = scmp.ne.s32.totalorder %s206_s21, %s4902_s5  ;;  %p4908_p5 = scmp.lt.s32.totalorder %s4902_s5, %s4902_s5 }
 0x11f   :  { %p4909_p6 = por %p4908_p5, %p4907_p4 }
 0x121   :  { %p4910_p7 = pnand %p4909_p6, %p4903_p3 }
 0x123   :  { %4913 = shalt.err (!%p4910_p7)
}
 0x124   :  { %211 = dma.hbm_to_vmem [thread:$0]  %s5687_s14, 32, %s206_s21, [#allocation24], %s4955_s30, %s4955_s30, %s4956_s0  }
 0x125   :  { %s4981_s9 = smov [#allocation26]   ;;  %s4914_s6 = scalar_lea.hbm %s5688_s15, 32 }
 0x126   :  { %s217_s2 = sshll.u32 %s4981_s9, 4  ;;  %p4915_p8 = scmp.ne.s32.totalorder %s5688_s15, %s4914_s6  ;;  %s218_s2 = int_to_ptr.vmem [resolvable:$true] %s217_s2 }
 0x127   :  { %p4918_p9 = scmp.lt.u32.totalorder %s4914_s6, %s5688_s15 }
 0x129   :  { %p4920_p10 = pnand %p4918_p9, %p4915_p8 }
 0x12b   :  { %4923 = shalt.err (!%p4920_p10)
}
 0x12c   :  { %s4924_s27 = scalar_lea.vmem %s218_s2, 32  ;;  %p4929_p12 = scmp.lt.s32.totalorder %s218_s2, %s218_s2 }
 0x12d   :  { %p4925_p11 = scmp.ne.s32.totalorder %s218_s2, %s4924_s27  ;;  %p4930_p13 = scmp.lt.s32.totalorder %s4924_s27, %s4924_s27 }
 0x12f   :  { %p4931_p0 = por %p4930_p13, %p4929_p12 }
 0x131   :  { %p4932_p1 = pnand %p4931_p0, %p4925_p11 }
 0x133   :  { %4935 = shalt.err (!%p4932_p1)
}
 0x134   :  { %223 = dma.hbm_to_vmem [thread:$0]  %s5688_s15, 32, %s218_s2, [#allocation27], %s4955_s30, %s4955_s30, %s4956_s0  }
 0x135   :  { %4936 = dma.done.wait [#allocation4], 256  }
 0x136   :  { %4937 = vsyncadd [#allocation4], 4294967040 }
 0x137   :  { %4938 = dma.done.wait [#allocation6], 48  }
 0x138   :  { %4939 = vsyncadd [#allocation6], 4294967248 }
 0x139   :  { %4940 = dma.done.wait [#allocation9], 6160  }
 0x13a   :  { %4941 = vsyncadd [#allocation9], 4294961136 }
 0x13b   :  { %4942 = dma.done.wait [#allocation12], 2144  }
 0x13c   :  { %4943 = vsyncadd [#allocation12], 4294965152 }
 0x13d   :  { %4944 = dma.done.wait [#allocation15], 64  }
 0x13e   :  { %4945 = vsyncadd [#allocation15], 4294967232 }
 0x13f   :  { %4946 = dma.done.wait [#allocation18], 4128  }
 0x140   :  { %4947 = vsyncadd [#allocation18], 4294963168 }
 0x141   :  { %4948 = dma.done.wait [#allocation21], 4160  }
 0x142   :  { %4949 = vsyncadd [#allocation21], 4294963136 }
 0x143   :  { %4950 = dma.done.wait [#allocation24], 64  }
 0x144   :  { %4951 = vsyncadd [#allocation24], 4294967232 }
 0x145   :  { %4952 = dma.done.wait [#allocation27], 32  }
 0x146   :  { %4953 = vsyncadd [#allocation27], 4294967264  ;;  %v281_v1 = vld [vmem:[#allocation3] sm:$0xff]  ;;  %v282_v2 = vld [vmem:[#allocation3 + $0x8] sm:$0xff]  ;;  %v4982_v5 = vmov 0.0   ;;  %v4983_v31 = vmov 0   ;;  %v359_v54 = vlaneseq }
 0x147   :  { %285 = vadd.xlane.f32.xlu0 %v281_v1  ;;  %v4345_v3 = vld [vmem:[#allocation10 + $0x4] ss:$12 sps:$4 sm:$0xff]   ;;  %v4347_v4 = vld [vmem:[#allocation10] ss:$12 sps:$4 sm:$0xff]   ;;  %4078 = vmatprep.subr.bf16.mxu1 %v4982_v5  ;;  %v4348_v6 = vld [vmem:[#allocation10 + $0x8] ss:$12 sps:$4 sm:$0xff]  }
 0x148   :  { %v4349_v7 = vld [vmem:[#allocation10 + $0x1c] ss:$12 sps:$4 sm:$0xff]   ;;  %502 = vmatprep.subr.bf16.mxu0 %v4345_v3  ;;  %4079 = vmatpush3.bf16.msra.mxu1 %v4348_v6  ;;  %v4351_v16 = vld [vmem:[#allocation10 + $0x18] ss:$12 sps:$4 sm:$0xff]   ;;  %v4352_v17 = vld [vmem:[#allocation10 + $0x20] ss:$12 sps:$4 sm:$0xff]  }
 0x149   :  { %503 = vmatpush1.bf16.msra.mxu0 %v4347_v4  ;;  %4080 = vmatprep.subr.bf16.mxu1 %v4982_v5  ;;  %v4353_v18 = vld [vmem:[#allocation10 + $0x34] ss:$12 sps:$4 sm:$0xff]   ;;  %v4355_v19 = vld [vmem:[#allocation10 + $0x30] ss:$12 sps:$4 sm:$0xff]   ;;  %v4356_v20 = vld [vmem:[#allocation10 + $0x38] ss:$12 sps:$4 sm:$0xff]  }
 0x14a   :  { %504 = vmatprep.subr.bf16.mxu0 %v4349_v7  ;;  %v4357_v21 = vld [vmem:[#allocation10 + $0x4c] ss:$12 sps:$4 sm:$0xff]   ;;  %v4359_v22 = vld [vmem:[#allocation10 + $0x48] ss:$12 sps:$4 sm:$0xff]   ;;  %v4360_v23 = vld [vmem:[#allocation10 + $0x50] ss:$12 sps:$4 sm:$0xff]   ;;  %534 = vmatprep.mubr.bf16.mxu0 %v4983_v31 }
 0x14b   :  { %287 = vadd.xlane.f32.xlu0 %v282_v2  ;;  %v4361_v24 = vld [vmem:[#allocation10 + $0x64] ss:$12 sps:$4 sm:$0xff]   ;;  %v4363_v25 = vld [vmem:[#allocation10 + $0x60] ss:$12 sps:$4 sm:$0xff]   ;;  %v4364_v26 = vld [vmem:[#allocation10 + $0x68] ss:$12 sps:$4 sm:$0xff]  }
 0x14c   :  { %4081 = vmatpush3.bf16.msra.mxu1 %v4352_v17  ;;  %v4365_v27 = vld [vmem:[#allocation10 + $0x7c] ss:$12 sps:$4 sm:$0xff]   ;;  %v4367_v28 = vld [vmem:[#allocation10 + $0x78] ss:$12 sps:$4 sm:$0xff]   ;;  %v4368_v29 = vld [vmem:[#allocation10 + $0x80] ss:$12 sps:$4 sm:$0xff]  }
 0x14d   :  { %505 = vmatpush1.bf16.msra.mxu0 %v4351_v16  ;;  %4082 = vmatprep.subr.bf16.mxu1 %v4982_v5  ;;  %v4369_v30 = vld [vmem:[#allocation10 + $0x94] ss:$12 sps:$4 sm:$0xff]   ;;  %vm4984_vm0 = vmmov 0   ;;  %v4371_v32 = vld [vmem:[#allocation10 + $0x90] ss:$12 sps:$4 sm:$0xff]   ;;  %v5365_v55 = vshrl.u32 %v359_v54, 7 }
 0x14e   :  { %506 = vmatprep.subr.bf16.mxu0 %v4353_v18  ;;  %4094 = vmatprep.mubr.msk.bf16.mxu1 %vm4984_vm0, %v4982_v5  ;;  %v4372_v33 = vld [vmem:[#allocation10 + $0x98] ss:$12 sps:$4 sm:$0xff]   ;;  %v4375_v35 = vld [vmem:[#allocation10 + $0xa8] ss:$12 sps:$4 sm:$0xff]   ;;  %v4376_v36 = vld [vmem:[#allocation10 + $0xb0] ss:$12 sps:$4 sm:$0xff]  }
 0x14f   :  { %v4373_v34 = vld [vmem:[#allocation10 + $0xac] ss:$12 sps:$4 sm:$0xff]   ;;  %v3748_v45 = vld [vmem:[#allocation7] ss:$0 sm:$0xff]  ;;  %v3749_v49 = vld [vmem:[#allocation8] ss:$0 sm:$0xff] }
 0x150   :  { %4083 = vmatpush3.bf16.msra.mxu1 %v4356_v20  ;;  %v5368_v56 = vsub.s32 0, %v5365_v55  ;;  %v369_v57 = vsub.s32 2, %v5365_v55  ;;  %v357_v58 = vld [vmem:[#allocation11] sm:$0x7]  ;;  %v5372_v59 = vsub.s32 1, %v5365_v55  ;;  %vm603_vm1 = vcmask 523264  }
 0x151   :  { %507 = vmatpush1.bf16.msra.mxu0 %v4355_v19  ;;  %4084 = vmatprep.subr.bf16.mxu1 %v4982_v5  ;;  %v5408_v19 = vld [vmem:[#allocation5] ss:$0 sm:$0xff]  ;;  %vm688_vm2 = vcmask 64512   ;;  %vm3598_vm3 = vcmask 1040384   ;;  %s5711_s20 = sld [smem:[#allocation42_spill]]  ;;  %vm3721_vm4 = vcmask 1041408  }
 0x152   :  { %508 = vmatprep.subr.bf16.mxu0 %v4357_v21  ;;  %v362_v60 = vrot.slane %v357_v58, %v5368_v56  ;;  %v370_v61 = vrot.slane %v357_v58, %v369_v57  ;;  %v366_v62 = vrot.slane %v357_v58, %v5372_v59  ;;  %vm3733_vm5 = vcmask 1024   ;;  %s5712_s6 = sld [smem:[#allocation43_spill]] }
 0x154   :  { %4085 = vmatpush3.bf16.msra.mxu1 %v4360_v23 }
 0x155   :  { %509 = vmatpush1.bf16.msra.mxu0 %v4359_v22  ;;  %4086 = vmatprep.subr.bf16.mxu1 %v4982_v5 }
 0x156   :  { %510 = vmatprep.subr.bf16.mxu0 %v4361_v24 }
 0x158   :  { %4087 = vmatpush3.bf16.msra.mxu1 %v4364_v26 }
 0x159   :  { %511 = vmatpush1.bf16.msra.mxu0 %v4363_v25  ;;  %4088 = vmatprep.subr.bf16.mxu1 %v4982_v5 }
 0x15a   :  { %512 = vmatprep.subr.bf16.mxu0 %v4365_v27 }
 0x15c   :  { %4089 = vmatpush3.bf16.msra.mxu1 %v4368_v29  ;;  %v3793_v29 = vld [vmem:[#allocation5 + $0x1] ss:$0 sm:$0xff] }
 0x15d   :  { %513 = vmatpush1.bf16.msra.mxu0 %v4367_v28  ;;  %4090 = vmatprep.subr.bf16.mxu1 %v4982_v5 }
 0x15e   :  { %514 = vmatprep.subr.bf16.mxu0 %v4369_v30 }
 0x160   :  { %4091 = vmatpush3.bf16.msra.mxu1 %v4372_v33 }
 0x161   :  { %515 = vmatpush1.bf16.msra.mxu0 %v4371_v32  ;;  %4092 = vmatprep.subr.bf16.mxu1 %v4982_v5 }
 0x162   :  { %516 = vmatprep.subr.bf16.mxu0 %v4373_v34 }
 0x164   :  { %4093 = vmatpush3.bf16.msra.mxu1 %v4376_v36 }
 0x165   :  { %517 = vmatpush1.bf16.msra.mxu0 %v4375_v35  ;;  %4103 = vmatprep.subr.mxu1 %v4982_v5 }
 0x166   :  { %4098 = vmatprep.subr.mxu0 %v4982_v5 }
 0x1d4   :  { %v286_v8 = vpop.xlane.xlu0 %285 }
 0x1d5   :  { %v290_v9 = vmul.f32 0.0078125, %v286_v8 }
 0x1d7   :  { %v5334_v10 = vsub.f32 %v281_v1, %v290_v9 }
 0x1d8   :  { %v288_v11 = vpop.xlane.xlu0 %287 }
 0x1d9   :  { %v291_v12 = vmul.f32 0.0078125, %v288_v11  ;;  %v294_v13 = vmul.f32 %v5334_v10, %v5334_v10 }
 0x1db   :  { %v5338_v14 = vsub.f32 %v282_v2, %v291_v12  ;;  %296 = vadd.xlane.f32.xlu1 %v294_v13 }
 0x1dd   :  { %v295_v15 = vmul.f32 %v5338_v14, %v5338_v14 }
 0x1df   :  { %298 = vadd.xlane.f32.xlu1 %v295_v15 }
 0x268   :  { %v297_v37 = vpop.xlane.xlu1 %296 }
 0x269   :  { %v300_v38 = vmul.f32 0.0078125, %v297_v37 }
 0x26b   :  { %v302_v39 = vadd.f32 1e-12, %v300_v38 }
 0x26c   :  { %v299_v40 = vpop.xlane.xlu1 %298 }
 0x26d   :  { %4513 = vrsqrt.f32 %v302_v39  ;;  %v301_v41 = vmul.f32 0.0078125, %v299_v40 }
 0x26f   :  { %v303_v42 = vadd.f32 1e-12, %v301_v41 }
 0x271   :  { %4515 = vrsqrt.f32 %v303_v42 }
 0x277   :  { %v4514_v43 = vpop.eup %4513 }
 0x278   :  { %v306_v44 = vmul.f32 %v4514_v43, %v5334_v10 }
 0x27a   :  { %v314_v48 = vmul.f32 %v3748_v45, %v306_v44 }
 0x27b   :  { %v4516_v46 = vpop.eup %4515 }
 0x27c   :  { %v307_v47 = vmul.f32 %v4516_v46, %v5338_v14  ;;  %v5355_v51 = vadd.f32 %v3749_v49, %v314_v48 }
 0x27e   :  { %v315_v50 = vmul.f32 %v3748_v45, %v307_v47 }
 0x280   :  { %v5357_v52 = vadd.f32 %v3749_v49, %v315_v50 }
 0x282   :  { %v324_v53 = vpack.c.bf16 %v5357_v52, %v5355_v51 }
 0x284   :  { %535 = vmatmul.mubr.bf16.vlgmr.msra.gmra.mrb[0].mxu0 %v324_v53  ;;  %4095 = vmatmul.mubr.bf16.vlgmr.msra.gmra.mrb[0].mxu1 %v324_v53 }
 0x285   :  { %4100 = vmatprep.mubr.msk.f32.mxu0 %vm4984_vm0, %v4982_v5  ;;  %4105 = vmatprep.mubr.msk.f32.mxu1 %vm4984_vm0, %v4982_v5 }
 0x357   :  { %v536_v63 = vpop.f32.mrb[0].mxu0  ;;  %v579_v0 = vpop.f32.mrb[0].mxu1 }
 0x358   :  { %v537_v1 = vadd.f32 %v536_v63, %v362_v60  ;;  %v5378_v2 = vadd.f32 %v579_v0, %v370_v61  ;;  %v538_v3 = vpop.f32.mrb[1].mxu0  ;;  %v4096_v4 = vpop.f32.mrb[1].mxu1 }
 0x359   :  { %v539_v6 = vadd.f32 %v538_v3, %v366_v62  ;;  %v540_v7 = vpop.f32.mrb[2].mxu0  ;;  %v582_v8 = vpop.f32.mrb[2].mxu1 }
 0x35a   :  { %v5380_v9 = vadd.f32 %v582_v8, %v370_v61  ;;  %v542_v10 = vpop.f32.mrb[3].mxu0  ;;  %v4097_v11 = vpop.f32.mrb[3].mxu1  ;;  %4104 = vmatpush3.msra.mxu1 %v5378_v2  ;;  %774 = vrot.lane.b32.xlu1 %v537_v1, %s4975_s23  ;;  %v541_v13 = vadd.f32 %v540_v7, %v362_v60  ;;  %v4377_v8 = vld [vmem:[#allocation13 + $0x20] sm:$0xff]  }
 0x35b   :  { %v543_v12 = vadd.f32 %v542_v10, %v366_v62  ;;  %776 = vrot.lane.b32.xlu0 %v539_v6, %s4975_s23  ;;  %4099 = vmatpush3.xpose.msk.msra.mxu0 %vm603_vm1, %v539_v6  ;;  %v4378_v10 = vld [vmem:[#allocation13 + $0x28] sm:$0xff]   ;;  %v4380_v11 = vld [vmem:[#allocation13 + $0x38] sm:$0xff]  }
 0x35c   :  { %4108 = vmatprep.subr.mxu0 %v4982_v5  ;;  %4113 = vmatprep.subr.mxu1 %v4982_v5 }
 0x35e   :  { %1250 = vrot.lane.b32.xlu1 %v543_v12, %s4975_s23  ;;  %4101 = vmatmul.mubr.msk.f32.vlgmr.msra.gmra.mrb[4].mxu0 %vm603_vm1, %v537_v1 }
 0x35f   :  { %4110 = vmatprep.mubr.msk.f32.mxu0 %vm4984_vm0, %v4982_v5 }
 0x362   :  { %1248 = vrot.lane.b32.xlu1 %v541_v13, %s4975_s23 }
 0x3cc   :  { %v775_v14 = vpop.permute.xlu1 %774 }
 0x3cd   :  { %v777_v15 = vpop.permute.xlu0 %776 }
 0x3ce   :  { %4109 = vmatpush3.xpose.msk.msra.mxu0 %vm603_vm1, %v777_v15 }
 0x3cf   :  { %4142 = vmatprep.subr.mxu0 %v4982_v5 }
 0x3d0   :  { %v1251_v16 = vpop.permute.xlu1 %1250 }
 0x3d1   :  { %4111 = vmatmul.mubr.msk.f32.vlgmr.msra.gmra.mrb[6].mxu0 %vm603_vm1, %v775_v14 }
 0x3d2   :  { %4143 = vmatpush3.xpose.msk.msra.mxu0 %vm603_vm1, %v543_v12  ;;  %4144 = vmatprep.mubr.msk.f32.mxu0 %vm4984_vm0, %v4982_v5 }
 0x3d3   :  { %4152 = vmatprep.subr.mxu0 %v4982_v5 }
 0x3d4   :  { %v1249_v17 = vpop.permute.xlu1 %1248 }
 0x3d5   :  { %4145 = vmatmul.mubr.msk.f32.vlgmr.msra.gmra.mrb[8].mxu0 %vm603_vm1, %v541_v13 }
 0x3d6   :  { %4153 = vmatpush3.xpose.msk.msra.mxu0 %vm603_vm1, %v1251_v16  ;;  %4154 = vmatprep.mubr.msk.f32.mxu0 %vm4984_vm0, %v4982_v5 }
 0x3d7   :  { %4162 = vmatprep.subr.bf16.mxu0 %v4982_v5 }
 0x3d9   :  { %4155 = vmatmul.mubr.msk.f32.vlgmr.msra.gmra.mrb[10].mxu0 %vm603_vm1, %v1249_v17 }
 0x3da   :  { %4170 = vmatprep.mubr.msk.bf16.mxu0 %vm4984_vm0, %v4982_v5  ;;  %4163 = vmatpush3.bf16.msra.mxu0 %v4377_v8 }
 0x3db   :  { %4164 = vmatprep.subr.bf16.mxu0 %v4982_v5 }
 0x3de   :  { %4165 = vmatpush3.bf16.msra.mxu0 %v4378_v10 }
 0x3df   :  { %4166 = vmatprep.subr.bf16.mxu0 %v4982_v5 }
 0x431   :  { %v676_v18 = vpop.f32.mrb[4].mxu0 }
 0x432   :  { %v680_v20 = vmul.f32 0.125, %v676_v18  ;;  %v4102_v21 = vpop.f32.mrb[5].mxu0 }
 0x434   :  { %v687_v22 = vadd.f32 %v5408_v19, %v680_v20  ;;  %v4381_v20 = vld [vmem:[#allocation13] sm:$0xff]  }
 0x436   :  { %v689_v23 = vsel %vm688_vm2, %v687_v22, -inf }
 0x437   :  { %690 = vmax.xlane.f32.xlu0 %v689_v23  ;;  %v4382_v23 = vld [vmem:[#allocation13 + $0x8] sm:$0xff]  }
 0x4a4   :  { %v848_v24 = vpop.f32.mrb[6].mxu0 }
 0x4a5   :  { %v852_v25 = vmul.f32 0.125, %v848_v24  ;;  %v4112_v26 = vpop.f32.mrb[7].mxu0 }
 0x4a6   :  { %v4384_v26 = vld [vmem:[#allocation13 + $0x18] sm:$0xff]  }
 0x4a7   :  { %v853_v27 = vadd.f32 %v5408_v19, %v852_v25  ;;  %v4383_v25 = vld [vmem:[#allocation13 + $0x10] sm:$0xff]  }
 0x4a8   :  { %v1151_v28 = vpop.f32.mrb[8].mxu0 }
 0x4a9   :  { %v1155_v30 = vmul.f32 0.125, %v1151_v28  ;;  %v4146_v32 = vpop.f32.mrb[9].mxu0  ;;  %v854_v33 = vsel %vm688_vm2, %v853_v27, -inf }
 0x4aa   :  { %855 = vmax.xlane.f32.xlu1 %v854_v33 }
 0x4ab   :  { %v1162_v34 = vadd.f32 %v3793_v29, %v1155_v30 }
 0x4ac   :  { %v1322_v35 = vpop.f32.mrb[10].mxu0 }
 0x4ad   :  { %v1326_v36 = vmul.f32 0.125, %v1322_v35  ;;  %v4156_v37 = vpop.f32.mrb[11].mxu0  ;;  %v1163_v38 = vsel %vm688_vm2, %v1162_v34, -inf }
 0x4ae   :  { %1164 = vmax.xlane.f32.xlu1 %v1163_v38 }
 0x4af   :  { %v1327_v39 = vadd.f32 %v3793_v29, %v1326_v36 }
 0x4b1   :  { %v1328_v40 = vsel %vm688_vm2, %v1327_v39, -inf }
 0x4b2   :  { %1329 = vmax.xlane.f32.xlu1 %v1328_v40 }
 0x4c4   :  { %v691_v41 = vpop.xlane.xlu0 %690 }
 0x4c5   :  { %v692_v42 = vsub.f32 %v687_v22, %v691_v41 }
 0x4c7   :  { %v693_v43 = vmul.f32 1.442695, %v692_v42 }
 0x4c9   :  { %4517 = vpow2.f32 %v693_v43 }
 0x4d3   :  { %v4518_v44 = vpop.eup %4517 }
 0x4d4   :  { %v695_v45 = vsel %vm688_vm2, %v4518_v44, 0.0 }
 0x4d5   :  { %696 = vadd.xlane.f32.xlu0 %v695_v45 }
 0x537   :  { %v856_v46 = vpop.xlane.xlu1 %855 }
 0x538   :  { %v857_v47 = vsub.f32 %v853_v27, %v856_v46 }
 0x53a   :  { %v858_v48 = vmul.f32 1.442695, %v857_v47 }
 0x53b   :  { %v1165_v49 = vpop.xlane.xlu1 %1164 }
 0x53c   :  { %4519 = vpow2.f32 %v858_v48  ;;  %v1166_v50 = vsub.f32 %v1162_v34, %v1165_v49 }
 0x53e   :  { %v1167_v53 = vmul.f32 1.442695, %v1166_v50 }
 0x53f   :  { %v1330_v54 = vpop.xlane.xlu1 %1329 }
 0x540   :  { %4521 = vpow2.f32 %v1167_v53  ;;  %v1331_v58 = vsub.f32 %v1327_v39, %v1330_v54  ;;  %v3800_v39 = vld [vmem:[#allocation14] ss:$0 sm:$0xff] }
 0x542   :  { %v1332_v60 = vmul.f32 1.442695, %v1331_v58 }
 0x544   :  { %4523 = vpow2.f32 %v1332_v60 }
 0x546   :  { %v4520_v61 = vpop.eup %4519 }
 0x547   :  { %v860_v62 = vsel %vm688_vm2, %v4520_v61, 0.0 }
 0x548   :  { %861 = vadd.xlane.f32.xlu0 %v860_v62 }
 0x54a   :  { %v5418_v63 = vpop.eup %4521 }
 0x54b   :  { %v1169_v0 = vsel %vm688_vm2, %v5418_v63, 0.0 }
 0x54c   :  { %1170 = vadd.xlane.f32.xlu1 %v1169_v0 }
 0x54e   :  { %v5422_v1 = vpop.eup %4523 }
 0x54f   :  { %v1334_v3 = vsel %vm688_vm2, %v5422_v1, 0.0 }
 0x550   :  { %1335 = vadd.xlane.f32.xlu1 %v1334_v3 }
 0x55e   :  { %866 = vrot.lane.b32.xlu0 %v5378_v2, %s4975_s23  ;;  %v4379_v2 = vld [vmem:[#allocation13 + $0x30] sm:$0xff]  }
 0x55f   :  { %4167 = vmatpush3.bf16.msra.mxu0 %v4379_v2 }
 0x560   :  { %4168 = vmatprep.subr.bf16.mxu0 %v4982_v5 }
 0x561   :  { %1340 = vrot.lane.b32.xlu1 %v5380_v9, %s4975_s23 }
 0x562   :  { %v697_v4 = vpop.xlane.xlu0 %696 }
 0x563   :  { %4525 = vrcp.f32 %v697_v4  ;;  %4169 = vmatpush3.bf16.msra.mxu0 %v4380_v11 }
 0x56d   :  { %v4526_v6 = vpop.eup %4525 }
 0x56e   :  { %v699_v7 = vmul.f32 %v4526_v6, %v4518_v44 }
 0x570   :  { %4106 = vmatmul.mubr.msk.f32.vlgmr.msra.gmra.mrb[4].mxu1 %vm688_vm2, %v699_v7 }
 0x571   :  { %4115 = vmatprep.mubr.msk.f32.mxu1 %vm4984_vm0, %v4982_v5 }
 0x5d5   :  { %v862_v12 = vpop.xlane.xlu0 %861 }
 0x5d6   :  { %4527 = vrcp.f32 %v862_v12  ;;  %v4390_v12 = vld [vmem:[#allocation19 + $0x14] ss:$8 sps:$4 sm:$0xff]  }
 0x5d9   :  { %v867_v13 = vpop.permute.xlu0 %866  ;;  %v1171_v24 = vpop.xlane.xlu1 %1170 }
 0x5da   :  { %4114 = vmatpush3.msra.mxu1 %v867_v13  ;;  %4529 = vrcp.f32 %v1171_v24  ;;  %v4388_v13 = vld [vmem:[#allocation19 + $0x10] ss:$8 sps:$4 sm:$0xff]   ;;  %v4402_v24 = vld [vmem:[#allocation19 + $0x54] ss:$8 sps:$4 sm:$0xff]  }
 0x5db   :  { %4118 = vmatprep.subr.bf16.mxu1 %v4982_v5 }
 0x5dd   :  { %v1336_v27 = vpop.xlane.xlu1 %1335 }
 0x5de   :  { %4531 = vrcp.f32 %v1336_v27  ;;  %v4403_v27 = vld [vmem:[#allocation19 + $0x60] ss:$8 sps:$4 sm:$0xff]  }
 0x5e0   :  { %v4528_v14 = vpop.eup %4527 }
 0x5e1   :  { %v864_v15 = vmul.f32 %v4528_v14, %v4520_v61  ;;  %v1341_v33 = vpop.permute.xlu1 %1340  ;;  %v4393_v14 = vld [vmem:[#allocation19 + $0x24] ss:$8 sps:$4 sm:$0xff]  }
 0x5e3   :  { %4116 = vmatmul.mubr.msk.f32.vlgmr.msra.gmra.mrb[6].mxu1 %vm688_vm2, %v864_v15  ;;  %v4391_v15 = vld [vmem:[#allocation19 + $0x20] ss:$8 sps:$4 sm:$0xff]  }
 0x5e4   :  { %4119 = vmatpush3.bf16.msra.mxu1 %v4377_v8  ;;  %4126 = vmatprep.mubr.msk.bf16.mxu1 %vm4984_vm0, %v4982_v5  ;;  %v4530_v29 = vpop.eup %4529 }
 0x5e5   :  { %4120 = vmatprep.subr.bf16.mxu1 %v4982_v5  ;;  %v1173_v30 = vmul.f32 %v4530_v29, %v5418_v63  ;;  %v4406_v29 = vld [vmem:[#allocation19 + $0x70] ss:$8 sps:$4 sm:$0xff]  }
 0x5e8   :  { %4121 = vmatpush3.bf16.msra.mxu1 %v4378_v10  ;;  %v4532_v32 = vpop.eup %4531 }
 0x5e9   :  { %4122 = vmatprep.subr.bf16.mxu1 %v4982_v5  ;;  %v1338_v34 = vmul.f32 %v4532_v32, %v5422_v1 }
 0x5ec   :  { %4123 = vmatpush3.bf16.msra.mxu1 %v4379_v2  ;;  %v4385_v2 = vld [vmem:[#allocation19] ss:$8 sps:$4 sm:$0xff]  }
 0x5ed   :  { %4124 = vmatprep.subr.bf16.mxu1 %v4982_v5 }
 0x5f0   :  { %4125 = vmatpush3.bf16.msra.mxu1 %v4380_v11  ;;  %v4387_v11 = vld [vmem:[#allocation19 + $0x4] ss:$8 sps:$4 sm:$0xff]  }
 0x5f1   :  { %4130 = vmatprep.subr.bf16.mxu1 %v4982_v5  ;;  %1663 = vmatprep.subr.bf16.mxu0 %v4387_v11 }
 0x643   :  { %v769_v16 = vpop.f32.mrb[4].mxu1 }
 0x644   :  { %v4107_v17 = vpop.f32.mrb[5].mxu1  ;;  %v773_v28 = vpack.c.bf16 %v769_v16, %v769_v16 }
 0x6b6   :  { %v938_v18 = vpop.f32.mrb[6].mxu1 }
 0x6b7   :  { %v942_v21 = vpack.c.bf16 %v938_v18, %v938_v18  ;;  %v4117_v22 = vpop.f32.mrb[7].mxu1 }
 0x6b8   :  { %v4399_v22 = vld [vmem:[#allocation19 + $0x44] ss:$8 sps:$4 sm:$0xff]  }
 0x6b9   :  { %4127 = vmatmul.mubr.msk.bf16.vlgmr.msra.gmra.mrb[8].mxu1 %vm603_vm1, %v942_v21  ;;  %v4396_v21 = vld [vmem:[#allocation19 + $0x34] ss:$8 sps:$4 sm:$0xff]  }
 0x6ba   :  { %4131 = vmatpush3.bf16.msra.mxu1 %v4381_v20  ;;  %4138 = vmatprep.mubr.msk.bf16.mxu1 %vm4984_vm0, %v4982_v5 }
 0x6bb   :  { %4132 = vmatprep.subr.bf16.mxu1 %v4982_v5 }
 0x6be   :  { %4133 = vmatpush3.bf16.msra.mxu1 %v4382_v23 }
 0x6bf   :  { %4134 = vmatprep.subr.bf16.mxu1 %v4982_v5 }
 0x6c2   :  { %4135 = vmatpush3.bf16.msra.mxu1 %v4383_v25 }
 0x6c3   :  { %4136 = vmatprep.subr.bf16.mxu1 %v4982_v5 }
 0x6c6   :  { %4137 = vmatpush3.bf16.msra.mxu1 %v4384_v26 }
 0x6c7   :  { %4147 = vmatprep.subr.mxu1 %v4982_v5 }
 0x6c9   :  { %4139 = vmatmul.mubr.msk.bf16.vlgmr.msra.gmra.mrb[12].mxu1 %vm603_vm1, %v773_v28  ;;  %v4408_v28 = vld [vmem:[#allocation19 + $0x74] ss:$8 sps:$4 sm:$0xff]  }
 0x6ca   :  { %4148 = vmatpush3.msra.mxu1 %v5380_v9  ;;  %4149 = vmatprep.mubr.msk.f32.mxu1 %vm4984_vm0, %v4982_v5 }
 0x6cb   :  { %4157 = vmatprep.subr.mxu1 %v4982_v5 }
 0x6d1   :  { %4150 = vmatmul.mubr.msk.f32.vlgmr.msra.gmra.mrb[16].mxu1 %vm688_vm2, %v1173_v30 }
 0x6d2   :  { %4158 = vmatpush3.msra.mxu1 %v1341_v33  ;;  %4159 = vmatprep.mubr.msk.f32.mxu1 %vm4984_vm0, %v4982_v5 }
 0x6d3   :  { %4174 = vmatprep.subr.bf16.mxu1 %v4982_v5 }
 0x6d5   :  { %4160 = vmatmul.mubr.msk.f32.vlgmr.msra.gmra.mrb[18].mxu1 %vm688_vm2, %v1338_v34 }
 0x6d6   :  { %4175 = vmatpush3.bf16.msra.mxu1 %v4381_v20  ;;  %4182 = vmatprep.mubr.msk.bf16.mxu1 %vm4984_vm0, %v4982_v5 }
 0x6d7   :  { %4176 = vmatprep.subr.bf16.mxu1 %v4982_v5 }
 0x6da   :  { %4177 = vmatpush3.bf16.msra.mxu1 %v4382_v23  ;;  %v4397_v23 = vld [vmem:[#allocation19 + $0x40] ss:$8 sps:$4 sm:$0xff]  }
 0x6db   :  { %4178 = vmatprep.subr.bf16.mxu1 %v4982_v5 }
 0x6de   :  { %4179 = vmatpush3.bf16.msra.mxu1 %v4383_v25  ;;  %v4400_v25 = vld [vmem:[#allocation19 + $0x50] ss:$8 sps:$4 sm:$0xff]  }
 0x6df   :  { %4180 = vmatprep.subr.bf16.mxu1 %v4982_v5 }
 0x6e2   :  { %4181 = vmatpush3.bf16.msra.mxu1 %v4384_v26  ;;  %v4405_v26 = vld [vmem:[#allocation19 + $0x64] ss:$8 sps:$4 sm:$0xff]  }
 0x78c   :  { %v1004_v9 = vpop.f32.mrb[8].mxu1 }
 0x78d   :  { %v4128_v35 = vpop.f32.mrb[9].mxu1 }
 0x78e   :  { %v1007_v36 = vpop.f32.mrb[10].mxu1 }
 0x78f   :  { %v4129_v37 = vpop.f32.mrb[11].mxu1 }
 0x79c   :  { %v1071_v38 = vpop.f32.mrb[12].mxu1 }
 0x79d   :  { %v1072_v40 = vadd.f32 %v1071_v38, %v1004_v9  ;;  %v4140_v41 = vpop.f32.mrb[13].mxu1  ;;  %v3801_v38 = vld [vmem:[#allocation16] ss:$0 sm:$0xff] }
 0x79e   :  { %v1074_v42 = vpop.f32.mrb[14].mxu1 }
 0x79f   :  { %v1510_v43 = vadd.f32 %v3800_v39, %v1072_v40  ;;  %v4141_v44 = vpop.f32.mrb[15].mxu1  ;;  %v3802_v42 = vld [vmem:[#allocation17] ss:$0 sm:$0xff] }
 0x7a1   :  { %v1512_v45 = vadd.f32 %v1510_v43, %v5355_v51 }
 0x7a3   :  { %1516 = vadd.xlane.f32.xlu0 %v1512_v45 }
 0x7a4   :  { %v1243_v46 = vpop.f32.mrb[16].mxu1 }
 0x7a5   :  { %v1247_v47 = vpack.c.bf16 %v1243_v46, %v1243_v46  ;;  %v4151_v48 = vpop.f32.mrb[17].mxu1 }
 0x7a6   :  { %v4410_v48 = vld [vmem:[#allocation22] sm:$0xff]  }
 0x7a7   :  { %4183 = vmatmul.mubr.msk.bf16.vlgmr.msra.gmra.mrb[20].mxu1 %vm603_vm1, %v1247_v47  ;;  %v4409_v47 = vld [vmem:[#allocation22 + $0x40] sm:$0xff]  }
 0x7a8   :  { %v1412_v49 = vpop.f32.mrb[18].mxu1  ;;  %3980 = vmatprep.subr.bf16.mxu1 %v4409_v47 }
 0x7a9   :  { %v1416_v50 = vpack.c.bf16 %v1412_v49, %v1412_v49  ;;  %v4161_v53 = vpop.f32.mrb[19].mxu1  ;;  %3981 = vmatpush3.bf16.msra.mxu1 %v4410_v48  ;;  %v4411_v49 = vld [vmem:[#allocation22 + $0x48] sm:$0xff]  }
 0x7aa   :  { %3982 = vmatprep.subr.bf16.mxu1 %v4411_v49  ;;  %v4413_v53 = vld [vmem:[#allocation22 + $0x50] sm:$0xff]  }
 0x7ab   :  { %4171 = vmatmul.mubr.msk.bf16.vlgmr.msra.gmra.mrb[12].mxu0 %vm603_vm1, %v1416_v50  ;;  %v4412_v50 = vld [vmem:[#allocation22 + $0x8] sm:$0xff]  }
 0x7ac   :  { %1695 = vmatprep.mubr.bf16.mxu0 %v4983_v31  ;;  %1664 = vmatpush1.bf16.msra.mxu0 %v4385_v2 }
 0x7ad   :  { %1665 = vmatprep.subr.bf16.mxu0 %v4390_v12  ;;  %3983 = vmatpush3.bf16.msra.mxu1 %v4412_v50 }
 0x7ae   :  { %3984 = vmatprep.subr.bf16.mxu1 %v4413_v53 }
 0x7b0   :  { %1666 = vmatpush1.bf16.msra.mxu0 %v4388_v13 }
 0x7b1   :  { %1667 = vmatprep.subr.bf16.mxu0 %v4393_v14 }
 0x7b4   :  { %1668 = vmatpush1.bf16.msra.mxu0 %v4391_v15 }
 0x7b5   :  { %1669 = vmatprep.subr.bf16.mxu0 %v4396_v21 }
 0x830   :  { %v1517_v54 = vpop.xlane.xlu0 %1516 }
 0x831   :  { %v1520_v58 = vmul.f32 0.0078125, %v1517_v54  ;;  %v4414_v54 = vld [vmem:[#allocation22 + $0x10] sm:$0xff]  }
 0x832   :  { %3985 = vmatpush3.bf16.msra.mxu1 %v4414_v54 }
 0x833   :  { %v1522_v60 = vsub.f32 %v1512_v45, %v1520_v58  ;;  %v4415_v58 = vld [vmem:[#allocation22 + $0x58] sm:$0xff]  }
 0x834   :  { %3986 = vmatprep.subr.bf16.mxu1 %v4415_v58 }
 0x835   :  { %v1524_v61 = vmul.f32 %v1522_v60, %v1522_v60 }
 0x837   :  { %1526 = vadd.xlane.f32.xlu0 %v1524_v61  ;;  %v4417_v61 = vld [vmem:[#allocation22 + $0x60] sm:$0xff]  }
 0x87a   :  { %v1497_v62 = vpop.f32.mrb[20].mxu1 }
 0x87b   :  { %v4184_v51 = vpop.f32.mrb[21].mxu1 }
 0x87c   :  { %v1500_v63 = vpop.f32.mrb[22].mxu1  ;;  %v4419_v51 = vld [vmem:[#allocation22 + $0x68] sm:$0xff]  }
 0x87d   :  { %v4185_v0 = vpop.f32.mrb[23].mxu1  ;;  %v4420_v63 = vld [vmem:[#allocation22 + $0x28] sm:$0xff]  }
 0x87e   :  { %v1454_v1 = vpop.f32.mrb[12].mxu0  ;;  %v4421_v0 = vld [vmem:[#allocation22 + $0x70] sm:$0xff]  }
 0x87f   :  { %v1498_v3 = vadd.f32 %v1497_v62, %v1454_v1  ;;  %v4172_v4 = vpop.f32.mrb[13].mxu0  ;;  %v4418_v62 = vld [vmem:[#allocation22 + $0x20] sm:$0xff]   ;;  %v4422_v1 = vld [vmem:[#allocation22 + $0x30] sm:$0xff]  }
 0x880   :  { %v1457_v6 = vpop.f32.mrb[14].mxu0  ;;  %v4424_v4 = vld [vmem:[#allocation22 + $0x38] sm:$0xff]  }
 0x881   :  { %v1511_v7 = vadd.f32 %v3800_v39, %v1498_v3  ;;  %v4173_v8 = vpop.f32.mrb[15].mxu0  ;;  %v4423_v3 = vld [vmem:[#allocation22 + $0x78] sm:$0xff]  }
 0x882   :  { %v1571_v6 = vld [vmem:[#allocation20] sm:$0x3] }
 0x883   :  { %v1513_v10 = vadd.f32 %v1511_v7, %v5357_v52  ;;  %v4394_v52 = vld [vmem:[#allocation19 + $0x30] ss:$8 sps:$4 sm:$0xff]   ;;  %v1576_v7 = vrot.slane %v1571_v6, %v5368_v56  ;;  %v1580_v8 = vrot.slane %v1571_v6, %v5372_v59 }
 0x884   :  { %1670 = vmatpush1.bf16.msra.mxu0 %v4394_v52 }
 0x885   :  { %1518 = vadd.xlane.f32.xlu1 %v1513_v10  ;;  %1671 = vmatprep.subr.bf16.mxu0 %v4399_v22 }
 0x888   :  { %1672 = vmatpush1.bf16.msra.mxu0 %v4397_v23 }
 0x889   :  { %1673 = vmatprep.subr.bf16.mxu0 %v4402_v24 }
 0x88c   :  { %1674 = vmatpush1.bf16.msra.mxu0 %v4400_v25 }
 0x88d   :  { %1675 = vmatprep.subr.bf16.mxu0 %v4405_v26 }
 0x890   :  { %1676 = vmatpush1.bf16.msra.mxu0 %v4403_v27 }
 0x891   :  { %1677 = vmatprep.subr.bf16.mxu0 %v4408_v28 }
 0x894   :  { %1678 = vmatpush1.bf16.msra.mxu0 %v4406_v29 }
 0x8c4   :  { %v1527_v30 = vpop.xlane.xlu0 %1526 }
 0x8c5   :  { %v1530_v32 = vmul.f32 0.0078125, %v1527_v30 }
 0x8c7   :  { %v1532_v33 = vadd.f32 1e-12, %v1530_v32 }
 0x8c9   :  { %4533 = vrsqrt.f32 %v1532_v33 }
 0x8d3   :  { %v4534_v36 = vpop.eup %4533 }
 0x8d4   :  { %v1536_v37 = vmul.f32 %v4534_v36, %v1522_v60  ;;  %v4416_v60 = vld [vmem:[#allocation22 + $0x18] sm:$0xff]  }
 0x8d5   :  { %3987 = vmatpush3.bf16.msra.mxu1 %v4416_v60 }
 0x8d6   :  { %v1544_v41 = vmul.f32 %v3801_v38, %v1536_v37  ;;  %3988 = vmatprep.subr.bf16.mxu1 %v4417_v61 }
 0x8d8   :  { %v5473_v44 = vadd.f32 %v3802_v42, %v1544_v41 }
 0x8d9   :  { %3989 = vmatpush3.bf16.msra.mxu1 %v4418_v62 }
 0x8da   :  { %3990 = vmatprep.subr.bf16.mxu1 %v4419_v51 }
 0x8dd   :  { %3991 = vmatpush3.bf16.msra.mxu1 %v4420_v63  ;;  %v3819_v63 = vld [vmem:[#allocation23] ss:$0 sm:$0xff] }
 0x8de   :  { %3992 = vmatprep.subr.bf16.mxu1 %v4421_v0 }
 0x8e1   :  { %3993 = vmatpush3.bf16.msra.mxu1 %v4422_v1 }
 0x8e2   :  { %3994 = vmatprep.subr.bf16.mxu1 %v4423_v3 }
 0x8e5   :  { %3995 = vmatpush3.bf16.msra.mxu1 %v4424_v4 }
 0x8e6   :  { %4186 = vmatprep.subr.bf16.mxu1 %v4982_v5 }
 0x912   :  { %v1519_v16 = vpop.xlane.xlu1 %1518 }
 0x913   :  { %v1521_v17 = vmul.f32 0.0078125, %v1519_v16 }
 0x915   :  { %v1523_v18 = vsub.f32 %v1513_v10, %v1521_v17 }
 0x917   :  { %v1525_v20 = vmul.f32 %v1523_v18, %v1523_v18 }
 0x919   :  { %1528 = vadd.xlane.f32.xlu0 %v1525_v20 }
 0x9a6   :  { %v1529_v34 = vpop.xlane.xlu0 %1528 }
 0x9a7   :  { %v1531_v9 = vmul.f32 0.0078125, %v1529_v34 }
 0x9a9   :  { %v1533_v35 = vadd.f32 1e-12, %v1531_v9 }
 0x9ab   :  { %4535 = vrsqrt.f32 %v1533_v35 }
 0x9b5   :  { %v4536_v39 = vpop.eup %4535 }
 0x9b6   :  { %v1537_v40 = vmul.f32 %v4536_v39, %v1523_v18 }
 0x9b8   :  { %v1545_v43 = vmul.f32 %v3801_v38, %v1537_v40 }
 0x9ba   :  { %v5475_v45 = vadd.f32 %v3802_v42, %v1545_v43 }
 0x9bc   :  { %v1554_v46 = vpack.c.bf16 %v5475_v45, %v5473_v44 }
 0x9be   :  { %1696 = vmatmul.mubr.bf16.vlgmr.msra.gmra.mrb[16].mxu0 %v1554_v46 }
 0x9bf   :  { %2174 = vmatprep.mubr.bf16.mxu0 %v4983_v31 }
 0xa91   :  { %v1697_v10 = vpop.f32.mrb[16].mxu0 }
 0xa92   :  { %v1698_v2 = vadd.f32 %v1697_v10, %v1576_v7  ;;  %v1699_v11 = vpop.f32.mrb[17].mxu0 }
 0xa93   :  { %v1700_v12 = vadd.f32 %v1699_v11, %v1580_v8  ;;  %v1701_v13 = vpop.f32.mrb[18].mxu0  ;;  %v4425_v11 = vld [vmem:[#allocation10 + $0xc0] ss:$12 sps:$4 sm:$0xff]  }
 0xa94   :  { %v1710_v14 = vmul.f32 0.044715, %v1698_v2  ;;  %v1702_v15 = vadd.f32 %v1701_v13, %v1576_v7  ;;  %v1703_v16 = vpop.f32.mrb[19].mxu0  ;;  %v1706_v43 = vmul.f32 0.5, %v1698_v2  ;;  %v4428_v13 = vld [vmem:[#allocation10 + $0xc8] ss:$12 sps:$4 sm:$0xff]  }
 0xa95   :  { %v1711_v17 = vmul.f32 0.044715, %v1700_v12  ;;  %v1704_v18 = vadd.f32 %v1703_v16, %v1580_v8  ;;  %v1707_v48 = vmul.f32 0.5, %v1700_v12 }
 0xa96   :  { %v1714_v20 = vmul.f32 %v1710_v14, %v1698_v2  ;;  %v1712_v21 = vmul.f32 0.044715, %v1702_v15  ;;  %v1708_v46 = vmul.f32 0.5, %v1702_v15  ;;  %v4431_v14 = vld [vmem:[#allocation10 + $0xdc] ss:$12 sps:$4 sm:$0xff]  }
 0xa97   :  { %v1715_v52 = vmul.f32 %v1711_v17, %v1700_v12  ;;  %v1713_v22 = vmul.f32 0.044715, %v1704_v18  ;;  %v1709_v49 = vmul.f32 0.5, %v1704_v18 }
 0xa98   :  { %v1718_v23 = vmul.f32 %v1714_v20, %v1698_v2  ;;  %v1716_v24 = vmul.f32 %v1712_v21, %v1702_v15 }
 0xa99   :  { %v1719_v25 = vmul.f32 %v1715_v52, %v1700_v12  ;;  %v1717_v26 = vmul.f32 %v1713_v22, %v1704_v18  ;;  %v4432_v22 = vld [vmem:[#allocation10 + $0xe0] ss:$12 sps:$4 sm:$0xff]  }
 0xa9a   :  { %v1722_v27 = vadd.f32 %v1718_v23, %v1698_v2  ;;  %v1720_v28 = vmul.f32 %v1716_v24, %v1702_v15  ;;  %v4435_v23 = vld [vmem:[#allocation10 + $0xf4] ss:$12 sps:$4 sm:$0xff]   ;;  %v4433_v24 = vld [vmem:[#allocation10 + $0xf0] ss:$12 sps:$4 sm:$0xff]  }
 0xa9b   :  { %v1721_v29 = vmul.f32 %v1717_v26, %v1704_v18  ;;  %v1723_v30 = vadd.f32 %v1719_v25, %v1700_v12  ;;  %v4427_v12 = vld [vmem:[#allocation10 + $0xc4] ss:$12 sps:$4 sm:$0xff]   ;;  %v4439_v26 = vld [vmem:[#allocation10 + $0x10c] ss:$12 sps:$4 sm:$0xff]  }
 0xa9c   :  { %v1726_v32 = vmul.f32 0.7978846, %v1722_v27  ;;  %v1724_v33 = vadd.f32 %v1720_v28, %v1702_v15  ;;  %2142 = vmatprep.subr.bf16.mxu0 %v4427_v12  ;;  %v4429_v15 = vld [vmem:[#allocation10 + $0xd8] ss:$12 sps:$4 sm:$0xff]   ;;  %v4437_v27 = vld [vmem:[#allocation10 + $0x108] ss:$12 sps:$4 sm:$0xff]  }
 0xa9d   :  { %v1725_v34 = vadd.f32 %v1721_v29, %v1704_v18  ;;  %v1727_v9 = vmul.f32 0.7978846, %v1723_v30  ;;  %2143 = vmatpush1.bf16.msra.mxu0 %v4425_v11  ;;  %v4436_v25 = vld [vmem:[#allocation10 + $0xf8] ss:$12 sps:$4 sm:$0xff]   ;;  %v4440_v28 = vld [vmem:[#allocation10 + $0x110] ss:$12 sps:$4 sm:$0xff]  }
 0xa9e   :  { %4537 = vtanh.f32 %v1726_v32  ;;  %v1728_v35 = vmul.f32 0.7978846, %v1724_v33  ;;  %2144 = vmatprep.subr.bf16.mxu0 %v4431_v14  ;;  %v4443_v29 = vld [vmem:[#allocation10 + $0x124] ss:$12 sps:$4 sm:$0xff]   ;;  %v4441_v30 = vld [vmem:[#allocation10 + $0x120] ss:$12 sps:$4 sm:$0xff]  }
 0xa9f   :  { %v1729_v36 = vmul.f32 0.7978846, %v1725_v34  ;;  %4539 = vtanh.f32 %v1727_v9  ;;  %v4444_v32 = vld [vmem:[#allocation10 + $0x128] ss:$12 sps:$4 sm:$0xff]   ;;  %v4445_v34 = vld [vmem:[#allocation10 + $0x138] ss:$12 sps:$4 sm:$0xff]  }
 0xaa0   :  { %4541 = vtanh.f32 %v1728_v35  ;;  %v4447_v33 = vld [vmem:[#allocation10 + $0x13c] ss:$12 sps:$4 sm:$0xff]   ;;  %v4448_v9 = vld [vmem:[#allocation10 + $0x140] ss:$12 sps:$4 sm:$0xff]  }
 0xaa1   :  { %4543 = vtanh.f32 %v1729_v36  ;;  %2145 = vmatpush1.bf16.msra.mxu0 %v4429_v15  ;;  %v4451_v35 = vld [vmem:[#allocation10 + $0x154] ss:$12 sps:$4 sm:$0xff]   ;;  %v4449_v36 = vld [vmem:[#allocation10 + $0x150] ss:$12 sps:$4 sm:$0xff]  }
 0xaa2   :  { %2146 = vmatprep.subr.bf16.mxu0 %v4435_v23 }
 0xaa5   :  { %2147 = vmatpush1.bf16.msra.mxu0 %v4433_v24 }
 0xaa6   :  { %2148 = vmatprep.subr.bf16.mxu0 %v4439_v26 }
 0xaa8   :  { %v4538_v37 = vpop.eup %4537 }
 0xaa9   :  { %v4540_v38 = vpop.eup %4539  ;;  %v1734_v39 = vadd.f32 1.0, %v4538_v37  ;;  %2149 = vmatpush1.bf16.msra.mxu0 %v4437_v27  ;;  %v4452_v37 = vld [vmem:[#allocation10 + $0x158] ss:$12 sps:$4 sm:$0xff]  }
 0xaaa   :  { %v4542_v40 = vpop.eup %4541  ;;  %v1735_v41 = vadd.f32 1.0, %v4540_v38  ;;  %2150 = vmatprep.subr.bf16.mxu0 %v4443_v29  ;;  %v4455_v38 = vld [vmem:[#allocation10 + $0x16c] ss:$12 sps:$4 sm:$0xff]  }
 0xaab   :  { %v4544_v42 = vpop.eup %4543  ;;  %v1736_v47 = vadd.f32 1.0, %v4542_v40  ;;  %v1738_v53 = vmul.f32 %v1734_v39, %v1706_v43  ;;  %v4453_v39 = vld [vmem:[#allocation10 + $0x168] ss:$12 sps:$4 sm:$0xff]   ;;  %v4456_v40 = vld [vmem:[#allocation10 + $0x170] ss:$12 sps:$4 sm:$0xff]  }
 0xaac   :  { %v1737_v50 = vadd.f32 1.0, %v4544_v42  ;;  %v1739_v58 = vmul.f32 %v1735_v41, %v1707_v48 }
 0xaad   :  { %v1740_v54 = vmul.f32 %v1736_v47, %v1708_v46  ;;  %2151 = vmatpush1.bf16.msra.mxu0 %v4441_v30 }
 0xaae   :  { %v1741_v60 = vmul.f32 %v1737_v50, %v1709_v49  ;;  %2152 = vmatprep.subr.bf16.mxu0 %v4447_v33 }
 0xaaf   :  { %v1742_v61 = vpack.c.bf16 %v1740_v54, %v1738_v53  ;;  %v3836_v53 = vld [vmem:[#allocation25] ss:$0 sm:$0xff] }
 0xab0   :  { %v1743_v62 = vpack.c.bf16 %v1741_v60, %v1739_v58 }
 0xab1   :  { %2153 = vmatpush1.bf16.msra.mxu0 %v4445_v34 }
 0xab2   :  { %1911 = vmatprep.mubr.bf16.mxu1 %v1743_v62  ;;  %2154 = vmatprep.subr.bf16.mxu0 %v4451_v35 }
 0xab3   :  { %1912 = vmatmul.mubr.bf16.vlgmr.msra.gmra.mrb[24].mxu1 %v1742_v61  ;;  %v3837_v61 = vld [vmem:[#allocation26] ss:$0 sm:$0xff] }
 0xab4   :  { %4202 = vmatprep.mubr.msk.bf16.mxu1 %vm4984_vm0, %v4982_v5  ;;  %4187 = vmatpush3.bf16.msra.mxu1 %v4428_v13 }
 0xab5   :  { %4188 = vmatprep.subr.bf16.mxu1 %v4982_v5  ;;  %2155 = vmatpush1.bf16.msra.mxu0 %v4449_v36 }
 0xab6   :  { %2156 = vmatprep.subr.bf16.mxu0 %v4455_v38 }
 0xab8   :  { %4189 = vmatpush3.bf16.msra.mxu1 %v4432_v22 }
 0xab9   :  { %4190 = vmatprep.subr.bf16.mxu1 %v4982_v5  ;;  %2157 = vmatpush1.bf16.msra.mxu0 %v4453_v39 }
 0xaba   :  { %4206 = vmatprep.subr.mxu0 %v4982_v5 }
 0xabc   :  { %4191 = vmatpush3.bf16.msra.mxu1 %v4436_v25 }
 0xabd   :  { %4192 = vmatprep.subr.bf16.mxu1 %v4982_v5 }
 0xac0   :  { %4193 = vmatpush3.bf16.msra.mxu1 %v4440_v28 }
 0xac1   :  { %4194 = vmatprep.subr.bf16.mxu1 %v4982_v5 }
 0xac4   :  { %4195 = vmatpush3.bf16.msra.mxu1 %v4444_v32 }
 0xac5   :  { %4196 = vmatprep.subr.bf16.mxu1 %v4982_v5 }
 0xac8   :  { %4197 = vmatpush3.bf16.msra.mxu1 %v4448_v9 }
 0xac9   :  { %4198 = vmatprep.subr.bf16.mxu1 %v4982_v5 }
 0xacc   :  { %4199 = vmatpush3.bf16.msra.mxu1 %v4452_v37 }
 0xacd   :  { %4200 = vmatprep.subr.bf16.mxu1 %v4982_v5 }
 0xad0   :  { %4201 = vmatpush3.bf16.msra.mxu1 %v4456_v40 }
 0xad1   :  { %4211 = vmatprep.subr.mxu1 %v4982_v5 }
 0xb86   :  { %v3996_v51 = vpop.f32.mrb[24].mxu1 }
 0xb87   :  { %v3997_v0 = vpop.f32.mrb[25].mxu1 }
 0xb88   :  { %v3998_v1 = vadd.f32 %v3997_v0, %v3996_v51  ;;  %v3999_v3 = vpop.f32.mrb[26].mxu1 }
 0xb89   :  { %v4000_v4 = vpop.f32.mrb[27].mxu1 }
 0xb8a   :  { %v1914_v6 = vadd.f32 %v3998_v1, %v3819_v63  ;;  %v4001_v7 = vadd.f32 %v4000_v4, %v3999_v3  ;;  %v1997_v1 = vld [vmem:[#allocation11 + $0x3] sm:$0x7] }
 0xb8b   :  { %v2002_v3 = vrot.slane %v1997_v1, %v5368_v56  ;;  %v2010_v4 = vrot.slane %v1997_v1, %v369_v57 }
 0xb8c   :  { %v1917_v8 = vadd.f32 %v4001_v7, %v3819_v63  ;;  %v1920_v10 = vadd.f32 %v1914_v6, %v5473_v44  ;;  %v2006_v6 = vrot.slane %v1997_v1, %v5372_v59 }
 0xb8e   :  { %1924 = vadd.xlane.f32.xlu0 %v1920_v10  ;;  %v1921_v2 = vadd.f32 %v1917_v8, %v5475_v45 }
 0xb92   :  { %1926 = vadd.xlane.f32.xlu0 %v1921_v2 }
 0xc1b   :  { %v1925_v16 = vpop.xlane.xlu0 %1924 }
 0xc1c   :  { %v1928_v17 = vmul.f32 0.0078125, %v1925_v16 }
 0xc1e   :  { %v5488_v18 = vsub.f32 %v1920_v10, %v1928_v17 }
 0xc1f   :  { %v1927_v44 = vpop.xlane.xlu0 %1926 }
 0xc20   :  { %v1929_v20 = vmul.f32 0.0078125, %v1927_v44  ;;  %v1932_v45 = vmul.f32 %v5488_v18, %v5488_v18 }
 0xc22   :  { %v1931_v21 = vsub.f32 %v1921_v2, %v1929_v20  ;;  %1934 = vadd.xlane.f32.xlu0 %v1932_v45 }
 0xc24   :  { %v1933_v52 = vmul.f32 %v1931_v21, %v1931_v21 }
 0xc26   :  { %1936 = vadd.xlane.f32.xlu1 %v1933_v52 }
 0xcaf   :  { %v1935_v41 = vpop.xlane.xlu0 %1934 }
 0xcb0   :  { %v1938_v42 = vmul.f32 0.0078125, %v1935_v41 }
 0xcb2   :  { %v1940_v43 = vadd.f32 1e-12, %v1938_v42  ;;  %v4461_v42 = vld [vmem:[#allocation13 + $0x60] sm:$0xff]  }
 0xcb3   :  { %v1937_v46 = vpop.xlane.xlu1 %1936 }
 0xcb4   :  { %4545 = vrsqrt.f32 %v1940_v43  ;;  %v1939_v47 = vmul.f32 0.0078125, %v1937_v46  ;;  %v4462_v43 = vld [vmem:[#allocation13 + $0x68] sm:$0xff]   ;;  %v4463_v46 = vld [vmem:[#allocation13 + $0x70] sm:$0xff]  }
 0xcb6   :  { %v1941_v48 = vadd.f32 1e-12, %v1939_v47  ;;  %v4464_v47 = vld [vmem:[#allocation13 + $0x78] sm:$0xff]  }
 0xcb8   :  { %4547 = vrsqrt.f32 %v1941_v48 }
 0xcbe   :  { %v4546_v49 = vpop.eup %4545 }
 0xcbf   :  { %v1944_v50 = vmul.f32 %v4546_v49, %v5488_v18 }
 0xcc1   :  { %v1952_v60 = vmul.f32 %v3836_v53, %v1944_v50  ;;  %v5553_v50 = vld [vmem:[#allocation13 + $0x40] sm:$0xff]  }
 0xcc2   :  { %v4548_v54 = vpop.eup %4547 }
 0xcc3   :  { %v1945_v58 = vmul.f32 %v4548_v54, %v1931_v21  ;;  %v5501_v51 = vadd.f32 %v3837_v61, %v1952_v60  ;;  %v5557_v54 = vld [vmem:[#allocation13 + $0x48] sm:$0xff]   ;;  %v5567_v60 = vld [vmem:[#allocation13 + $0x58] sm:$0xff]  }
 0xcc5   :  { %v1953_v62 = vmul.f32 %v3836_v53, %v1945_v58  ;;  %v5563_v58 = vld [vmem:[#allocation13 + $0x50] sm:$0xff]  }
 0xcc7   :  { %v5503_v63 = vadd.f32 %v3837_v61, %v1953_v62 }
 0xcc9   :  { %v1962_v0 = vpack.c.bf16 %v5503_v63, %v5501_v51 }
 0xccb   :  { %2175 = vmatmul.mubr.bf16.vlgmr.msra.gmra.mrb[20].mxu0 %v1962_v0  ;;  %4203 = vmatmul.mubr.bf16.vlgmr.msra.gmra.mrb[28].mxu1 %v1962_v0 }
 0xccc   :  { %4208 = vmatprep.mubr.msk.f32.mxu0 %vm4984_vm0, %v4982_v5  ;;  %4213 = vmatprep.mubr.msk.f32.mxu1 %vm4984_vm0, %v4982_v5 }
 0xd9e   :  { %v2176_v7 = vpop.f32.mrb[20].mxu0  ;;  %v2219_v8 = vpop.f32.mrb[28].mxu1 }
 0xd9f   :  { %v2177_v10 = vadd.f32 %v2176_v7, %v2002_v3  ;;  %v2220_v2 = vadd.f32 %v2219_v8, %v2010_v4  ;;  %v2178_v11 = vpop.f32.mrb[21].mxu0  ;;  %v4204_v12 = vpop.f32.mrb[29].mxu1 }
 0xda0   :  { %v2179_v13 = vadd.f32 %v2178_v11, %v2006_v6  ;;  %v2180_v14 = vpop.f32.mrb[22].mxu0  ;;  %v2222_v15 = vpop.f32.mrb[30].mxu1 }
 0xda1   :  { %v5515_v16 = vadd.f32 %v2180_v14, %v2002_v3  ;;  %v5517_v17 = vadd.f32 %v2222_v15, %v2010_v4  ;;  %v2182_v18 = vpop.f32.mrb[23].mxu0  ;;  %v4205_v44 = vpop.f32.mrb[31].mxu1  ;;  %4212 = vmatpush3.msra.mxu1 %v2220_v2  ;;  %2406 = vrot.lane.b32.xlu1 %v2177_v10, %s4975_s23 }
 0xda2   :  { %v5520_v55 = vadd.f32 %v2182_v18, %v2006_v6  ;;  %2408 = vrot.lane.b32.xlu0 %v2179_v13, %s4975_s23  ;;  %4207 = vmatpush3.xpose.msk.msra.mxu0 %vm603_vm1, %v2179_v13 }
 0xda3   :  { %4216 = vmatprep.subr.mxu0 %v4982_v5  ;;  %4221 = vmatprep.subr.mxu1 %v4982_v5 }
 0xda5   :  { %4209 = vmatmul.mubr.msk.f32.vlgmr.msra.gmra.mrb[24].mxu0 %vm603_vm1, %v2177_v10 }
 0xda6   :  { %4218 = vmatprep.mubr.msk.f32.mxu0 %vm4984_vm0, %v4982_v5 }
 0xe13   :  { %v2407_v20 = vpop.permute.xlu1 %2406 }
 0xe14   :  { %v2409_v57 = vpop.permute.xlu0 %2408 }
 0xe15   :  { %4217 = vmatpush3.xpose.msk.msra.mxu0 %vm603_vm1, %v2409_v57  ;;  %v4583_v57 = vld [vmem:[#allocation5 + $0x1] ss:$0 sm:$0xff] }
 0xe16   :  { %4226 = vmatprep.subr.bf16.mxu0 %v4982_v5 }
 0xe18   :  { %4219 = vmatmul.mubr.msk.f32.vlgmr.msra.gmra.mrb[26].mxu0 %vm603_vm1, %v2407_v20 }
 0xe19   :  { %4234 = vmatprep.mubr.msk.bf16.mxu0 %vm4984_vm0, %v4982_v5  ;;  %4227 = vmatpush3.bf16.msra.mxu0 %v4461_v42 }
 0xe1a   :  { %4228 = vmatprep.subr.bf16.mxu0 %v4982_v5 }
 0xe1d   :  { %4229 = vmatpush3.bf16.msra.mxu0 %v4462_v43 }
 0xe1e   :  { %4230 = vmatprep.subr.bf16.mxu0 %v4982_v5 }
 0xe21   :  { %4231 = vmatpush3.bf16.msra.mxu0 %v4463_v46 }
 0xe22   :  { %4232 = vmatprep.subr.bf16.mxu0 %v4982_v5 }
 0xe25   :  { %4233 = vmatpush3.bf16.msra.mxu0 %v4464_v47 }
 0xe26   :  { %4250 = vmatprep.subr.mxu0 %v4982_v5 }
 0xe78   :  { %v2315_v45 = vpop.f32.mrb[24].mxu0 }
 0xe79   :  { %v2319_v21 = vmul.f32 0.125, %v2315_v45  ;;  %v4210_v52 = vpop.f32.mrb[25].mxu0 }
 0xe7b   :  { %v2320_v22 = vadd.f32 %v5408_v19, %v2319_v21 }
 0xe7d   :  { %v2321_v23 = vsel %vm688_vm2, %v2320_v22, -inf }
 0xe7e   :  { %2322 = vmax.xlane.f32.xlu1 %v2321_v23 }
 0xeeb   :  { %v2480_v24 = vpop.f32.mrb[26].mxu0 }
 0xeec   :  { %v2484_v25 = vmul.f32 0.125, %v2480_v24  ;;  %v4220_v26 = vpop.f32.mrb[27].mxu0 }
 0xeee   :  { %v2485_v27 = vadd.f32 %v5408_v19, %v2484_v25 }
 0xef0   :  { %v2486_v28 = vsel %vm688_vm2, %v2485_v27, -inf }
 0xef1   :  { %2487 = vmax.xlane.f32.xlu0 %v2486_v28 }
 0xf0b   :  { %v2323_v29 = vpop.xlane.xlu1 %2322 }
 0xf0c   :  { %v2324_v30 = vsub.f32 %v2320_v22, %v2323_v29 }
 0xf0e   :  { %v2325_v32 = vmul.f32 1.442695, %v2324_v30 }
 0xf10   :  { %4549 = vpow2.f32 %v2325_v32 }
 0xf1a   :  { %v4550_v33 = vpop.eup %4549 }
 0xf1b   :  { %v2327_v34 = vsel %vm688_vm2, %v4550_v33, 0.0 }
 0xf1c   :  { %2328 = vadd.xlane.f32.xlu0 %v2327_v34 }
 0xf32   :  { %2498 = vrot.lane.b32.xlu0 %v2220_v2, %s4975_s23 }
 0xf7e   :  { %v2488_v9 = vpop.xlane.xlu0 %2487 }
 0xf7f   :  { %v2489_v35 = vsub.f32 %v2485_v27, %v2488_v9 }
 0xf81   :  { %v2490_v36 = vmul.f32 1.442695, %v2489_v35 }
 0xf83   :  { %4551 = vpow2.f32 %v2490_v36 }
 0xf8d   :  { %v4552_v37 = vpop.eup %4551 }
 0xf8e   :  { %v2492_v19 = vsel %vm688_vm2, %v4552_v37, 0.0 }
 0xf8f   :  { %2493 = vadd.xlane.f32.xlu1 %v2492_v19 }
 0xfa0   :  { %2874 = vrot.lane.b32.xlu1 %v5520_v55, %s4975_s23 }
 0xfa4   :  { %2872 = vrot.lane.b32.xlu1 %v5515_v16, %s4975_s23 }
 0xfa9   :  { %v2329_v38 = vpop.xlane.xlu0 %2328 }
 0xfaa   :  { %4553 = vrcp.f32 %v2329_v38 }
 0xfad   :  { %v2499_v41 = vpop.permute.xlu0 %2498 }
 0xfb4   :  { %v4554_v39 = vpop.eup %4553 }
 0xfb5   :  { %v2331_v40 = vmul.f32 %v4554_v39, %v4550_v33  ;;  %v3886_v33 = vld [vmem:[#allocation14 + $0x1] ss:$0 sm:$0xff] }
 0xfb7   :  { %4214 = vmatmul.mubr.msk.f32.vlgmr.msra.gmra.mrb[32].mxu1 %vm688_vm2, %v2331_v40 }
 0xfb8   :  { %4222 = vmatpush3.msra.mxu1 %v2499_v41  ;;  %4223 = vmatprep.mubr.msk.f32.mxu1 %vm4984_vm0, %v4982_v5 }
 0xfb9   :  { %4238 = vmatprep.subr.bf16.mxu1 %v4982_v5 }
0x101c   :  { %v2494_v48 = vpop.xlane.xlu1 %2493 }
0x101d   :  { %4555 = vrcp.f32 %v2494_v48 }
0x1020   :  { %v2875_v6 = vpop.permute.xlu1 %2874 }
0x1024   :  { %v2873_v7 = vpop.permute.xlu1 %2872 }
0x1027   :  { %v4556_v49 = vpop.eup %4555 }
0x1028   :  { %v2496_v53 = vmul.f32 %v4556_v49, %v4552_v37 }
0x102a   :  { %4224 = vmatmul.mubr.msk.f32.vlgmr.msra.gmra.mrb[34].mxu1 %vm688_vm2, %v2496_v53 }
0x102b   :  { %4239 = vmatpush3.bf16.msra.mxu1 %v5553_v50  ;;  %4246 = vmatprep.mubr.msk.bf16.mxu1 %vm4984_vm0, %v4982_v5 }
0x102c   :  { %4240 = vmatprep.subr.bf16.mxu1 %v4982_v5 }
0x102f   :  { %4241 = vmatpush3.bf16.msra.mxu1 %v5557_v54 }
0x1030   :  { %4242 = vmatprep.subr.bf16.mxu1 %v4982_v5 }
0x1033   :  { %4243 = vmatpush3.bf16.msra.mxu1 %v5563_v58 }
0x1034   :  { %4244 = vmatprep.subr.bf16.mxu1 %v4982_v5 }
0x1037   :  { %4245 = vmatpush3.bf16.msra.mxu1 %v5567_v60 }
0x1038   :  { %4255 = vmatprep.subr.mxu1 %v4982_v5 }
0x108a   :  { %v2401_v61 = vpop.f32.mrb[32].mxu1 }
0x108b   :  { %v2405_v62 = vpack.c.bf16 %v2401_v61, %v2401_v61  ;;  %v4215_v0 = vpop.f32.mrb[33].mxu1 }
0x108d   :  { %4247 = vmatmul.mubr.msk.bf16.vlgmr.msra.gmra.mrb[36].mxu1 %vm603_vm1, %v2405_v62 }
0x108e   :  { %4256 = vmatpush3.msra.mxu1 %v5517_v17  ;;  %4257 = vmatprep.mubr.msk.f32.mxu1 %vm4984_vm0, %v4982_v5 }
0x108f   :  { %4265 = vmatprep.subr.mxu1 %v4982_v5 }
0x10fd   :  { %v2570_v1 = vpop.f32.mrb[34].mxu1 }
0x10fe   :  { %v2574_v3 = vpack.c.bf16 %v2570_v1, %v2570_v1  ;;  %v4225_v4 = vpop.f32.mrb[35].mxu1 }
0x1100   :  { %4235 = vmatmul.mubr.msk.bf16.vlgmr.msra.gmra.mrb[28].mxu0 %vm603_vm1, %v2574_v3 }
0x1101   :  { %4251 = vmatpush3.xpose.msk.msra.mxu0 %vm603_vm1, %v5520_v55  ;;  %4252 = vmatprep.mubr.msk.f32.mxu0 %vm4984_vm0, %v4982_v5 }
0x1102   :  { %4260 = vmatprep.subr.mxu0 %v4982_v5 }
0x1108   :  { %4253 = vmatmul.mubr.msk.f32.vlgmr.msra.gmra.mrb[32].mxu0 %vm603_vm1, %v5515_v16 }
0x1109   :  { %4261 = vmatpush3.xpose.msk.msra.mxu0 %vm603_vm1, %v2875_v6  ;;  %4262 = vmatprep.mubr.msk.f32.mxu0 %vm4984_vm0, %v4982_v5 }
0x110a   :  { %4270 = vmatprep.subr.bf16.mxu0 %v4982_v5 }
0x110c   :  { %4263 = vmatmul.mubr.msk.f32.vlgmr.msra.gmra.mrb[34].mxu0 %vm603_vm1, %v2873_v7 }
0x110d   :  { %4271 = vmatpush3.bf16.msra.mxu0 %v4461_v42  ;;  %4278 = vmatprep.mubr.msk.bf16.mxu0 %vm4984_vm0, %v4982_v5 }
0x110e   :  { %4272 = vmatprep.subr.bf16.mxu0 %v4982_v5 }
0x1111   :  { %4273 = vmatpush3.bf16.msra.mxu0 %v4462_v43 }
0x1112   :  { %4274 = vmatprep.subr.bf16.mxu0 %v4982_v5 }
0x1115   :  { %4275 = vmatpush3.bf16.msra.mxu0 %v4463_v46 }
0x1116   :  { %4276 = vmatprep.subr.bf16.mxu0 %v4982_v5 }
0x1119   :  { %4277 = vmatpush3.bf16.msra.mxu0 %v4464_v47 }
0x1160   :  { %v2703_v8 = vpop.f32.mrb[36].mxu1 }
0x1161   :  { %v4248_v10 = vpop.f32.mrb[37].mxu1 }
0x1162   :  { %v2706_v2 = vpop.f32.mrb[38].mxu1 }
0x1163   :  { %v4249_v11 = vpop.f32.mrb[39].mxu1  ;;  %v4465_v2 = vld [vmem:[#allocation19 + $0x80] ss:$8 sps:$4 sm:$0xff]  }
0x1164   :  { %v4470_v11 = vld [vmem:[#allocation19 + $0x94] ss:$8 sps:$4 sm:$0xff]  }
0x11d3   :  { %v2636_v12 = vpop.f32.mrb[28].mxu0 }
0x11d4   :  { %v2704_v13 = vadd.f32 %v2703_v8, %v2636_v12  ;;  %v4236_v14 = vpop.f32.mrb[29].mxu0  ;;  %v4468_v12 = vld [vmem:[#allocation19 + $0x90] ss:$8 sps:$4 sm:$0xff]  }
0x11d5   :  { %v2639_v15 = vpop.f32.mrb[30].mxu0  ;;  %v4471_v14 = vld [vmem:[#allocation19 + $0xa0] ss:$8 sps:$4 sm:$0xff]  }
0x11d6   :  { %v4237_v16 = vpop.f32.mrb[31].mxu0  ;;  %v3135_v35 = vadd.f32 %v3886_v33, %v2704_v13  ;;  %v4473_v13 = vld [vmem:[#allocation19 + $0xa4] ss:$8 sps:$4 sm:$0xff]  }
0x11db   :  { %v2781_v18 = vpop.f32.mrb[32].mxu0 }
0x11dc   :  { %v2785_v44 = vmul.f32 0.125, %v2781_v18  ;;  %v4254_v55 = vpop.f32.mrb[33].mxu0 }
0x11dd   :  { %v4474_v55 = vld [vmem:[#allocation19 + $0xb0] ss:$8 sps:$4 sm:$0xff]  }
0x11de   :  { %v2786_v20 = vadd.f32 %v4583_v57, %v2785_v44 }
0x11df   :  { %v2946_v45 = vpop.f32.mrb[34].mxu0 }
0x11e0   :  { %v2950_v21 = vmul.f32 0.125, %v2946_v45  ;;  %v4264_v52 = vpop.f32.mrb[35].mxu0  ;;  %v2787_v22 = vsel %vm688_vm2, %v2786_v20, -inf  ;;  %v4482_v45 = vld [vmem:[#allocation19 + $0xd4] ss:$8 sps:$4 sm:$0xff]  }
0x11e1   :  { %2788 = vmax.xlane.f32.xlu1 %v2787_v22  ;;  %v4485_v52 = vld [vmem:[#allocation19 + $0xe4] ss:$8 sps:$4 sm:$0xff]   ;;  %v4483_v22 = vld [vmem:[#allocation19 + $0xe0] ss:$8 sps:$4 sm:$0xff]  }
0x11e2   :  { %v2951_v23 = vadd.f32 %v4583_v57, %v2950_v21  ;;  %v4479_v57 = vld [vmem:[#allocation19 + $0xc4] ss:$8 sps:$4 sm:$0xff]   ;;  %v4480_v21 = vld [vmem:[#allocation19 + $0xd0] ss:$8 sps:$4 sm:$0xff]  }
0x11e4   :  { %v2952_v24 = vsel %vm688_vm2, %v2951_v23, -inf }
0x11e5   :  { %2953 = vmax.xlane.f32.xlu0 %v2952_v24  ;;  %v4486_v24 = vld [vmem:[#allocation19 + $0xf0] ss:$8 sps:$4 sm:$0xff]  }
0x11f2   :  { %2964 = vrot.lane.b32.xlu1 %v5517_v17, %s4975_s23  ;;  %v3137_v17 = vadd.f32 %v3135_v35, %v5501_v51 }
0x126e   :  { %v2789_v25 = vpop.xlane.xlu1 %2788 }
0x126f   :  { %v2790_v26 = vsub.f32 %v2786_v20, %v2789_v25  ;;  %v4477_v20 = vld [vmem:[#allocation19 + $0xc0] ss:$8 sps:$4 sm:$0xff]  }
0x1271   :  { %v2791_v27 = vmul.f32 1.442695, %v2790_v26 }
0x1272   :  { %v2954_v28 = vpop.xlane.xlu0 %2953  ;;  %v2965_v40 = vpop.permute.xlu1 %2964 }
0x1273   :  { %4557 = vpow2.f32 %v2791_v27  ;;  %v2955_v29 = vsub.f32 %v2951_v23, %v2954_v28  ;;  %v4488_v23 = vld [vmem:[#allocation19 + $0xf4] ss:$8 sps:$4 sm:$0xff]  }
0x1275   :  { %v2956_v30 = vmul.f32 1.442695, %v2955_v29 }
0x1277   :  { %4559 = vpow2.f32 %v2956_v30 }
0x127d   :  { %v4558_v32 = vpop.eup %4557 }
0x127e   :  { %v2793_v34 = vsel %vm688_vm2, %v4558_v32, 0.0 }
0x127f   :  { %2794 = vadd.xlane.f32.xlu0 %v2793_v34  ;;  %v3887_v34 = vld [vmem:[#allocation16 + $0x1] ss:$0 sm:$0xff] }
0x1281   :  { %v4560_v9 = vpop.eup %4559 }
0x1282   :  { %v2958_v36 = vsel %vm688_vm2, %v4560_v9, 0.0 }
0x1283   :  { %2959 = vadd.xlane.f32.xlu0 %v2958_v36 }
0x1287   :  { %3143 = vadd.xlane.f32.xlu0 %v3137_v17 }
0x130c   :  { %v2795_v37 = vpop.xlane.xlu0 %2794 }
0x130d   :  { %4561 = vrcp.f32 %v2795_v37 }
0x1310   :  { %v2960_v19 = vpop.xlane.xlu0 %2959 }
0x1311   :  { %4563 = vrcp.f32 %v2960_v19 }
0x1317   :  { %v4562_v38 = vpop.eup %4561 }
0x1318   :  { %v2797_v39 = vmul.f32 %v4562_v38, %v4558_v32 }
0x131a   :  { %4258 = vmatmul.mubr.msk.f32.vlgmr.msra.gmra.mrb[40].mxu1 %vm688_vm2, %v2797_v39 }
0x131b   :  { %v4564_v41 = vpop.eup %4563  ;;  %4266 = vmatpush3.msra.mxu1 %v2965_v40  ;;  %4267 = vmatprep.mubr.msk.f32.mxu1 %vm4984_vm0, %v4982_v5  ;;  %v4489_v40 = vld [vmem:[#allocation22 + $0xc0] sm:$0xff]  }
0x131c   :  { %v2962_v42 = vmul.f32 %v4564_v41, %v4560_v9  ;;  %4282 = vmatprep.subr.bf16.mxu1 %v4982_v5  ;;  %v4490_v41 = vld [vmem:[#allocation22 + $0x80] sm:$0xff]  }
0x131e   :  { %4268 = vmatmul.mubr.msk.f32.vlgmr.msra.gmra.mrb[42].mxu1 %vm688_vm2, %v2962_v42  ;;  %v4491_v42 = vld [vmem:[#allocation22 + $0xc8] sm:$0xff]  }
0x131f   :  { %4283 = vmatpush3.bf16.msra.mxu1 %v5553_v50  ;;  %4290 = vmatprep.mubr.msk.bf16.mxu1 %vm4984_vm0, %v4982_v5 }
0x1320   :  { %4284 = vmatprep.subr.bf16.mxu1 %v4982_v5 }
0x1323   :  { %4285 = vmatpush3.bf16.msra.mxu1 %v5557_v54  ;;  %v3144_v54 = vpop.xlane.xlu0 %3143 }
0x1324   :  { %4286 = vmatprep.subr.bf16.mxu1 %v4982_v5  ;;  %v3147_v0 = vmul.f32 0.0078125, %v3144_v54  ;;  %v4500_v54 = vld [vmem:[#allocation22 + $0xa8] sm:$0xff]  }
0x1326   :  { %v3149_v7 = vsub.f32 %v3137_v17, %v3147_v0  ;;  %v3888_v17 = vld [vmem:[#allocation17 + $0x1] ss:$0 sm:$0xff] }
0x1327   :  { %4287 = vmatpush3.bf16.msra.mxu1 %v5563_v58  ;;  %v4504_v0 = vld [vmem:[#allocation22 + $0xb8] sm:$0xff]  }
0x1328   :  { %4288 = vmatprep.subr.bf16.mxu1 %v4982_v5  ;;  %v3151_v10 = vmul.f32 %v3149_v7, %v3149_v7 }
0x132b   :  { %4289 = vmatpush3.bf16.msra.mxu1 %v5567_v60 }
0x132c   :  { %4047 = vmatprep.subr.bf16.mxu1 %v4489_v40 }
0x13ed   :  { %v2867_v51 = vpop.f32.mrb[40].mxu1 }
0x13ee   :  { %v2871_v43 = vpack.c.bf16 %v2867_v51, %v2867_v51  ;;  %v4259_v46 = vpop.f32.mrb[41].mxu1  ;;  %v4492_v51 = vld [vmem:[#allocation22 + $0x88] sm:$0xff]  }
0x13ef   :  { %v4494_v46 = vld [vmem:[#allocation22 + $0x90] sm:$0xff]  }
0x13f0   :  { %4291 = vmatmul.mubr.msk.bf16.vlgmr.msra.gmra.mrb[44].mxu1 %vm603_vm1, %v2871_v43  ;;  %v4493_v43 = vld [vmem:[#allocation22 + $0xd0] sm:$0xff]  }
0x13f1   :  { %v3036_v47 = vpop.f32.mrb[42].mxu1  ;;  %4048 = vmatpush3.bf16.msra.mxu1 %v4490_v41 }
0x13f2   :  { %v3040_v48 = vpack.c.bf16 %v3036_v47, %v3036_v47  ;;  %v4269_v49 = vpop.f32.mrb[43].mxu1  ;;  %4049 = vmatprep.subr.bf16.mxu1 %v4491_v42  ;;  %v4495_v47 = vld [vmem:[#allocation22 + $0xd8] sm:$0xff]  }
0x13f3   :  { %v4497_v49 = vld [vmem:[#allocation22 + $0xe0] sm:$0xff]  }
0x13f4   :  { %4279 = vmatmul.mubr.msk.bf16.vlgmr.msra.gmra.mrb[36].mxu0 %vm603_vm1, %v3040_v48  ;;  %v4496_v48 = vld [vmem:[#allocation22 + $0x98] sm:$0xff]  }
0x13f5   :  { %3324 = vmatprep.mubr.bf16.mxu0 %v4983_v31  ;;  %v4467_v31 = vld [vmem:[#allocation19 + $0x84] ss:$8 sps:$4 sm:$0xff]   ;;  %4050 = vmatpush3.bf16.msra.mxu1 %v4492_v51 }
0x13f6   :  { %3292 = vmatprep.subr.bf16.mxu0 %v4467_v31  ;;  %4051 = vmatprep.subr.bf16.mxu1 %v4493_v43 }
0x13f7   :  { %3293 = vmatpush1.bf16.msra.mxu0 %v4465_v2 }
0x13f8   :  { %3294 = vmatprep.subr.bf16.mxu0 %v4470_v11 }
0x13f9   :  { %4052 = vmatpush3.bf16.msra.mxu1 %v4494_v46  ;;  %v3905_v46 = vld [vmem:[#allocation23 + $0x1] ss:$0 sm:$0xff] }
0x13fa   :  { %4053 = vmatprep.subr.bf16.mxu1 %v4495_v47 }
0x13fb   :  { %3295 = vmatpush1.bf16.msra.mxu0 %v4468_v12 }
0x13fc   :  { %3296 = vmatprep.subr.bf16.mxu0 %v4473_v13 }
0x13fd   :  { %4054 = vmatpush3.bf16.msra.mxu1 %v4496_v48 }
0x13fe   :  { %4055 = vmatprep.subr.bf16.mxu1 %v4497_v49 }
0x13ff   :  { %3297 = vmatpush1.bf16.msra.mxu0 %v4471_v14 }
0x14c3   :  { %v3121_v50 = vpop.f32.mrb[44].mxu1 }
0x14c4   :  { %v4292_v53 = vpop.f32.mrb[45].mxu1 }
0x14c5   :  { %v3124_v58 = vpop.f32.mrb[46].mxu1  ;;  %v4499_v53 = vld [vmem:[#allocation22 + $0xe8] sm:$0xff]  }
0x14c6   :  { %v4293_v61 = vpop.f32.mrb[47].mxu1  ;;  %v4501_v58 = vld [vmem:[#allocation22 + $0xf0] sm:$0xff]  }
0x14c7   :  { %v3078_v62 = vpop.f32.mrb[36].mxu0  ;;  %v4502_v61 = vld [vmem:[#allocation22 + $0xb0] sm:$0xff]  }
0x14c8   :  { %v3122_v60 = vadd.f32 %v3121_v50, %v3078_v62  ;;  %v4280_v1 = vpop.f32.mrb[37].mxu0  ;;  %v4498_v50 = vld [vmem:[#allocation22 + $0xa0] sm:$0xff]   ;;  %v4503_v62 = vld [vmem:[#allocation22 + $0xf8] sm:$0xff]  }
0x14c9   :  { %v3081_v3 = vpop.f32.mrb[38].mxu0  ;;  %4056 = vmatpush3.bf16.msra.mxu1 %v4498_v50 }
0x14ca   :  { %v3136_v4 = vadd.f32 %v3886_v33, %v3122_v60  ;;  %v4281_v6 = vpop.f32.mrb[39].mxu0  ;;  %4057 = vmatprep.subr.bf16.mxu1 %v4499_v53  ;;  %v3200_v60 = vld [vmem:[#allocation20 + $0x2] sm:$0x3] }
0x14cb   :  { %v3205_v1 = vrot.slane %v3200_v60, %v5368_v56  ;;  %v3209_v3 = vrot.slane %v3200_v60, %v5372_v59 }
0x14cc   :  { %v3138_v8 = vadd.f32 %v3136_v4, %v5503_v63  ;;  %v4476_v63 = vld [vmem:[#allocation19 + $0xb4] ss:$8 sps:$4 sm:$0xff]  }
0x14cd   :  { %3298 = vmatprep.subr.bf16.mxu0 %v4476_v63  ;;  %4058 = vmatpush3.bf16.msra.mxu1 %v4500_v54 }
0x14ce   :  { %3145 = vadd.xlane.f32.xlu0 %v3138_v8  ;;  %3299 = vmatpush1.bf16.msra.mxu0 %v4474_v55 }
0x14cf   :  { %3300 = vmatprep.subr.bf16.mxu0 %v4479_v57  ;;  %4059 = vmatprep.subr.bf16.mxu1 %v4501_v58 }
0x14d1   :  { %4060 = vmatpush3.bf16.msra.mxu1 %v4502_v61 }
0x14d2   :  { %3153 = vadd.xlane.f32.xlu0 %v3151_v10  ;;  %3301 = vmatpush1.bf16.msra.mxu0 %v4477_v20 }
0x14d3   :  { %3302 = vmatprep.subr.bf16.mxu0 %v4482_v45  ;;  %4061 = vmatprep.subr.bf16.mxu1 %v4503_v62 }
0x14d5   :  { %4062 = vmatpush3.bf16.msra.mxu1 %v4504_v0  ;;  %v4505_v0 = vld [vmem:[%s5689_s16] sm:$0xff]  }
0x14d6   :  { %3303 = vmatpush1.bf16.msra.mxu0 %v4480_v21 }
0x14d7   :  { %3304 = vmatprep.subr.bf16.mxu0 %v4485_v52 }
0x14da   :  { %3305 = vmatpush1.bf16.msra.mxu0 %v4483_v22 }
0x14db   :  { %3306 = vmatprep.subr.bf16.mxu0 %v4488_v23 }
0x14de   :  { %3307 = vmatpush1.bf16.msra.mxu0 %v4486_v24 }
0x14df   :  { %4294 = vmatprep.subr.bf16.mxu0 %v4982_v5 }
0x155b   :  { %v3146_v15 = vpop.xlane.xlu0 %3145 }
0x155c   :  { %v3148_v16 = vmul.f32 0.0078125, %v3146_v15 }
0x155e   :  { %v3150_v18 = vsub.f32 %v3138_v8, %v3148_v16 }
0x155f   :  { %v3154_v25 = vpop.xlane.xlu0 %3153 }
0x1560   :  { %v3152_v44 = vmul.f32 %v3150_v18, %v3150_v18  ;;  %v3157_v26 = vmul.f32 0.0078125, %v3154_v25 }
0x1562   :  { %3155 = vadd.xlane.f32.xlu0 %v3152_v44  ;;  %v3159_v27 = vadd.f32 1e-12, %v3157_v26 }
0x1564   :  { %4565 = vrsqrt.f32 %v3159_v27 }
0x156e   :  { %v4566_v32 = vpop.eup %4565 }
0x156f   :  { %v3163_v33 = vmul.f32 %v4566_v32, %v3149_v7 }
0x1571   :  { %v3171_v36 = vmul.f32 %v3887_v34, %v3163_v33 }
0x1573   :  { %v5621_v19 = vadd.f32 %v3888_v17, %v3171_v36 }
0x15ef   :  { %v3156_v28 = vpop.xlane.xlu0 %3155 }
0x15f0   :  { %v3158_v29 = vmul.f32 0.0078125, %v3156_v28 }
0x15f2   :  { %v3160_v30 = vadd.f32 1e-12, %v3158_v29 }
0x15f4   :  { %4567 = vrsqrt.f32 %v3160_v30 }
0x15fe   :  { %v4568_v9 = vpop.eup %4567 }
0x15ff   :  { %v3164_v35 = vmul.f32 %v4568_v9, %v3150_v18 }
0x1601   :  { %v3172_v37 = vmul.f32 %v3887_v34, %v3164_v35 }
0x1603   :  { %v5623_v38 = vadd.f32 %v3888_v17, %v3172_v37 }
0x1605   :  { %v3181_v39 = vpack.c.bf16 %v5623_v38, %v5621_v19 }
0x1607   :  { %3325 = vmatmul.mubr.bf16.vlgmr.msra.gmra.mrb[40].mxu0 %v3181_v39 }
0x1608   :  { %4310 = vmatprep.mubr.msk.bf16.mxu0 %vm4984_vm0, %v4982_v5  ;;  %4295 = vmatpush3.bf16.msra.mxu0 %v4505_v0 }
0x1609   :  { %4296 = vmatprep.subr.bf16.mxu0 %v4982_v5 }
0x16da   :  { %v3326_v4 = vpop.f32.mrb[40].mxu0 }
0x16db   :  { %v3327_v6 = vadd.f32 %v3326_v4, %v3205_v1  ;;  %v3328_v7 = vpop.f32.mrb[41].mxu0 }
0x16dc   :  { %v3329_v8 = vadd.f32 %v3328_v7, %v3209_v3  ;;  %v3330_v10 = vpop.f32.mrb[42].mxu0 }
0x16dd   :  { %v3339_v2 = vmul.f32 0.044715, %v3327_v6  ;;  %v3331_v31 = vadd.f32 %v3330_v10, %v3205_v1  ;;  %v3332_v11 = vpop.f32.mrb[43].mxu0  ;;  %v3335_v33 = vmul.f32 0.5, %v3327_v6  ;;  %v4507_v10 = vld [vmem:[%s5689_s16 + $0x10] sm:$0xff]  }
0x16de   :  { %v3340_v12 = vmul.f32 0.044715, %v3329_v8  ;;  %v3333_v13 = vadd.f32 %v3332_v11, %v3209_v3  ;;  %v3336_v35 = vmul.f32 0.5, %v3329_v8  ;;  %v4510_v11 = vld [vmem:[%s5689_s16 + $0x28] sm:$0xff]  }
0x16df   :  { %v3343_v14 = vmul.f32 %v3339_v2, %v3327_v6  ;;  %v3341_v15 = vmul.f32 0.044715, %v3331_v31  ;;  %v3337_v34 = vmul.f32 0.5, %v3331_v31  ;;  %v4508_v2 = vld [vmem:[%s5689_s16 + $0x18] sm:$0xff]  }
0x16e0   :  { %v3344_v16 = vmul.f32 %v3340_v12, %v3329_v8  ;;  %v3342_v18 = vmul.f32 0.044715, %v3333_v13  ;;  %v3338_v36 = vmul.f32 0.5, %v3333_v13  ;;  %v4511_v12 = vld [vmem:[%s5689_s16 + $0x30] sm:$0xff]  }
0x16e1   :  { %v3347_v44 = vmul.f32 %v3343_v14, %v3327_v6  ;;  %v3345_v63 = vmul.f32 %v3341_v15, %v3331_v31 }
0x16e2   :  { %v3348_v55 = vmul.f32 %v3344_v16, %v3329_v8  ;;  %v3346_v56 = vmul.f32 %v3342_v18, %v3333_v13 }
0x16e3   :  { %v3351_v57 = vadd.f32 %v3347_v44, %v3327_v6  ;;  %v3349_v59 = vmul.f32 %v3345_v63, %v3331_v31 }
0x16e4   :  { %v3350_v20 = vmul.f32 %v3346_v56, %v3333_v13  ;;  %v3352_v45 = vadd.f32 %v3348_v55, %v3329_v8  ;;  %v3922_v56 = vld [vmem:[#allocation25 + $0x1] ss:$0 sm:$0xff] }
0x16e5   :  { %v3355_v21 = vmul.f32 0.7978846, %v3351_v57  ;;  %v3353_v52 = vadd.f32 %v3349_v59, %v3331_v31  ;;  %v4509_v31 = vld [vmem:[%s5689_s16 + $0x20] sm:$0xff]   ;;  %v3923_v59 = vld [vmem:[#allocation26 + $0x1] ss:$0 sm:$0xff] }
0x16e6   :  { %v3354_v22 = vadd.f32 %v3350_v20, %v3333_v13  ;;  %v3356_v23 = vmul.f32 0.7978846, %v3352_v45  ;;  %v4512_v13 = vld [vmem:[%s5689_s16 + $0x38] sm:$0xff]  }
0x16e7   :  { %4569 = vtanh.f32 %v3355_v21  ;;  %v3357_v24 = vmul.f32 0.7978846, %v3353_v52 }
0x16e8   :  { %v3358_v25 = vmul.f32 0.7978846, %v3354_v22  ;;  %4571 = vtanh.f32 %v3356_v23 }
0x16e9   :  { %4573 = vtanh.f32 %v3357_v24 }
0x16ea   :  { %4575 = vtanh.f32 %v3358_v25 }
0x16f1   :  { %v4570_v26 = vpop.eup %4569 }
0x16f2   :  { %v4572_v27 = vpop.eup %4571  ;;  %v3363_v28 = vadd.f32 1.0, %v4570_v26  ;;  %v3924_v26 = vld [vmem:[%s5690_s17] ss:$0 sm:$0xff] }
0x16f3   :  { %v4574_v29 = vpop.eup %4573  ;;  %v3364_v30 = vadd.f32 1.0, %v4572_v27 }
0x16f4   :  { %v4576_v32 = vpop.eup %4575  ;;  %v3365_v9 = vadd.f32 1.0, %v4574_v29  ;;  %v3367_v37 = vmul.f32 %v3363_v28, %v3335_v33  ;;  %v3933_v33 = vld [vmem:[%s5711_s20] ss:$0 sm:$0xff] }
0x16f5   :  { %v3366_v17 = vadd.f32 1.0, %v4576_v32  ;;  %v3368_v40 = vmul.f32 %v3364_v30, %v3336_v35 }
0x16f6   :  { %v3369_v39 = vmul.f32 %v3365_v9, %v3337_v34 }
0x16f7   :  { %v3370_v41 = vmul.f32 %v3366_v17, %v3338_v36  ;;  %v3934_v36 = vld [vmem:[#allocation2] ss:$0 sm:$0xff] }
0x16f8   :  { %v3371_v42 = vpack.c.bf16 %v3369_v39, %v3367_v37 }
0x16f9   :  { %v3372_v51 = vpack.c.bf16 %v3370_v41, %v3368_v40 }
0x16fb   :  { %3542 = vmatprep.mubr.bf16.mxu1 %v3372_v51 }
0x16fc   :  { %3543 = vmatmul.mubr.bf16.vlgmr.msra.gmra.mrb[48].mxu1 %v3371_v42 }
0x17cf   :  { %v4063_v43 = vpop.f32.mrb[48].mxu1 }
0x17d0   :  { %v4064_v47 = vpop.f32.mrb[49].mxu1 }
0x17d1   :  { %v4065_v48 = vadd.f32 %v4064_v47, %v4063_v43  ;;  %v4066_v49 = vpop.f32.mrb[50].mxu1 }
0x17d2   :  { %v4067_v50 = vpop.f32.mrb[51].mxu1 }
0x17d3   :  { %v3545_v53 = vadd.f32 %v4065_v48, %v3905_v46  ;;  %v4068_v54 = vadd.f32 %v4067_v50, %v4066_v49 }
0x17d5   :  { %v3548_v58 = vadd.f32 %v4068_v54, %v3905_v46  ;;  %v3551_v61 = vadd.f32 %v3545_v53, %v5621_v19 }
0x17d7   :  { %3557 = vadd.xlane.f32.xlu0 %v3551_v61  ;;  %v3552_v62 = vadd.f32 %v3548_v58, %v5623_v38  ;;  %v4506_v38 = vld [vmem:[%s5689_s16 + $0x8] sm:$0xff]  }
0x17d8   :  { %4297 = vmatpush3.bf16.msra.mxu0 %v4506_v38 }
0x17d9   :  { %3559 = vadd.xlane.f32.xlu1 %v3552_v62  ;;  %4298 = vmatprep.subr.bf16.mxu0 %v4982_v5 }
0x17dc   :  { %4299 = vmatpush3.bf16.msra.mxu0 %v4507_v10 }
0x17dd   :  { %4300 = vmatprep.subr.bf16.mxu0 %v4982_v5 }
0x17e0   :  { %4301 = vmatpush3.bf16.msra.mxu0 %v4508_v2 }
0x17e1   :  { %4302 = vmatprep.subr.bf16.mxu0 %v4982_v5 }
0x17e4   :  { %4303 = vmatpush3.bf16.msra.mxu0 %v4509_v31 }
0x17e5   :  { %4304 = vmatprep.subr.bf16.mxu0 %v4982_v5 }
0x17e8   :  { %4305 = vmatpush3.bf16.msra.mxu0 %v4510_v11 }
0x17e9   :  { %4306 = vmatprep.subr.bf16.mxu0 %v4982_v5 }
0x17ec   :  { %4307 = vmatpush3.bf16.msra.mxu0 %v4511_v12 }
0x17ed   :  { %4308 = vmatprep.subr.bf16.mxu0 %v4982_v5 }
0x17f0   :  { %4309 = vmatpush3.bf16.msra.mxu0 %v4512_v13 }
0x1864   :  { %v3558_v60 = vpop.xlane.xlu0 %3557 }
0x1865   :  { %v3561_v3 = vmul.f32 0.0078125, %v3558_v60 }
0x1866   :  { %v3560_v1 = vpop.xlane.xlu1 %3559 }
0x1867   :  { %v3562_v4 = vmul.f32 0.0078125, %v3560_v1  ;;  %v3563_v7 = vsub.f32 %v3551_v61, %v3561_v3 }
0x1869   :  { %v3564_v6 = vsub.f32 %v3552_v62, %v3562_v4  ;;  %v3565_v19 = vmul.f32 %v3563_v7, %v3563_v7 }
0x186b   :  { %v3566_v8 = vmul.f32 %v3564_v6, %v3564_v6 }
0x186d   :  { %3569 = vadd.xlane.f32.xlu0 %v3566_v8 }
0x1871   :  { %3567 = vadd.xlane.f32.xlu0 %v3565_v19 }
0x18fa   :  { %v3570_v14 = vpop.xlane.xlu0 %3569 }
0x18fb   :  { %v3572_v15 = vmul.f32 0.0078125, %v3570_v14 }
0x18fd   :  { %v3574_v16 = vadd.f32 1e-12, %v3572_v15 }
0x18fe   :  { %v3568_v18 = vpop.xlane.xlu0 %3567 }
0x18ff   :  { %4577 = vrsqrt.f32 %v3574_v16  ;;  %v3571_v44 = vmul.f32 0.0078125, %v3568_v18 }
0x1901   :  { %v3573_v63 = vadd.f32 1e-12, %v3571_v44 }
0x1903   :  { %4579 = vrsqrt.f32 %v3573_v63 }
0x1909   :  { %v4578_v55 = vpop.eup %4577 }
0x190a   :  { %v3578_v57 = vmul.f32 %v4578_v55, %v3564_v6 }
0x190c   :  { %v3586_v20 = vmul.f32 %v3922_v56, %v3578_v57 }
0x190d   :  { %v4580_v45 = vpop.eup %4579 }
0x190e   :  { %v3577_v21 = vmul.f32 %v4580_v45, %v3563_v7  ;;  %v3594_v52 = vadd.f32 %v3923_v59, %v3586_v20 }
0x1910   :  { %v3585_v22 = vmul.f32 %v3922_v56, %v3577_v21  ;;  %v3596_v23 = vrot.slane %v3594_v52, 7 }
0x1912   :  { %v3593_v5 = vadd.f32 %v3923_v59, %v3585_v22 }
0x1914   :  { %v3599_v24 = vsel %vm3598_vm3, %v3593_v5, %v3596_v23 }
0x1915   :  { %v3600_v25 = vpack.c.bf16 %v3599_v24, %v3599_v24 }
0x1917   :  { %4311 = vmatmul.mubr.bf16.vlgmr.msra.gmra.mrb[44].mxu0 %v3600_v25 }
0x19ea   :  { %v3706_v27 = vpop.f32.mrb[44].mxu0 }
0x19eb   :  { %v3707_v28 = vadd.f32 %v3924_v26, %v3706_v27  ;;  %v4312_v29 = vpop.f32.mrb[45].mxu0 }
0x19ec   :  { %v3709_v30 = vpop.f32.mrb[46].mxu0 }
0x19ed   :  { %4581 = vtanh.f32 %v3707_v28  ;;  %v4313_v32 = vpop.f32.mrb[47].mxu0 }
0x19f7   :  { %v4582_v34 = vpop.eup %4581 }
0x19f8   :  { %v3720_v9 = vmul.f32 %v4582_v34, %v3933_v33 }
0x19fa   :  { %v3722_v35 = vsel %vm3721_vm4, %v3720_v9, 0.0 }
0x19fb   :  { %3723 = vadd.xlane.f32.xlu0 %v3722_v35 }
0x1a88   :  { %v3724_v17 = vpop.xlane.xlu0 %3723 }
0x1a89   :  { %v3732_v37 = vadd.f32 %v3934_v36, %v3724_v17 }
0x1a8b   :  { %3734 = vst.msk [vmem:[%s5712_s6] sm:$0x3] %vm3733_vm5, %v3732_v37 }
0x1a8c   :  { %3739 = vsyncpa [#allocation4], 1 }
0x1a8d   :  { %3740 = vsyncpa [#allocation6], 1 }
0x1a8e   :  { %3741 = vsyncpa [#allocation9], 1 }
0x1a8f   :  { %3742 = vsyncpa [#allocation12], 1 }
0x1a90   :  { %3743 = vsyncpa [#allocation15], 1 }
0x1a91   :  { %3744 = vsyncpa [#allocation18], 1 }
0x1a92   :  { %3745 = vsyncpa [#allocation21], 1 }
0x1a93   :  { %3746 = vsyncpa [#allocation24], 1 }
0x1a94   :  { %3747 = vsyncpa [#allocation27], 1 }

</bundles_post_ra>
